<compile_context>
chip_gen: v5e
topology: v5e:2x2
jax: 0.10.0
libtpu: 0.0.40
codegen_flags: <defaults>
</compile_context>

<pallas_src>
import functools

import jax
import jax.numpy as jnp
from jax import lax
from jax.experimental import pallas as pl
from jax.experimental.pallas import tpu as pltpu  # noqa: F401  (TPU backend assumed)


# ----------------------------------------------------------------------------
# Single fused Pallas kernel: embed+PE -> 3 encoder layers -> pool -> head
# ----------------------------------------------------------------------------
def _fused_forward_kernel(
        seq_ref, num_ref, cat_ref, w_seq_ref, seq_bias_ref,
        sel_ref, head_mask_ref, blk_sum_ref, bmask_ref, pool_ref,
        wq_ref, wk_ref, wv_ref, bq_ref, bk_ref, bv_ref,
        wo_ref, bo_ref, g1_ref, bt1_ref,
        w1_ref, b1_ref, w2_ref, b2_ref, g2_ref, bt2_ref,
        w_num_ref, b_num_ref,
        wr1n_ref, wr1c_ref, wr1s_ref, br1_ref, wr2_ref, br2_ref,
        o_ref, *, num_layers):
    f32 = jnp.float32
    eps = 1e-5

    # ---- sequence embedding Linear(1, D) + positional encoding (pe+bias prefused)
    h = seq_ref[...] * w_seq_ref[...] + seq_bias_ref[...]            # [B*S, D]

    # ---- constant attention-structure matrices (precomputed on host) ----
    sel = sel_ref[...]              # [B*H*S, B*S]   expansion (row -> source key row)
    head_mask = head_mask_ref[...]  # [B*H*S, D]     keep only features of row's head
    blk_sum = blk_sum_ref[...]      # [B*H*S, B*H*S] same-(batch,head) block indicator
    bmask = bmask_ref[...]          # [B*S, B*H*S]   same-batch query/key indicator
    not_bmask = 1.0 - bmask

    def layer_norm(y, g, b):
        mu = jnp.mean(y, axis=-1, keepdims=True)
        var = jnp.mean(jnp.square(y - mu), axis=-1, keepdims=True)
        return (y - mu) * lax.rsqrt(var + eps) * g + b

    for l in range(num_layers):                                       # static unroll
        x = h
        # Q/K/V projections; attention scale already folded into wq/bq.
        q = jnp.dot(x, wq_ref[l], preferred_element_type=f32) + bq_ref[l]   # [B*S, D]
        k = jnp.dot(x, wk_ref[l], preferred_element_type=f32) + bk_ref[l]
        v = jnp.dot(x, wv_ref[l], preferred_element_type=f32) + bv_ref[l]

        # Block-diagonal (batch, head) expansion: row r of k_exp/v_exp holds the
        # head-h features of key j of batch b, zero elsewhere.
        k_exp = jnp.dot(sel, k, preferred_element_type=f32) * head_mask     # [B*H*S, D]
        v_exp = jnp.dot(sel, v, preferred_element_type=f32) * head_mask

        # Scores: D-wide contraction, lane-dense [B*S, B*H*S] = [16, 128] result.
        s = lax.dot_general(q, k_exp, (((1,), (1,)), ((), ())),
                            preferred_element_type=f32)

        # Per-(batch, head) softmax.  Shifting by the global row max is exact
        # (constant per row); cross-batch columns are zeroed, per-block sums come
        # from one MXU matmul against blk_sum, and +not_bmask keeps the unused
        # cross-batch denominators at 1 (avoids 0/0).
        m = jnp.max(s, axis=-1, keepdims=True)
        p = jnp.exp(s - m) * bmask
        denom = jnp.dot(p, blk_sum, preferred_element_type=f32) + not_bmask
        p = p / denom                                                 # exact softmax
        attn = jnp.dot(p, v_exp, preferred_element_type=f32)          # [B*S, D]

        # Out projection + residual + LayerNorm 1.
        attn = jnp.dot(attn, wo_ref[l], preferred_element_type=f32) + bo_ref[l]
        h1 = layer_norm(x + attn, g1_ref[l], bt1_ref[l])

        # Feed-forward (ReLU) + residual + LayerNorm 2 (intermediate stays in VMEM).
        ff = jnp.dot(h1, w1_ref[l], preferred_element_type=f32) + b1_ref[l]
        ff = jnp.maximum(ff, 0.0)
        ff = jnp.dot(ff, w2_ref[l], preferred_element_type=f32) + b2_ref[l]
        h = layer_norm(h1 + ff, g2_ref[l], bt2_ref[l])

    # ---- mean pool over sequence + numerical embedding + regressor head ----
    t = jnp.dot(pool_ref[...], h, preferred_element_type=f32)         # [B, D]
    num_emb = (jnp.dot(num_ref[...], w_num_ref[...], preferred_element_type=f32)
               + b_num_ref[...])                                       # [B, E]
    # Split-matmul form of Linear(concat([num_emb, cat_emb, t])) — no lane concat.
    hid = (jnp.dot(num_emb, wr1n_ref[...], preferred_element_type=f32)
           + jnp.dot(cat_ref[...], wr1c_ref[...], preferred_element_type=f32)
           + jnp.dot(t, wr1s_ref[...], preferred_element_type=f32)
           + br1_ref[...])
    hid = jnp.maximum(hid, 0.0)
    # Final Linear(128, 1) as a lane reduction.
    o_ref[...] = jnp.sum(hid * wr2_ref[...], axis=-1, keepdims=True) + br2_ref[...]


def fused_forward(packed, seq_col, numerical, cat_emb):
    B = numerical.shape[0]
    num_layers = packed["wq"].shape[0]
    kernel = functools.partial(_fused_forward_kernel, num_layers=num_layers)
    # No grid: every operand is a whole-array block resident in VMEM (<1 MB total).
    return pl.pallas_call(
        kernel,
        out_shape=jax.ShapeDtypeStruct((B, 1), jnp.float32),
    )(seq_col, numerical, cat_emb,
      packed["w_seq"], packed["seq_bias"],
      packed["sel"], packed["head_mask"], packed["blk_sum"],
      packed["bmask"], packed["pool"],
      packed["wq"], packed["wk"], packed["wv"],
      packed["bq"], packed["bk"], packed["bv"],
      packed["wo"], packed["bo"], packed["g1"], packed["bt1"],
      packed["w1"], packed["b1"], packed["w2"], packed["b2"],
      packed["g2"], packed["bt2"],
      packed["w_num"], packed["b_num"],
      packed["wr1n"], packed["wr1c"], packed["wr1s"], packed["br1"],
      packed["wr2"], packed["br2"])


# ----------------------------------------------------------------------------
# Parameters (PyTorch-equivalent layout, weights stored [in, out]) + packing
# ----------------------------------------------------------------------------
def init_params(key, num_numerical, num_categorical, d_model=64, nhead=8,
                num_encoder_layers=3, dim_feedforward=256, embedding_dim=8,
                max_len=1024):
    def dense(k, fan_in, fan_out):
        kw, kb = jax.random.split(k)
        lim = 1.0 / (fan_in ** 0.5)
        w = jax.random.uniform(kw, (fan_in, fan_out), jnp.float32, -lim, lim)
        b = jax.random.uniform(kb, (fan_out,), jnp.float32, -lim, lim)
        return w, b

    keys = iter(jax.random.split(key, 8 + 4 * num_encoder_layers))
    p = {}
    p["w_num"], p["b_num"] = dense(next(keys), num_numerical, embedding_dim)
    p["emb_table"] = jax.random.normal(
        next(keys), (num_categorical, embedding_dim), jnp.float32)
    p["w_seq"], p["b_seq"] = dense(next(keys), 1, d_model)

    # PositionalEncoding buffer (sin/cos), built in plain JAX (glue).
    position = jnp.arange(max_len, dtype=jnp.float32)[:, None]
    div_term = jnp.exp(jnp.arange(0, d_model, 2, dtype=jnp.float32)
                       * (-jnp.log(10000.0) / d_model))
    pe = jnp.zeros((max_len, d_model), jnp.float32)
    pe = pe.at[:, 0::2].set(jnp.sin(position * div_term))
    pe = pe.at[:, 1::2].set(jnp.cos(position * div_term))
    p["pe"] = pe

    layers = []
    for _ in range(num_encoder_layers):
        lp = {}
        lp["w_in"], lp["b_in"] = dense(next(keys), d_model, 3 * d_model)
        lp["w_o"], lp["b_o"] = dense(next(keys), d_model, d_model)
        lp["w1"], lp["b1"] = dense(next(keys), d_model, dim_feedforward)
        lp["w2"], lp["b2"] = dense(next(keys), dim_feedforward, d_model)
        lp["g1"] = jnp.ones((d_model,), jnp.float32)
        lp["bt1"] = jnp.zeros((d_model,), jnp.float32)
        lp["g2"] = jnp.ones((d_model,), jnp.float32)
        lp["bt2"] = jnp.zeros((d_model,), jnp.float32)
        layers.append(lp)
    p["layers"] = layers

    fc_in = embedding_dim + embedding_dim * num_categorical + d_model
    p["w_r1"], p["b_r1"] = dense(next(keys), fc_in, 128)
    p["w_r2"], p["b_r2"] = dense(next(keys), 128, 1)
    return p


def pack_params(p, *, B, S, d_model=64, nhead=8, embedding_dim=8, num_categorical=3):
    """One-time host-side weight transform + constant masks for the fused kernel."""
    D, H = d_model, nhead
    Dh = D // H
    scale = 1.0 / (Dh ** 0.5)
    E = embedding_dim
    CE = embedding_dim * num_categorical
    layers = p["layers"]

    packed = {
        "emb_table": p["emb_table"],
        "w_seq": p["w_seq"].reshape(1, D),
        "seq_bias": jnp.tile(p["pe"][:S], (B, 1)) + p["b_seq"][None, :],   # [B*S, D]
        "w_num": p["w_num"],
        "b_num": p["b_num"].reshape(1, E),
        "wr1n": p["w_r1"][:E],
        "wr1c": p["w_r1"][E:E + CE],
        "wr1s": p["w_r1"][E + CE:],
        "br1": p["b_r1"].reshape(1, -1),
        "wr2": p["w_r2"].reshape(1, -1),
        "br2": p["b_r2"].reshape(1, 1),
        # Stacked per-layer weights; attention scale folded into W_q / b_q.
        "wq": jnp.stack([lp["w_in"][:, :D] * scale for lp in layers]),
        "wk": jnp.stack([lp["w_in"][:, D:2 * D] for lp in layers]),
        "wv": jnp.stack([lp["w_in"][:, 2 * D:] for lp in layers]),
        "bq": jnp.stack([(lp["b_in"][:D] * scale).reshape(1, D) for lp in layers]),
        "bk": jnp.stack([lp["b_in"][D:2 * D].reshape(1, D) for lp in layers]),
        "bv": jnp.stack([lp["b_in"][2 * D:].reshape(1, D) for lp in layers]),
        "wo": jnp.stack([lp["w_o"] for lp in layers]),
        "bo": jnp.stack([lp["b_o"].reshape(1, D) for lp in layers]),
        "g1": jnp.stack([lp["g1"].reshape(1, D) for lp in layers]),
        "bt1": jnp.stack([lp["bt1"].reshape(1, D) for lp in layers]),
        "w1": jnp.stack([lp["w1"] for lp in layers]),
        "b1": jnp.stack([lp["b1"].reshape(1, -1) for lp in layers]),
        "w2": jnp.stack([lp["w2"] for lp in layers]),
        "b2": jnp.stack([lp["b2"].reshape(1, D) for lp in layers]),
        "g2": jnp.stack([lp["g2"].reshape(1, D) for lp in layers]),
        "bt2": jnp.stack([lp["bt2"].reshape(1, D) for lp in layers]),
    }

    # Constant attention-structure matrices (batch + head block-diagonal expansion).
    BS, BHS = B * S, B * H * S
    r = jnp.arange(BHS)
    rb = r // (H * S)                 # batch of expanded row
    rh = (r % (H * S)) // S           # head of expanded row
    rj = r % S                        # key index of expanded row
    src = rb * S + rj                 # source row of k / v
    packed["sel"] = (src[:, None] == jnp.arange(BS)[None, :]).astype(jnp.float32)
    packed["head_mask"] = ((jnp.arange(D)[None, :] // Dh)
                           == rh[:, None]).astype(jnp.float32)
    blk = r // S                      # (batch, head) block id
    packed["blk_sum"] = (blk[:, None] == blk[None, :]).astype(jnp.float32)
    qb = jnp.arange(BS) // S          # batch of query row
    packed["bmask"] = (qb[:, None] == rb[None, :]).astype(jnp.float32)
    packed["pool"] = (jnp.arange(B)[:, None] == qb[None, :]).astype(jnp.float32) / S
    return packed


# ----------------------------------------------------------------------------
# Forward (jit) + pure-JAX reference for validation
# ----------------------------------------------------------------------------
@functools.partial(jax.jit, static_argnames=("num_numerical", "num_categorical"))
def forward(x, packed, *, num_numerical, num_categorical):
    B = x.shape[0]
    numerical = x[:, :num_numerical]
    categorical = x[:, num_numerical:num_numerical + num_categorical].astype(jnp.int32)
    sequence = x[:, num_numerical + num_categorical:]                  # [B, S]
    S = sequence.shape[1]
    # TODO(synk): tiny categorical embedding gather (B x C indices) stays in XLA.
    cat_emb = jnp.take(packed["emb_table"], categorical, axis=0).reshape(B, -1)
    seq_col = sequence.reshape(B * S, 1)
    return fused_forward(packed, seq_col, numerical, cat_emb)


def reference_forward(x, p, *, num_numerical, num_categorical, d_model=64, nhead=8):
    B = x.shape[0]
    D, H = d_model, nhead
    Dh = D // H
    numerical = x[:, :num_numerical]
    categorical = x[:, num_numerical:num_numerical + num_categorical].astype(jnp.int32)
    sequence = x[:, num_numerical + num_categorical:]
    S = sequence.shape[1]
    cat_emb = jnp.take(p["emb_table"], categorical, axis=0).reshape(B, -1)
    num_emb = numerical @ p["w_num"] + p["b_num"]
    h = sequence[..., None] * p["w_seq"][0] + p["b_seq"] + p["pe"][:S]

    def ln(y, g, b):
        mu = y.mean(-1, keepdims=True)
        var = ((y - mu) ** 2).mean(-1, keepdims=True)
        return (y - mu) / jnp.sqrt(var + 1e-5) * g + b

    for lp in p["layers"]:
        qkv = h @ lp["w_in"] + lp["b_in"]
        q, k, v = qkv[..., :D], qkv[..., D:2 * D], qkv[..., 2 * D:]
        q = q.reshape(B, S, H, Dh).transpose(0, 2, 1, 3)
        k = k.reshape(B, S, H, Dh).transpose(0, 2, 1, 3)
        v = v.reshape(B, S, H, Dh).transpose(0, 2, 1, 3)
        s = jnp.einsum("bhid,bhjd->bhij", q, k) / (Dh ** 0.5)
        a = jax.nn.softmax(s, axis=-1)
        attn = jnp.einsum("bhij,bhjd->bhid", a, v).transpose(0, 2, 1, 3).reshape(B, S, D)
        attn = attn @ lp["w_o"] + lp["b_o"]
        h1 = ln(h + attn, lp["g1"], lp["bt1"])
        ff = jnp.maximum(h1 @ lp["w1"] + lp["b1"], 0.0) @ lp["w2"] + lp["b2"]
        h = ln(h1 + ff, lp["g2"], lp["bt2"])
    t = h.mean(axis=1)
    comb = jnp.concatenate([num_emb, cat_emb, t], axis=1)
    hid = jnp.maximum(comb @ p["w_r1"] + p["b_r1"], 0.0)
    return hid @ p["w_r2"] + p["b_r2"]


# ----------------------------------------------------------------------------
# main
# ----------------------------------------------------------------------------
if __name__ == "__main__":
    B = 2
    NUM_NUMERICAL = 4
    NUM_CATEGORICAL = 3
    SEQ_LEN = 8
    D_MODEL = 64
    NHEAD = 8
    EMBED_DIM = 8

    key = jax.random.PRNGKey(0)
    k_num, k_cat, k_seq, k_par = jax.random.split(key, 4)

    numerical = jax.random.normal(k_num, (B, NUM_NUMERICAL), jnp.float32)
    categorical = jax.random.randint(
        k_cat, (B, NUM_CATEGORICAL), 0, NUM_CATEGORICAL).astype(jnp.float32)
    sequence = jax.random.normal(k_seq, (B, SEQ_LEN), jnp.float32)
    x = jnp.concatenate([numerical, categorical, sequence], axis=1)    # [2, 15]

    params = init_params(k_par, NUM_NUMERICAL, NUM_CATEGORICAL,
                         d_model=D_MODEL, nhead=NHEAD, embedding_dim=EMBED_DIM)
    packed = pack_params(params, B=B, S=SEQ_LEN, d_model=D_MODEL, nhead=NHEAD,
                         embedding_dim=EMBED_DIM, num_categorical=NUM_CATEGORICAL)

    out = forward(x, packed,
                  num_numerical=NUM_NUMERICAL, num_categorical=NUM_CATEGORICAL)
    out = jax.block_until_ready(out)
    assert out.shape == (B, 1) and out.dtype == jnp.float32
    assert bool(jnp.all(jnp.isfinite(out)))

    # Pure-JAX reference (standard per-head attention) for a sanity check.
    with jax.default_matmul_precision("highest"):
        ref = reference_forward(x, params,
                                num_numerical=NUM_NUMERICAL,
                                num_categorical=NUM_CATEGORICAL,
                                d_model=D_MODEL, nhead=NHEAD)
    ref = jax.block_until_ready(ref)
    assert bool(jnp.allclose(out, ref, rtol=2e-2, atol=2e-2)), (out, ref)

    print("KERNEL_OK")
</pallas_src>

<mosaic_0001>
module attributes {stable_mosaic.version = 11 : i64} {
  func.func @_fused_forward_kernel(%arg0: memref<16x1xf32, #tpu.memory_space<vmem>>, %arg1: memref<2x4xf32, #tpu.memory_space<vmem>>, %arg2: memref<2x24xf32, #tpu.memory_space<vmem>>, %arg3: memref<1x64xf32, #tpu.memory_space<vmem>>, %arg4: memref<16x64xf32, #tpu.memory_space<vmem>>, %arg5: memref<128x16xf32, #tpu.memory_space<vmem>>, %arg6: memref<128x64xf32, #tpu.memory_space<vmem>>, %arg7: memref<128x128xf32, #tpu.memory_space<vmem>>, %arg8: memref<16x128xf32, #tpu.memory_space<vmem>>, %arg9: memref<2x16xf32, #tpu.memory_space<vmem>>, %arg10: memref<3x64x64xf32, #tpu.memory_space<vmem>>, %arg11: memref<3x64x64xf32, #tpu.memory_space<vmem>>, %arg12: memref<3x64x64xf32, #tpu.memory_space<vmem>>, %arg13: memref<3x1x64xf32, #tpu.memory_space<vmem>>, %arg14: memref<3x1x64xf32, #tpu.memory_space<vmem>>, %arg15: memref<3x1x64xf32, #tpu.memory_space<vmem>>, %arg16: memref<3x64x64xf32, #tpu.memory_space<vmem>>, %arg17: memref<3x1x64xf32, #tpu.memory_space<vmem>>, %arg18: memref<3x1x64xf32, #tpu.memory_space<vmem>>, %arg19: memref<3x1x64xf32, #tpu.memory_space<vmem>>, %arg20: memref<3x64x256xf32, #tpu.memory_space<vmem>>, %arg21: memref<3x1x256xf32, #tpu.memory_space<vmem>>, %arg22: memref<3x256x64xf32, #tpu.memory_space<vmem>>, %arg23: memref<3x1x64xf32, #tpu.memory_space<vmem>>, %arg24: memref<3x1x64xf32, #tpu.memory_space<vmem>>, %arg25: memref<3x1x64xf32, #tpu.memory_space<vmem>>, %arg26: memref<4x8xf32, #tpu.memory_space<vmem>>, %arg27: memref<1x8xf32, #tpu.memory_space<vmem>>, %arg28: memref<8x128xf32, #tpu.memory_space<vmem>>, %arg29: memref<24x128xf32, #tpu.memory_space<vmem>>, %arg30: memref<64x128xf32, #tpu.memory_space<vmem>>, %arg31: memref<1x128xf32, #tpu.memory_space<vmem>>, %arg32: memref<1x128xf32, #tpu.memory_space<vmem>>, %arg33: memref<1x1xf32, #tpu.memory_space<vmem>>, %arg34: memref<2x1xf32, #tpu.memory_space<vmem>>) attributes {dimension_semantics = [], scalar_prefetch = 0 : i64, scratch_operands = 0 : i64, tpu.core_type = #tpu.core_type<tc>} {
    %c0 = arith.constant 0 : index
    %c0_0 = arith.constant 0 : index
    %0 = vector.load %arg0[%c0, %c0_0] : memref<16x1xf32, #tpu.memory_space<vmem>>, vector<16x1xf32>
    %c0_1 = arith.constant 0 : index
    %c0_2 = arith.constant 0 : index
    %1 = vector.load %arg3[%c0_1, %c0_2] : memref<1x64xf32, #tpu.memory_space<vmem>>, vector<1x64xf32>
    %2 = vector.broadcast %0 : vector<16x1xf32> to vector<16x64xf32>
    %3 = vector.broadcast %1 : vector<1x64xf32> to vector<16x64xf32>
    %4 = arith.mulf %2, %3 : vector<16x64xf32>
    %c0_3 = arith.constant 0 : index
    %c0_4 = arith.constant 0 : index
    %5 = vector.load %arg4[%c0_3, %c0_4] : memref<16x64xf32, #tpu.memory_space<vmem>>, vector<16x64xf32>
    %6 = arith.addf %4, %5 : vector<16x64xf32>
    %c0_5 = arith.constant 0 : index
    %c0_6 = arith.constant 0 : index
    %7 = vector.load %arg5[%c0_5, %c0_6] : memref<128x16xf32, #tpu.memory_space<vmem>>, vector<128x16xf32>
    %c0_7 = arith.constant 0 : index
    %c0_8 = arith.constant 0 : index
    %8 = vector.load %arg6[%c0_7, %c0_8] : memref<128x64xf32, #tpu.memory_space<vmem>>, vector<128x64xf32>
    %c0_9 = arith.constant 0 : index
    %c0_10 = arith.constant 0 : index
    %9 = vector.load %arg7[%c0_9, %c0_10] : memref<128x128xf32, #tpu.memory_space<vmem>>, vector<128x128xf32>
    %c0_11 = arith.constant 0 : index
    %c0_12 = arith.constant 0 : index
    %10 = vector.load %arg8[%c0_11, %c0_12] : memref<16x128xf32, #tpu.memory_space<vmem>>, vector<16x128xf32>
    %cst = arith.constant 1.000000e+00 : f32
    %11 = vector.broadcast %cst : f32 to vector<16x128xf32>
    %12 = arith.subf %11, %10 : vector<16x128xf32>
    %c0_13 = arith.constant 0 : index
    %c0_14 = arith.constant 0 : index
    %c0_15 = arith.constant 0 : index
    %13 = vector.load %arg10[%c0_13, %c0_14, %c0_15] : memref<3x64x64xf32, #tpu.memory_space<vmem>>, vector<1x64x64xf32>
    %14 = vector.shape_cast %13 : vector<1x64x64xf32> to vector<64x64xf32>
    %cst_16 = arith.constant dense<0.000000e+00> : vector<16x64xf32>
    %15 = tpu.matmul %6, %14, %cst_16 {dimension_numbers = #tpu.dot_dimension_numbers<[1], [0], [0], [1], [0, 0, 1, 1], [], []>} : vector<16x64xf32>, vector<64x64xf32>, vector<16x64xf32> -> vector<16x64xf32>
    %c0_17 = arith.constant 0 : index
    %c0_18 = arith.constant 0 : index
    %c0_19 = arith.constant 0 : index
    %16 = vector.load %arg13[%c0_17, %c0_18, %c0_19] : memref<3x1x64xf32, #tpu.memory_space<vmem>>, vector<1x1x64xf32>
    %17 = vector.shape_cast %16 : vector<1x1x64xf32> to vector<1x64xf32>
    %18 = vector.broadcast %17 : vector<1x64xf32> to vector<16x64xf32>
    %19 = arith.addf %15, %18 : vector<16x64xf32>
    %c0_20 = arith.constant 0 : index
    %c0_21 = arith.constant 0 : index
    %c0_22 = arith.constant 0 : index
    %20 = vector.load %arg11[%c0_20, %c0_21, %c0_22] : memref<3x64x64xf32, #tpu.memory_space<vmem>>, vector<1x64x64xf32>
    %21 = vector.shape_cast %20 : vector<1x64x64xf32> to vector<64x64xf32>
    %cst_23 = arith.constant dense<0.000000e+00> : vector<16x64xf32>
    %22 = tpu.matmul %6, %21, %cst_23 {dimension_numbers = #tpu.dot_dimension_numbers<[1], [0], [0], [1], [0, 0, 1, 1], [], []>} : vector<16x64xf32>, vector<64x64xf32>, vector<16x64xf32> -> vector<16x64xf32>
    %c0_24 = arith.constant 0 : index
    %c0_25 = arith.constant 0 : index
    %c0_26 = arith.constant 0 : index
    %23 = vector.load %arg14[%c0_24, %c0_25, %c0_26] : memref<3x1x64xf32, #tpu.memory_space<vmem>>, vector<1x1x64xf32>
    %24 = vector.shape_cast %23 : vector<1x1x64xf32> to vector<1x64xf32>
    %25 = vector.broadcast %24 : vector<1x64xf32> to vector<16x64xf32>
    %26 = arith.addf %22, %25 : vector<16x64xf32>
    %c0_27 = arith.constant 0 : index
    %c0_28 = arith.constant 0 : index
    %c0_29 = arith.constant 0 : index
    %27 = vector.load %arg12[%c0_27, %c0_28, %c0_29] : memref<3x64x64xf32, #tpu.memory_space<vmem>>, vector<1x64x64xf32>
    %28 = vector.shape_cast %27 : vector<1x64x64xf32> to vector<64x64xf32>
    %cst_30 = arith.constant dense<0.000000e+00> : vector<16x64xf32>
    %29 = tpu.matmul %6, %28, %cst_30 {dimension_numbers = #tpu.dot_dimension_numbers<[1], [0], [0], [1], [0, 0, 1, 1], [], []>} : vector<16x64xf32>, vector<64x64xf32>, vector<16x64xf32> -> vector<16x64xf32>
    %c0_31 = arith.constant 0 : index
    %c0_32 = arith.constant 0 : index
    %c0_33 = arith.constant 0 : index
    %30 = vector.load %arg15[%c0_31, %c0_32, %c0_33] : memref<3x1x64xf32, #tpu.memory_space<vmem>>, vector<1x1x64xf32>
    %31 = vector.shape_cast %30 : vector<1x1x64xf32> to vector<1x64xf32>
    %32 = vector.broadcast %31 : vector<1x64xf32> to vector<16x64xf32>
    %33 = arith.addf %29, %32 : vector<16x64xf32>
    %cst_34 = arith.constant dense<0.000000e+00> : vector<128x64xf32>
    %34 = tpu.matmul %7, %26, %cst_34 {dimension_numbers = #tpu.dot_dimension_numbers<[1], [0], [0], [1], [0, 0, 1, 1], [], []>} : vector<128x16xf32>, vector<16x64xf32>, vector<128x64xf32> -> vector<128x64xf32>
    %35 = arith.mulf %34, %8 : vector<128x64xf32>
    %cst_35 = arith.constant dense<0.000000e+00> : vector<128x64xf32>
    %36 = tpu.matmul %7, %33, %cst_35 {dimension_numbers = #tpu.dot_dimension_numbers<[1], [0], [0], [1], [0, 0, 1, 1], [], []>} : vector<128x16xf32>, vector<16x64xf32>, vector<128x64xf32> -> vector<128x64xf32>
    %37 = arith.mulf %36, %8 : vector<128x64xf32>
    %cst_36 = arith.constant dense<0.000000e+00> : vector<16x128xf32>
    %38 = tpu.matmul %19, %35, %cst_36 {dimension_numbers = #tpu.dot_dimension_numbers<[1], [1], [0], [0], [0, 0, 1, 0], [], []>} : vector<16x64xf32>, vector<128x64xf32>, vector<16x128xf32> -> vector<16x128xf32>
    %cst_37 = arith.constant dense<0xFF800000> : vector<16xf32>
    %39 = vector.multi_reduction <maximumf>, %38, %cst_37 [1] : vector<16x128xf32> to vector<16xf32>
    %40 = vector.shape_cast %39 : vector<16xf32> to vector<16x1xf32>
    %41 = vector.broadcast %40 : vector<16x1xf32> to vector<16x128xf32>
    %42 = arith.subf %38, %41 : vector<16x128xf32>
    %43 = math.exp %42 : vector<16x128xf32>
    %44 = arith.mulf %43, %10 : vector<16x128xf32>
    %cst_38 = arith.constant dense<0.000000e+00> : vector<16x128xf32>
    %45 = tpu.matmul %44, %9, %cst_38 {dimension_numbers = #tpu.dot_dimension_numbers<[1], [0], [0], [1], [0, 0, 1, 1], [], []>} : vector<16x128xf32>, vector<128x128xf32>, vector<16x128xf32> -> vector<16x128xf32>
    %46 = arith.addf %45, %12 : vector<16x128xf32>
    %47 = arith.divf %44, %46 : vector<16x128xf32>
    %cst_39 = arith.constant dense<0.000000e+00> : vector<16x64xf32>
    %48 = tpu.matmul %47, %37, %cst_39 {dimension_numbers = #tpu.dot_dimension_numbers<[1], [0], [0], [1], [0, 0, 1, 1], [], []>} : vector<16x128xf32>, vector<128x64xf32>, vector<16x64xf32> -> vector<16x64xf32>
    %c0_40 = arith.constant 0 : index
    %c0_41 = arith.constant 0 : index
    %c0_42 = arith.constant 0 : index
    %49 = vector.load %arg16[%c0_40, %c0_41, %c0_42] : memref<3x64x64xf32, #tpu.memory_space<vmem>>, vector<1x64x64xf32>
    %50 = vector.shape_cast %49 : vector<1x64x64xf32> to vector<64x64xf32>
    %cst_43 = arith.constant dense<0.000000e+00> : vector<16x64xf32>
    %51 = tpu.matmul %48, %50, %cst_43 {dimension_numbers = #tpu.dot_dimension_numbers<[1], [0], [0], [1], [0, 0, 1, 1], [], []>} : vector<16x64xf32>, vector<64x64xf32>, vector<16x64xf32> -> vector<16x64xf32>
    %c0_44 = arith.constant 0 : index
    %c0_45 = arith.constant 0 : index
    %c0_46 = arith.constant 0 : index
    %52 = vector.load %arg17[%c0_44, %c0_45, %c0_46] : memref<3x1x64xf32, #tpu.memory_space<vmem>>, vector<1x1x64xf32>
    %53 = vector.shape_cast %52 : vector<1x1x64xf32> to vector<1x64xf32>
    %54 = vector.broadcast %53 : vector<1x64xf32> to vector<16x64xf32>
    %55 = arith.addf %51, %54 : vector<16x64xf32>
    %56 = arith.addf %6, %55 : vector<16x64xf32>
    %c0_47 = arith.constant 0 : index
    %c0_48 = arith.constant 0 : index
    %c0_49 = arith.constant 0 : index
    %57 = vector.load %arg18[%c0_47, %c0_48, %c0_49] : memref<3x1x64xf32, #tpu.memory_space<vmem>>, vector<1x1x64xf32>
    %58 = vector.shape_cast %57 : vector<1x1x64xf32> to vector<1x64xf32>
    %c0_50 = arith.constant 0 : index
    %c0_51 = arith.constant 0 : index
    %c0_52 = arith.constant 0 : index
    %59 = vector.load %arg19[%c0_50, %c0_51, %c0_52] : memref<3x1x64xf32, #tpu.memory_space<vmem>>, vector<1x1x64xf32>
    %60 = vector.shape_cast %59 : vector<1x1x64xf32> to vector<1x64xf32>
    %cst_53 = arith.constant dense<0.000000e+00> : vector<16xf32>
    %61 = vector.multi_reduction <add>, %56, %cst_53 [1] : vector<16x64xf32> to vector<16xf32>
    %62 = vector.shape_cast %61 : vector<16xf32> to vector<16x1xf32>
    %cst_54 = arith.constant 6.400000e+01 : f32
    %63 = vector.broadcast %cst_54 : f32 to vector<16x1xf32>
    %64 = arith.divf %62, %63 : vector<16x1xf32>
    %65 = vector.broadcast %64 : vector<16x1xf32> to vector<16x64xf32>
    %66 = arith.subf %56, %65 : vector<16x64xf32>
    %67 = arith.mulf %66, %66 : vector<16x64xf32>
    %cst_55 = arith.constant dense<0.000000e+00> : vector<16xf32>
    %68 = vector.multi_reduction <add>, %67, %cst_55 [1] : vector<16x64xf32> to vector<16xf32>
    %69 = vector.shape_cast %68 : vector<16xf32> to vector<16x1xf32>
    %cst_56 = arith.constant 6.400000e+01 : f32
    %70 = vector.broadcast %cst_56 : f32 to vector<16x1xf32>
    %71 = arith.divf %69, %70 : vector<16x1xf32>
    %72 = vector.broadcast %64 : vector<16x1xf32> to vector<16x64xf32>
    %73 = arith.subf %56, %72 : vector<16x64xf32>
    %cst_57 = arith.constant 9.99999974E-6 : f32
    %74 = vector.broadcast %cst_57 : f32 to vector<16x1xf32>
    %75 = arith.addf %71, %74 : vector<16x1xf32>
    %76 = math.rsqrt %75 : vector<16x1xf32>
    %77 = vector.broadcast %76 : vector<16x1xf32> to vector<16x64xf32>
    %78 = arith.mulf %73, %77 : vector<16x64xf32>
    %79 = vector.broadcast %58 : vector<1x64xf32> to vector<16x64xf32>
    %80 = arith.mulf %78, %79 : vector<16x64xf32>
    %81 = vector.broadcast %60 : vector<1x64xf32> to vector<16x64xf32>
    %82 = arith.addf %80, %81 : vector<16x64xf32>
    %c0_58 = arith.constant 0 : index
    %c0_59 = arith.constant 0 : index
    %c0_60 = arith.constant 0 : index
    %83 = vector.load %arg20[%c0_58, %c0_59, %c0_60] : memref<3x64x256xf32, #tpu.memory_space<vmem>>, vector<1x64x256xf32>
    %84 = vector.shape_cast %83 : vector<1x64x256xf32> to vector<64x256xf32>
    %cst_61 = arith.constant dense<0.000000e+00> : vector<16x256xf32>
    %85 = tpu.matmul %82, %84, %cst_61 {dimension_numbers = #tpu.dot_dimension_numbers<[1], [0], [0], [1], [0, 0, 1, 1], [], []>} : vector<16x64xf32>, vector<64x256xf32>, vector<16x256xf32> -> vector<16x256xf32>
    %c0_62 = arith.constant 0 : index
    %c0_63 = arith.constant 0 : index
    %c0_64 = arith.constant 0 : index
    %86 = vector.load %arg21[%c0_62, %c0_63, %c0_64] : memref<3x1x256xf32, #tpu.memory_space<vmem>>, vector<1x1x256xf32>
    %87 = vector.shape_cast %86 : vector<1x1x256xf32> to vector<1x256xf32>
    %88 = vector.broadcast %87 : vector<1x256xf32> to vector<16x256xf32>
    %89 = arith.addf %85, %88 : vector<16x256xf32>
    %cst_65 = arith.constant 0.000000e+00 : f32
    %90 = vector.broadcast %cst_65 : f32 to vector<16x256xf32>
    %91 = arith.maximumf %89, %90 : vector<16x256xf32>
    %c0_66 = arith.constant 0 : index
    %c0_67 = arith.constant 0 : index
    %c0_68 = arith.constant 0 : index
    %92 = vector.load %arg22[%c0_66, %c0_67, %c0_68] : memref<3x256x64xf32, #tpu.memory_space<vmem>>, vector<1x256x64xf32>
    %93 = vector.shape_cast %92 : vector<1x256x64xf32> to vector<256x64xf32>
    %cst_69 = arith.constant dense<0.000000e+00> : vector<16x64xf32>
    %94 = tpu.matmul %91, %93, %cst_69 {dimension_numbers = #tpu.dot_dimension_numbers<[1], [0], [0], [1], [0, 0, 1, 1], [], []>} : vector<16x256xf32>, vector<256x64xf32>, vector<16x64xf32> -> vector<16x64xf32>
    %c0_70 = arith.constant 0 : index
    %c0_71 = arith.constant 0 : index
    %c0_72 = arith.constant 0 : index
    %95 = vector.load %arg23[%c0_70, %c0_71, %c0_72] : memref<3x1x64xf32, #tpu.memory_space<vmem>>, vector<1x1x64xf32>
    %96 = vector.shape_cast %95 : vector<1x1x64xf32> to vector<1x64xf32>
    %97 = vector.broadcast %96 : vector<1x64xf32> to vector<16x64xf32>
    %98 = arith.addf %94, %97 : vector<16x64xf32>
    %99 = arith.addf %82, %98 : vector<16x64xf32>
    %c0_73 = arith.constant 0 : index
    %c0_74 = arith.constant 0 : index
    %c0_75 = arith.constant 0 : index
    %100 = vector.load %arg24[%c0_73, %c0_74, %c0_75] : memref<3x1x64xf32, #tpu.memory_space<vmem>>, vector<1x1x64xf32>
    %101 = vector.shape_cast %100 : vector<1x1x64xf32> to vector<1x64xf32>
    %c0_76 = arith.constant 0 : index
    %c0_77 = arith.constant 0 : index
    %c0_78 = arith.constant 0 : index
    %102 = vector.load %arg25[%c0_76, %c0_77, %c0_78] : memref<3x1x64xf32, #tpu.memory_space<vmem>>, vector<1x1x64xf32>
    %103 = vector.shape_cast %102 : vector<1x1x64xf32> to vector<1x64xf32>
    %cst_79 = arith.constant dense<0.000000e+00> : vector<16xf32>
    %104 = vector.multi_reduction <add>, %99, %cst_79 [1] : vector<16x64xf32> to vector<16xf32>
    %105 = vector.shape_cast %104 : vector<16xf32> to vector<16x1xf32>
    %cst_80 = arith.constant 6.400000e+01 : f32
    %106 = vector.broadcast %cst_80 : f32 to vector<16x1xf32>
    %107 = arith.divf %105, %106 : vector<16x1xf32>
    %108 = vector.broadcast %107 : vector<16x1xf32> to vector<16x64xf32>
    %109 = arith.subf %99, %108 : vector<16x64xf32>
    %110 = arith.mulf %109, %109 : vector<16x64xf32>
    %cst_81 = arith.constant dense<0.000000e+00> : vector<16xf32>
    %111 = vector.multi_reduction <add>, %110, %cst_81 [1] : vector<16x64xf32> to vector<16xf32>
    %112 = vector.shape_cast %111 : vector<16xf32> to vector<16x1xf32>
    %cst_82 = arith.constant 6.400000e+01 : f32
    %113 = vector.broadcast %cst_82 : f32 to vector<16x1xf32>
    %114 = arith.divf %112, %113 : vector<16x1xf32>
    %115 = vector.broadcast %107 : vector<16x1xf32> to vector<16x64xf32>
    %116 = arith.subf %99, %115 : vector<16x64xf32>
    %cst_83 = arith.constant 9.99999974E-6 : f32
    %117 = vector.broadcast %cst_83 : f32 to vector<16x1xf32>
    %118 = arith.addf %114, %117 : vector<16x1xf32>
    %119 = math.rsqrt %118 : vector<16x1xf32>
    %120 = vector.broadcast %119 : vector<16x1xf32> to vector<16x64xf32>
    %121 = arith.mulf %116, %120 : vector<16x64xf32>
    %122 = vector.broadcast %101 : vector<1x64xf32> to vector<16x64xf32>
    %123 = arith.mulf %121, %122 : vector<16x64xf32>
    %124 = vector.broadcast %103 : vector<1x64xf32> to vector<16x64xf32>
    %125 = arith.addf %123, %124 : vector<16x64xf32>
    %c1 = arith.constant 1 : index
    %c0_84 = arith.constant 0 : index
    %c0_85 = arith.constant 0 : index
    %126 = vector.load %arg10[%c1, %c0_84, %c0_85] : memref<3x64x64xf32, #tpu.memory_space<vmem>>, vector<1x64x64xf32>
    %127 = vector.shape_cast %126 : vector<1x64x64xf32> to vector<64x64xf32>
    %cst_86 = arith.constant dense<0.000000e+00> : vector<16x64xf32>
    %128 = tpu.matmul %125, %127, %cst_86 {dimension_numbers = #tpu.dot_dimension_numbers<[1], [0], [0], [1], [0, 0, 1, 1], [], []>} : vector<16x64xf32>, vector<64x64xf32>, vector<16x64xf32> -> vector<16x64xf32>
    %c1_87 = arith.constant 1 : index
    %c0_88 = arith.constant 0 : index
    %c0_89 = arith.constant 0 : index
    %129 = vector.load %arg13[%c1_87, %c0_88, %c0_89] : memref<3x1x64xf32, #tpu.memory_space<vmem>>, vector<1x1x64xf32>
    %130 = vector.shape_cast %129 : vector<1x1x64xf32> to vector<1x64xf32>
    %131 = vector.broadcast %130 : vector<1x64xf32> to vector<16x64xf32>
    %132 = arith.addf %128, %131 : vector<16x64xf32>
    %c1_90 = arith.constant 1 : index
    %c0_91 = arith.constant 0 : index
    %c0_92 = arith.constant 0 : index
    %133 = vector.load %arg11[%c1_90, %c0_91, %c0_92] : memref<3x64x64xf32, #tpu.memory_space<vmem>>, vector<1x64x64xf32>
    %134 = vector.shape_cast %133 : vector<1x64x64xf32> to vector<64x64xf32>
    %cst_93 = arith.constant dense<0.000000e+00> : vector<16x64xf32>
    %135 = tpu.matmul %125, %134, %cst_93 {dimension_numbers = #tpu.dot_dimension_numbers<[1], [0], [0], [1], [0, 0, 1, 1], [], []>} : vector<16x64xf32>, vector<64x64xf32>, vector<16x64xf32> -> vector<16x64xf32>
    %c1_94 = arith.constant 1 : index
    %c0_95 = arith.constant 0 : index
    %c0_96 = arith.constant 0 : index
    %136 = vector.load %arg14[%c1_94, %c0_95, %c0_96] : memref<3x1x64xf32, #tpu.memory_space<vmem>>, vector<1x1x64xf32>
    %137 = vector.shape_cast %136 : vector<1x1x64xf32> to vector<1x64xf32>
    %138 = vector.broadcast %137 : vector<1x64xf32> to vector<16x64xf32>
    %139 = arith.addf %135, %138 : vector<16x64xf32>
    %c1_97 = arith.constant 1 : index
    %c0_98 = arith.constant 0 : index
    %c0_99 = arith.constant 0 : index
    %140 = vector.load %arg12[%c1_97, %c0_98, %c0_99] : memref<3x64x64xf32, #tpu.memory_space<vmem>>, vector<1x64x64xf32>
    %141 = vector.shape_cast %140 : vector<1x64x64xf32> to vector<64x64xf32>
    %cst_100 = arith.constant dense<0.000000e+00> : vector<16x64xf32>
    %142 = tpu.matmul %125, %141, %cst_100 {dimension_numbers = #tpu.dot_dimension_numbers<[1], [0], [0], [1], [0, 0, 1, 1], [], []>} : vector<16x64xf32>, vector<64x64xf32>, vector<16x64xf32> -> vector<16x64xf32>
    %c1_101 = arith.constant 1 : index
    %c0_102 = arith.constant 0 : index
    %c0_103 = arith.constant 0 : index
    %143 = vector.load %arg15[%c1_101, %c0_102, %c0_103] : memref<3x1x64xf32, #tpu.memory_space<vmem>>, vector<1x1x64xf32>
    %144 = vector.shape_cast %143 : vector<1x1x64xf32> to vector<1x64xf32>
    %145 = vector.broadcast %144 : vector<1x64xf32> to vector<16x64xf32>
    %146 = arith.addf %142, %145 : vector<16x64xf32>
    %cst_104 = arith.constant dense<0.000000e+00> : vector<128x64xf32>
    %147 = tpu.matmul %7, %139, %cst_104 {dimension_numbers = #tpu.dot_dimension_numbers<[1], [0], [0], [1], [0, 0, 1, 1], [], []>} : vector<128x16xf32>, vector<16x64xf32>, vector<128x64xf32> -> vector<128x64xf32>
    %148 = arith.mulf %147, %8 : vector<128x64xf32>
    %cst_105 = arith.constant dense<0.000000e+00> : vector<128x64xf32>
    %149 = tpu.matmul %7, %146, %cst_105 {dimension_numbers = #tpu.dot_dimension_numbers<[1], [0], [0], [1], [0, 0, 1, 1], [], []>} : vector<128x16xf32>, vector<16x64xf32>, vector<128x64xf32> -> vector<128x64xf32>
    %150 = arith.mulf %149, %8 : vector<128x64xf32>
    %cst_106 = arith.constant dense<0.000000e+00> : vector<16x128xf32>
    %151 = tpu.matmul %132, %148, %cst_106 {dimension_numbers = #tpu.dot_dimension_numbers<[1], [1], [0], [0], [0, 0, 1, 0], [], []>} : vector<16x64xf32>, vector<128x64xf32>, vector<16x128xf32> -> vector<16x128xf32>
    %cst_107 = arith.constant dense<0xFF800000> : vector<16xf32>
    %152 = vector.multi_reduction <maximumf>, %151, %cst_107 [1] : vector<16x128xf32> to vector<16xf32>
    %153 = vector.shape_cast %152 : vector<16xf32> to vector<16x1xf32>
    %154 = vector.broadcast %153 : vector<16x1xf32> to vector<16x128xf32>
    %155 = arith.subf %151, %154 : vector<16x128xf32>
    %156 = math.exp %155 : vector<16x128xf32>
    %157 = arith.mulf %156, %10 : vector<16x128xf32>
    %cst_108 = arith.constant dense<0.000000e+00> : vector<16x128xf32>
    %158 = tpu.matmul %157, %9, %cst_108 {dimension_numbers = #tpu.dot_dimension_numbers<[1], [0], [0], [1], [0, 0, 1, 1], [], []>} : vector<16x128xf32>, vector<128x128xf32>, vector<16x128xf32> -> vector<16x128xf32>
    %159 = arith.addf %158, %12 : vector<16x128xf32>
    %160 = arith.divf %157, %159 : vector<16x128xf32>
    %cst_109 = arith.constant dense<0.000000e+00> : vector<16x64xf32>
    %161 = tpu.matmul %160, %150, %cst_109 {dimension_numbers = #tpu.dot_dimension_numbers<[1], [0], [0], [1], [0, 0, 1, 1], [], []>} : vector<16x128xf32>, vector<128x64xf32>, vector<16x64xf32> -> vector<16x64xf32>
    %c1_110 = arith.constant 1 : index
    %c0_111 = arith.constant 0 : index
    %c0_112 = arith.constant 0 : index
    %162 = vector.load %arg16[%c1_110, %c0_111, %c0_112] : memref<3x64x64xf32, #tpu.memory_space<vmem>>, vector<1x64x64xf32>
    %163 = vector.shape_cast %162 : vector<1x64x64xf32> to vector<64x64xf32>
    %cst_113 = arith.constant dense<0.000000e+00> : vector<16x64xf32>
    %164 = tpu.matmul %161, %163, %cst_113 {dimension_numbers = #tpu.dot_dimension_numbers<[1], [0], [0], [1], [0, 0, 1, 1], [], []>} : vector<16x64xf32>, vector<64x64xf32>, vector<16x64xf32> -> vector<16x64xf32>
    %c1_114 = arith.constant 1 : index
    %c0_115 = arith.constant 0 : index
    %c0_116 = arith.constant 0 : index
    %165 = vector.load %arg17[%c1_114, %c0_115, %c0_116] : memref<3x1x64xf32, #tpu.memory_space<vmem>>, vector<1x1x64xf32>
    %166 = vector.shape_cast %165 : vector<1x1x64xf32> to vector<1x64xf32>
    %167 = vector.broadcast %166 : vector<1x64xf32> to vector<16x64xf32>
    %168 = arith.addf %164, %167 : vector<16x64xf32>
    %169 = arith.addf %125, %168 : vector<16x64xf32>
    %c1_117 = arith.constant 1 : index
    %c0_118 = arith.constant 0 : index
    %c0_119 = arith.constant 0 : index
    %170 = vector.load %arg18[%c1_117, %c0_118, %c0_119] : memref<3x1x64xf32, #tpu.memory_space<vmem>>, vector<1x1x64xf32>
    %171 = vector.shape_cast %170 : vector<1x1x64xf32> to vector<1x64xf32>
    %c1_120 = arith.constant 1 : index
    %c0_121 = arith.constant 0 : index
    %c0_122 = arith.constant 0 : index
    %172 = vector.load %arg19[%c1_120, %c0_121, %c0_122] : memref<3x1x64xf32, #tpu.memory_space<vmem>>, vector<1x1x64xf32>
    %173 = vector.shape_cast %172 : vector<1x1x64xf32> to vector<1x64xf32>
    %cst_123 = arith.constant dense<0.000000e+00> : vector<16xf32>
    %174 = vector.multi_reduction <add>, %169, %cst_123 [1] : vector<16x64xf32> to vector<16xf32>
    %175 = vector.shape_cast %174 : vector<16xf32> to vector<16x1xf32>
    %cst_124 = arith.constant 6.400000e+01 : f32
    %176 = vector.broadcast %cst_124 : f32 to vector<16x1xf32>
    %177 = arith.divf %175, %176 : vector<16x1xf32>
    %178 = vector.broadcast %177 : vector<16x1xf32> to vector<16x64xf32>
    %179 = arith.subf %169, %178 : vector<16x64xf32>
    %180 = arith.mulf %179, %179 : vector<16x64xf32>
    %cst_125 = arith.constant dense<0.000000e+00> : vector<16xf32>
    %181 = vector.multi_reduction <add>, %180, %cst_125 [1] : vector<16x64xf32> to vector<16xf32>
    %182 = vector.shape_cast %181 : vector<16xf32> to vector<16x1xf32>
    %cst_126 = arith.constant 6.400000e+01 : f32
    %183 = vector.broadcast %cst_126 : f32 to vector<16x1xf32>
    %184 = arith.divf %182, %183 : vector<16x1xf32>
    %185 = vector.broadcast %177 : vector<16x1xf32> to vector<16x64xf32>
    %186 = arith.subf %169, %185 : vector<16x64xf32>
    %cst_127 = arith.constant 9.99999974E-6 : f32
    %187 = vector.broadcast %cst_127 : f32 to vector<16x1xf32>
    %188 = arith.addf %184, %187 : vector<16x1xf32>
    %189 = math.rsqrt %188 : vector<16x1xf32>
    %190 = vector.broadcast %189 : vector<16x1xf32> to vector<16x64xf32>
    %191 = arith.mulf %186, %190 : vector<16x64xf32>
    %192 = vector.broadcast %171 : vector<1x64xf32> to vector<16x64xf32>
    %193 = arith.mulf %191, %192 : vector<16x64xf32>
    %194 = vector.broadcast %173 : vector<1x64xf32> to vector<16x64xf32>
    %195 = arith.addf %193, %194 : vector<16x64xf32>
    %c1_128 = arith.constant 1 : index
    %c0_129 = arith.constant 0 : index
    %c0_130 = arith.constant 0 : index
    %196 = vector.load %arg20[%c1_128, %c0_129, %c0_130] : memref<3x64x256xf32, #tpu.memory_space<vmem>>, vector<1x64x256xf32>
    %197 = vector.shape_cast %196 : vector<1x64x256xf32> to vector<64x256xf32>
    %cst_131 = arith.constant dense<0.000000e+00> : vector<16x256xf32>
    %198 = tpu.matmul %195, %197, %cst_131 {dimension_numbers = #tpu.dot_dimension_numbers<[1], [0], [0], [1], [0, 0, 1, 1], [], []>} : vector<16x64xf32>, vector<64x256xf32>, vector<16x256xf32> -> vector<16x256xf32>
    %c1_132 = arith.constant 1 : index
    %c0_133 = arith.constant 0 : index
    %c0_134 = arith.constant 0 : index
    %199 = vector.load %arg21[%c1_132, %c0_133, %c0_134] : memref<3x1x256xf32, #tpu.memory_space<vmem>>, vector<1x1x256xf32>
    %200 = vector.shape_cast %199 : vector<1x1x256xf32> to vector<1x256xf32>
    %201 = vector.broadcast %200 : vector<1x256xf32> to vector<16x256xf32>
    %202 = arith.addf %198, %201 : vector<16x256xf32>
    %cst_135 = arith.constant 0.000000e+00 : f32
    %203 = vector.broadcast %cst_135 : f32 to vector<16x256xf32>
    %204 = arith.maximumf %202, %203 : vector<16x256xf32>
    %c1_136 = arith.constant 1 : index
    %c0_137 = arith.constant 0 : index
    %c0_138 = arith.constant 0 : index
    %205 = vector.load %arg22[%c1_136, %c0_137, %c0_138] : memref<3x256x64xf32, #tpu.memory_space<vmem>>, vector<1x256x64xf32>
    %206 = vector.shape_cast %205 : vector<1x256x64xf32> to vector<256x64xf32>
    %cst_139 = arith.constant dense<0.000000e+00> : vector<16x64xf32>
    %207 = tpu.matmul %204, %206, %cst_139 {dimension_numbers = #tpu.dot_dimension_numbers<[1], [0], [0], [1], [0, 0, 1, 1], [], []>} : vector<16x256xf32>, vector<256x64xf32>, vector<16x64xf32> -> vector<16x64xf32>
    %c1_140 = arith.constant 1 : index
    %c0_141 = arith.constant 0 : index
    %c0_142 = arith.constant 0 : index
    %208 = vector.load %arg23[%c1_140, %c0_141, %c0_142] : memref<3x1x64xf32, #tpu.memory_space<vmem>>, vector<1x1x64xf32>
    %209 = vector.shape_cast %208 : vector<1x1x64xf32> to vector<1x64xf32>
    %210 = vector.broadcast %209 : vector<1x64xf32> to vector<16x64xf32>
    %211 = arith.addf %207, %210 : vector<16x64xf32>
    %212 = arith.addf %195, %211 : vector<16x64xf32>
    %c1_143 = arith.constant 1 : index
    %c0_144 = arith.constant 0 : index
    %c0_145 = arith.constant 0 : index
    %213 = vector.load %arg24[%c1_143, %c0_144, %c0_145] : memref<3x1x64xf32, #tpu.memory_space<vmem>>, vector<1x1x64xf32>
    %214 = vector.shape_cast %213 : vector<1x1x64xf32> to vector<1x64xf32>
    %c1_146 = arith.constant 1 : index
    %c0_147 = arith.constant 0 : index
    %c0_148 = arith.constant 0 : index
    %215 = vector.load %arg25[%c1_146, %c0_147, %c0_148] : memref<3x1x64xf32, #tpu.memory_space<vmem>>, vector<1x1x64xf32>
    %216 = vector.shape_cast %215 : vector<1x1x64xf32> to vector<1x64xf32>
    %cst_149 = arith.constant dense<0.000000e+00> : vector<16xf32>
    %217 = vector.multi_reduction <add>, %212, %cst_149 [1] : vector<16x64xf32> to vector<16xf32>
    %218 = vector.shape_cast %217 : vector<16xf32> to vector<16x1xf32>
    %cst_150 = arith.constant 6.400000e+01 : f32
    %219 = vector.broadcast %cst_150 : f32 to vector<16x1xf32>
    %220 = arith.divf %218, %219 : vector<16x1xf32>
    %221 = vector.broadcast %220 : vector<16x1xf32> to vector<16x64xf32>
    %222 = arith.subf %212, %221 : vector<16x64xf32>
    %223 = arith.mulf %222, %222 : vector<16x64xf32>
    %cst_151 = arith.constant dense<0.000000e+00> : vector<16xf32>
    %224 = vector.multi_reduction <add>, %223, %cst_151 [1] : vector<16x64xf32> to vector<16xf32>
    %225 = vector.shape_cast %224 : vector<16xf32> to vector<16x1xf32>
    %cst_152 = arith.constant 6.400000e+01 : f32
    %226 = vector.broadcast %cst_152 : f32 to vector<16x1xf32>
    %227 = arith.divf %225, %226 : vector<16x1xf32>
    %228 = vector.broadcast %220 : vector<16x1xf32> to vector<16x64xf32>
    %229 = arith.subf %212, %228 : vector<16x64xf32>
    %cst_153 = arith.constant 9.99999974E-6 : f32
    %230 = vector.broadcast %cst_153 : f32 to vector<16x1xf32>
    %231 = arith.addf %227, %230 : vector<16x1xf32>
    %232 = math.rsqrt %231 : vector<16x1xf32>
    %233 = vector.broadcast %232 : vector<16x1xf32> to vector<16x64xf32>
    %234 = arith.mulf %229, %233 : vector<16x64xf32>
    %235 = vector.broadcast %214 : vector<1x64xf32> to vector<16x64xf32>
    %236 = arith.mulf %234, %235 : vector<16x64xf32>
    %237 = vector.broadcast %216 : vector<1x64xf32> to vector<16x64xf32>
    %238 = arith.addf %236, %237 : vector<16x64xf32>
    %c2 = arith.constant 2 : index
    %c0_154 = arith.constant 0 : index
    %c0_155 = arith.constant 0 : index
    %239 = vector.load %arg10[%c2, %c0_154, %c0_155] : memref<3x64x64xf32, #tpu.memory_space<vmem>>, vector<1x64x64xf32>
    %240 = vector.shape_cast %239 : vector<1x64x64xf32> to vector<64x64xf32>
    %cst_156 = arith.constant dense<0.000000e+00> : vector<16x64xf32>
    %241 = tpu.matmul %238, %240, %cst_156 {dimension_numbers = #tpu.dot_dimension_numbers<[1], [0], [0], [1], [0, 0, 1, 1], [], []>} : vector<16x64xf32>, vector<64x64xf32>, vector<16x64xf32> -> vector<16x64xf32>
    %c2_157 = arith.constant 2 : index
    %c0_158 = arith.constant 0 : index
    %c0_159 = arith.constant 0 : index
    %242 = vector.load %arg13[%c2_157, %c0_158, %c0_159] : memref<3x1x64xf32, #tpu.memory_space<vmem>>, vector<1x1x64xf32>
    %243 = vector.shape_cast %242 : vector<1x1x64xf32> to vector<1x64xf32>
    %244 = vector.broadcast %243 : vector<1x64xf32> to vector<16x64xf32>
    %245 = arith.addf %241, %244 : vector<16x64xf32>
    %c2_160 = arith.constant 2 : index
    %c0_161 = arith.constant 0 : index
    %c0_162 = arith.constant 0 : index
    %246 = vector.load %arg11[%c2_160, %c0_161, %c0_162] : memref<3x64x64xf32, #tpu.memory_space<vmem>>, vector<1x64x64xf32>
    %247 = vector.shape_cast %246 : vector<1x64x64xf32> to vector<64x64xf32>
    %cst_163 = arith.constant dense<0.000000e+00> : vector<16x64xf32>
    %248 = tpu.matmul %238, %247, %cst_163 {dimension_numbers = #tpu.dot_dimension_numbers<[1], [0], [0], [1], [0, 0, 1, 1], [], []>} : vector<16x64xf32>, vector<64x64xf32>, vector<16x64xf32> -> vector<16x64xf32>
    %c2_164 = arith.constant 2 : index
    %c0_165 = arith.constant 0 : index
    %c0_166 = arith.constant 0 : index
    %249 = vector.load %arg14[%c2_164, %c0_165, %c0_166] : memref<3x1x64xf32, #tpu.memory_space<vmem>>, vector<1x1x64xf32>
    %250 = vector.shape_cast %249 : vector<1x1x64xf32> to vector<1x64xf32>
    %251 = vector.broadcast %250 : vector<1x64xf32> to vector<16x64xf32>
    %252 = arith.addf %248, %251 : vector<16x64xf32>
    %c2_167 = arith.constant 2 : index
    %c0_168 = arith.constant 0 : index
    %c0_169 = arith.constant 0 : index
    %253 = vector.load %arg12[%c2_167, %c0_168, %c0_169] : memref<3x64x64xf32, #tpu.memory_space<vmem>>, vector<1x64x64xf32>
    %254 = vector.shape_cast %253 : vector<1x64x64xf32> to vector<64x64xf32>
    %cst_170 = arith.constant dense<0.000000e+00> : vector<16x64xf32>
    %255 = tpu.matmul %238, %254, %cst_170 {dimension_numbers = #tpu.dot_dimension_numbers<[1], [0], [0], [1], [0, 0, 1, 1], [], []>} : vector<16x64xf32>, vector<64x64xf32>, vector<16x64xf32> -> vector<16x64xf32>
    %c2_171 = arith.constant 2 : index
    %c0_172 = arith.constant 0 : index
    %c0_173 = arith.constant 0 : index
    %256 = vector.load %arg15[%c2_171, %c0_172, %c0_173] : memref<3x1x64xf32, #tpu.memory_space<vmem>>, vector<1x1x64xf32>
    %257 = vector.shape_cast %256 : vector<1x1x64xf32> to vector<1x64xf32>
    %258 = vector.broadcast %257 : vector<1x64xf32> to vector<16x64xf32>
    %259 = arith.addf %255, %258 : vector<16x64xf32>
    %cst_174 = arith.constant dense<0.000000e+00> : vector<128x64xf32>
    %260 = tpu.matmul %7, %252, %cst_174 {dimension_numbers = #tpu.dot_dimension_numbers<[1], [0], [0], [1], [0, 0, 1, 1], [], []>} : vector<128x16xf32>, vector<16x64xf32>, vector<128x64xf32> -> vector<128x64xf32>
    %261 = arith.mulf %260, %8 : vector<128x64xf32>
    %cst_175 = arith.constant dense<0.000000e+00> : vector<128x64xf32>
    %262 = tpu.matmul %7, %259, %cst_175 {dimension_numbers = #tpu.dot_dimension_numbers<[1], [0], [0], [1], [0, 0, 1, 1], [], []>} : vector<128x16xf32>, vector<16x64xf32>, vector<128x64xf32> -> vector<128x64xf32>
    %263 = arith.mulf %262, %8 : vector<128x64xf32>
    %cst_176 = arith.constant dense<0.000000e+00> : vector<16x128xf32>
    %264 = tpu.matmul %245, %261, %cst_176 {dimension_numbers = #tpu.dot_dimension_numbers<[1], [1], [0], [0], [0, 0, 1, 0], [], []>} : vector<16x64xf32>, vector<128x64xf32>, vector<16x128xf32> -> vector<16x128xf32>
    %cst_177 = arith.constant dense<0xFF800000> : vector<16xf32>
    %265 = vector.multi_reduction <maximumf>, %264, %cst_177 [1] : vector<16x128xf32> to vector<16xf32>
    %266 = vector.shape_cast %265 : vector<16xf32> to vector<16x1xf32>
    %267 = vector.broadcast %266 : vector<16x1xf32> to vector<16x128xf32>
    %268 = arith.subf %264, %267 : vector<16x128xf32>
    %269 = math.exp %268 : vector<16x128xf32>
    %270 = arith.mulf %269, %10 : vector<16x128xf32>
    %cst_178 = arith.constant dense<0.000000e+00> : vector<16x128xf32>
    %271 = tpu.matmul %270, %9, %cst_178 {dimension_numbers = #tpu.dot_dimension_numbers<[1], [0], [0], [1], [0, 0, 1, 1], [], []>} : vector<16x128xf32>, vector<128x128xf32>, vector<16x128xf32> -> vector<16x128xf32>
    %272 = arith.addf %271, %12 : vector<16x128xf32>
    %273 = arith.divf %270, %272 : vector<16x128xf32>
    %cst_179 = arith.constant dense<0.000000e+00> : vector<16x64xf32>
    %274 = tpu.matmul %273, %263, %cst_179 {dimension_numbers = #tpu.dot_dimension_numbers<[1], [0], [0], [1], [0, 0, 1, 1], [], []>} : vector<16x128xf32>, vector<128x64xf32>, vector<16x64xf32> -> vector<16x64xf32>
    %c2_180 = arith.constant 2 : index
    %c0_181 = arith.constant 0 : index
    %c0_182 = arith.constant 0 : index
    %275 = vector.load %arg16[%c2_180, %c0_181, %c0_182] : memref<3x64x64xf32, #tpu.memory_space<vmem>>, vector<1x64x64xf32>
    %276 = vector.shape_cast %275 : vector<1x64x64xf32> to vector<64x64xf32>
    %cst_183 = arith.constant dense<0.000000e+00> : vector<16x64xf32>
    %277 = tpu.matmul %274, %276, %cst_183 {dimension_numbers = #tpu.dot_dimension_numbers<[1], [0], [0], [1], [0, 0, 1, 1], [], []>} : vector<16x64xf32>, vector<64x64xf32>, vector<16x64xf32> -> vector<16x64xf32>
    %c2_184 = arith.constant 2 : index
    %c0_185 = arith.constant 0 : index
    %c0_186 = arith.constant 0 : index
    %278 = vector.load %arg17[%c2_184, %c0_185, %c0_186] : memref<3x1x64xf32, #tpu.memory_space<vmem>>, vector<1x1x64xf32>
    %279 = vector.shape_cast %278 : vector<1x1x64xf32> to vector<1x64xf32>
    %280 = vector.broadcast %279 : vector<1x64xf32> to vector<16x64xf32>
    %281 = arith.addf %277, %280 : vector<16x64xf32>
    %282 = arith.addf %238, %281 : vector<16x64xf32>
    %c2_187 = arith.constant 2 : index
    %c0_188 = arith.constant 0 : index
    %c0_189 = arith.constant 0 : index
    %283 = vector.load %arg18[%c2_187, %c0_188, %c0_189] : memref<3x1x64xf32, #tpu.memory_space<vmem>>, vector<1x1x64xf32>
    %284 = vector.shape_cast %283 : vector<1x1x64xf32> to vector<1x64xf32>
    %c2_190 = arith.constant 2 : index
    %c0_191 = arith.constant 0 : index
    %c0_192 = arith.constant 0 : index
    %285 = vector.load %arg19[%c2_190, %c0_191, %c0_192] : memref<3x1x64xf32, #tpu.memory_space<vmem>>, vector<1x1x64xf32>
    %286 = vector.shape_cast %285 : vector<1x1x64xf32> to vector<1x64xf32>
    %cst_193 = arith.constant dense<0.000000e+00> : vector<16xf32>
    %287 = vector.multi_reduction <add>, %282, %cst_193 [1] : vector<16x64xf32> to vector<16xf32>
    %288 = vector.shape_cast %287 : vector<16xf32> to vector<16x1xf32>
    %cst_194 = arith.constant 6.400000e+01 : f32
    %289 = vector.broadcast %cst_194 : f32 to vector<16x1xf32>
    %290 = arith.divf %288, %289 : vector<16x1xf32>
    %291 = vector.broadcast %290 : vector<16x1xf32> to vector<16x64xf32>
    %292 = arith.subf %282, %291 : vector<16x64xf32>
    %293 = arith.mulf %292, %292 : vector<16x64xf32>
    %cst_195 = arith.constant dense<0.000000e+00> : vector<16xf32>
    %294 = vector.multi_reduction <add>, %293, %cst_195 [1] : vector<16x64xf32> to vector<16xf32>
    %295 = vector.shape_cast %294 : vector<16xf32> to vector<16x1xf32>
    %cst_196 = arith.constant 6.400000e+01 : f32
    %296 = vector.broadcast %cst_196 : f32 to vector<16x1xf32>
    %297 = arith.divf %295, %296 : vector<16x1xf32>
    %298 = vector.broadcast %290 : vector<16x1xf32> to vector<16x64xf32>
    %299 = arith.subf %282, %298 : vector<16x64xf32>
    %cst_197 = arith.constant 9.99999974E-6 : f32
    %300 = vector.broadcast %cst_197 : f32 to vector<16x1xf32>
    %301 = arith.addf %297, %300 : vector<16x1xf32>
    %302 = math.rsqrt %301 : vector<16x1xf32>
    %303 = vector.broadcast %302 : vector<16x1xf32> to vector<16x64xf32>
    %304 = arith.mulf %299, %303 : vector<16x64xf32>
    %305 = vector.broadcast %284 : vector<1x64xf32> to vector<16x64xf32>
    %306 = arith.mulf %304, %305 : vector<16x64xf32>
    %307 = vector.broadcast %286 : vector<1x64xf32> to vector<16x64xf32>
    %308 = arith.addf %306, %307 : vector<16x64xf32>
    %c2_198 = arith.constant 2 : index
    %c0_199 = arith.constant 0 : index
    %c0_200 = arith.constant 0 : index
    %309 = vector.load %arg20[%c2_198, %c0_199, %c0_200] : memref<3x64x256xf32, #tpu.memory_space<vmem>>, vector<1x64x256xf32>
    %310 = vector.shape_cast %309 : vector<1x64x256xf32> to vector<64x256xf32>
    %cst_201 = arith.constant dense<0.000000e+00> : vector<16x256xf32>
    %311 = tpu.matmul %308, %310, %cst_201 {dimension_numbers = #tpu.dot_dimension_numbers<[1], [0], [0], [1], [0, 0, 1, 1], [], []>} : vector<16x64xf32>, vector<64x256xf32>, vector<16x256xf32> -> vector<16x256xf32>
    %c2_202 = arith.constant 2 : index
    %c0_203 = arith.constant 0 : index
    %c0_204 = arith.constant 0 : index
    %312 = vector.load %arg21[%c2_202, %c0_203, %c0_204] : memref<3x1x256xf32, #tpu.memory_space<vmem>>, vector<1x1x256xf32>
    %313 = vector.shape_cast %312 : vector<1x1x256xf32> to vector<1x256xf32>
    %314 = vector.broadcast %313 : vector<1x256xf32> to vector<16x256xf32>
    %315 = arith.addf %311, %314 : vector<16x256xf32>
    %cst_205 = arith.constant 0.000000e+00 : f32
    %316 = vector.broadcast %cst_205 : f32 to vector<16x256xf32>
    %317 = arith.maximumf %315, %316 : vector<16x256xf32>
    %c2_206 = arith.constant 2 : index
    %c0_207 = arith.constant 0 : index
    %c0_208 = arith.constant 0 : index
    %318 = vector.load %arg22[%c2_206, %c0_207, %c0_208] : memref<3x256x64xf32, #tpu.memory_space<vmem>>, vector<1x256x64xf32>
    %319 = vector.shape_cast %318 : vector<1x256x64xf32> to vector<256x64xf32>
    %cst_209 = arith.constant dense<0.000000e+00> : vector<16x64xf32>
    %320 = tpu.matmul %317, %319, %cst_209 {dimension_numbers = #tpu.dot_dimension_numbers<[1], [0], [0], [1], [0, 0, 1, 1], [], []>} : vector<16x256xf32>, vector<256x64xf32>, vector<16x64xf32> -> vector<16x64xf32>
    %c2_210 = arith.constant 2 : index
    %c0_211 = arith.constant 0 : index
    %c0_212 = arith.constant 0 : index
    %321 = vector.load %arg23[%c2_210, %c0_211, %c0_212] : memref<3x1x64xf32, #tpu.memory_space<vmem>>, vector<1x1x64xf32>
    %322 = vector.shape_cast %321 : vector<1x1x64xf32> to vector<1x64xf32>
    %323 = vector.broadcast %322 : vector<1x64xf32> to vector<16x64xf32>
    %324 = arith.addf %320, %323 : vector<16x64xf32>
    %325 = arith.addf %308, %324 : vector<16x64xf32>
    %c2_213 = arith.constant 2 : index
    %c0_214 = arith.constant 0 : index
    %c0_215 = arith.constant 0 : index
    %326 = vector.load %arg24[%c2_213, %c0_214, %c0_215] : memref<3x1x64xf32, #tpu.memory_space<vmem>>, vector<1x1x64xf32>
    %327 = vector.shape_cast %326 : vector<1x1x64xf32> to vector<1x64xf32>
    %c2_216 = arith.constant 2 : index
    %c0_217 = arith.constant 0 : index
    %c0_218 = arith.constant 0 : index
    %328 = vector.load %arg25[%c2_216, %c0_217, %c0_218] : memref<3x1x64xf32, #tpu.memory_space<vmem>>, vector<1x1x64xf32>
    %329 = vector.shape_cast %328 : vector<1x1x64xf32> to vector<1x64xf32>
    %cst_219 = arith.constant dense<0.000000e+00> : vector<16xf32>
    %330 = vector.multi_reduction <add>, %325, %cst_219 [1] : vector<16x64xf32> to vector<16xf32>
    %331 = vector.shape_cast %330 : vector<16xf32> to vector<16x1xf32>
    %cst_220 = arith.constant 6.400000e+01 : f32
    %332 = vector.broadcast %cst_220 : f32 to vector<16x1xf32>
    %333 = arith.divf %331, %332 : vector<16x1xf32>
    %334 = vector.broadcast %333 : vector<16x1xf32> to vector<16x64xf32>
    %335 = arith.subf %325, %334 : vector<16x64xf32>
    %336 = arith.mulf %335, %335 : vector<16x64xf32>
    %cst_221 = arith.constant dense<0.000000e+00> : vector<16xf32>
    %337 = vector.multi_reduction <add>, %336, %cst_221 [1] : vector<16x64xf32> to vector<16xf32>
    %338 = vector.shape_cast %337 : vector<16xf32> to vector<16x1xf32>
    %cst_222 = arith.constant 6.400000e+01 : f32
    %339 = vector.broadcast %cst_222 : f32 to vector<16x1xf32>
    %340 = arith.divf %338, %339 : vector<16x1xf32>
    %341 = vector.broadcast %333 : vector<16x1xf32> to vector<16x64xf32>
    %342 = arith.subf %325, %341 : vector<16x64xf32>
    %cst_223 = arith.constant 9.99999974E-6 : f32
    %343 = vector.broadcast %cst_223 : f32 to vector<16x1xf32>
    %344 = arith.addf %340, %343 : vector<16x1xf32>
    %345 = math.rsqrt %344 : vector<16x1xf32>
    %346 = vector.broadcast %345 : vector<16x1xf32> to vector<16x64xf32>
    %347 = arith.mulf %342, %346 : vector<16x64xf32>
    %348 = vector.broadcast %327 : vector<1x64xf32> to vector<16x64xf32>
    %349 = arith.mulf %347, %348 : vector<16x64xf32>
    %350 = vector.broadcast %329 : vector<1x64xf32> to vector<16x64xf32>
    %351 = arith.addf %349, %350 : vector<16x64xf32>
    %c0_224 = arith.constant 0 : index
    %c0_225 = arith.constant 0 : index
    %352 = vector.load %arg9[%c0_224, %c0_225] : memref<2x16xf32, #tpu.memory_space<vmem>>, vector<2x16xf32>
    %cst_226 = arith.constant dense<0.000000e+00> : vector<2x64xf32>
    %353 = tpu.matmul %352, %351, %cst_226 {dimension_numbers = #tpu.dot_dimension_numbers<[1], [0], [0], [1], [0, 0, 1, 1], [], []>} : vector<2x16xf32>, vector<16x64xf32>, vector<2x64xf32> -> vector<2x64xf32>
    %c0_227 = arith.constant 0 : index
    %c0_228 = arith.constant 0 : index
    %354 = vector.load %arg1[%c0_227, %c0_228] : memref<2x4xf32, #tpu.memory_space<vmem>>, vector<2x4xf32>
    %c0_229 = arith.constant 0 : index
    %c0_230 = arith.constant 0 : index
    %355 = vector.load %arg26[%c0_229, %c0_230] : memref<4x8xf32, #tpu.memory_space<vmem>>, vector<4x8xf32>
    %cst_231 = arith.constant dense<0.000000e+00> : vector<2x8xf32>
    %356 = tpu.matmul %354, %355, %cst_231 {dimension_numbers = #tpu.dot_dimension_numbers<[1], [0], [0], [1], [0, 0, 1, 1], [], []>} : vector<2x4xf32>, vector<4x8xf32>, vector<2x8xf32> -> vector<2x8xf32>
    %c0_232 = arith.constant 0 : index
    %c0_233 = arith.constant 0 : index
    %357 = vector.load %arg27[%c0_232, %c0_233] : memref<1x8xf32, #tpu.memory_space<vmem>>, vector<1x8xf32>
    %358 = vector.broadcast %357 : vector<1x8xf32> to vector<2x8xf32>
    %359 = arith.addf %356, %358 : vector<2x8xf32>
    %c0_234 = arith.constant 0 : index
    %c0_235 = arith.constant 0 : index
    %360 = vector.load %arg28[%c0_234, %c0_235] : memref<8x128xf32, #tpu.memory_space<vmem>>, vector<8x128xf32>
    %cst_236 = arith.constant dense<0.000000e+00> : vector<2x128xf32>
    %361 = tpu.matmul %359, %360, %cst_236 {dimension_numbers = #tpu.dot_dimension_numbers<[1], [0], [0], [1], [0, 0, 1, 1], [], []>} : vector<2x8xf32>, vector<8x128xf32>, vector<2x128xf32> -> vector<2x128xf32>
    %c0_237 = arith.constant 0 : index
    %c0_238 = arith.constant 0 : index
    %362 = vector.load %arg2[%c0_237, %c0_238] : memref<2x24xf32, #tpu.memory_space<vmem>>, vector<2x24xf32>
    %c0_239 = arith.constant 0 : index
    %c0_240 = arith.constant 0 : index
    %363 = vector.load %arg29[%c0_239, %c0_240] : memref<24x128xf32, #tpu.memory_space<vmem>>, vector<24x128xf32>
    %cst_241 = arith.constant dense<0.000000e+00> : vector<2x128xf32>
    %364 = tpu.matmul %362, %363, %cst_241 {dimension_numbers = #tpu.dot_dimension_numbers<[1], [0], [0], [1], [0, 0, 1, 1], [], []>} : vector<2x24xf32>, vector<24x128xf32>, vector<2x128xf32> -> vector<2x128xf32>
    %365 = arith.addf %361, %364 : vector<2x128xf32>
    %c0_242 = arith.constant 0 : index
    %c0_243 = arith.constant 0 : index
    %366 = vector.load %arg30[%c0_242, %c0_243] : memref<64x128xf32, #tpu.memory_space<vmem>>, vector<64x128xf32>
    %cst_244 = arith.constant dense<0.000000e+00> : vector<2x128xf32>
    %367 = tpu.matmul %353, %366, %cst_244 {dimension_numbers = #tpu.dot_dimension_numbers<[1], [0], [0], [1], [0, 0, 1, 1], [], []>} : vector<2x64xf32>, vector<64x128xf32>, vector<2x128xf32> -> vector<2x128xf32>
    %368 = arith.addf %365, %367 : vector<2x128xf32>
    %c0_245 = arith.constant 0 : index
    %c0_246 = arith.constant 0 : index
    %369 = vector.load %arg31[%c0_245, %c0_246] : memref<1x128xf32, #tpu.memory_space<vmem>>, vector<1x128xf32>
    %370 = vector.broadcast %369 : vector<1x128xf32> to vector<2x128xf32>
    %371 = arith.addf %368, %370 : vector<2x128xf32>
    %cst_247 = arith.constant 0.000000e+00 : f32
    %372 = vector.broadcast %cst_247 : f32 to vector<2x128xf32>
    %373 = arith.maximumf %371, %372 : vector<2x128xf32>
    %c0_248 = arith.constant 0 : index
    %c0_249 = arith.constant 0 : index
    %374 = vector.load %arg32[%c0_248, %c0_249] : memref<1x128xf32, #tpu.memory_space<vmem>>, vector<1x128xf32>
    %375 = vector.broadcast %374 : vector<1x128xf32> to vector<2x128xf32>
    %376 = arith.mulf %373, %375 : vector<2x128xf32>
    %cst_250 = arith.constant dense<0.000000e+00> : vector<2xf32>
    %377 = vector.multi_reduction <add>, %376, %cst_250 [1] : vector<2x128xf32> to vector<2xf32>
    %378 = vector.shape_cast %377 : vector<2xf32> to vector<2x1xf32>
    %c0_251 = arith.constant 0 : index
    %c0_252 = arith.constant 0 : index
    %379 = vector.load %arg33[%c0_251, %c0_252] : memref<1x1xf32, #tpu.memory_space<vmem>>, vector<1x1xf32>
    %380 = vector.broadcast %379 : vector<1x1xf32> to vector<2x1xf32>
    %381 = arith.addf %378, %380 : vector<2x1xf32>
    %c0_253 = arith.constant 0 : index
    %c0_254 = arith.constant 0 : index
    %382 = vector.load %arg34[%c0_253, %c0_254] : memref<2x1xf32, #tpu.memory_space<vmem>>, vector<2x1xf32>
    tpu.vector_store %arg34[%c0_253, %c0_254], %381 {strides = array<i32>} : memref<2x1xf32, #tpu.memory_space<vmem>>, vector<2x1xf32>,
    return
  }
}

</mosaic_0001>

<bundles_post_ra>
// kernel: forward.1
= control target key start
LH: loop header
LB: loop body
LE: loop exit
PB: predicated region body
PF: predicated region fallthrough
CT: control target
= control target key end

     0   :  { %s4184_s6 = smov 1   ;;  %s4185_s10 = smov 2   ;;  %s5525_s0 = inlined_call_operand.smem [shape: u32[35], index: -1, kind: input, shape index: {}] }
   0x1   :  { %s4254_s5 = sld [smem:[%s5525_s0]]   ;;  %s4186_s14 = smov 3  }
   0x2   :  { %s4259_s9 = sld [smem:[%s5525_s0 + %s4184_s6]]   ;;  %s4187_s18 = smov 4  }
   0x3   :  { %s4264_s13 = sld [smem:[%s5525_s0 + %s4185_s10]]   ;;  %s4188_s22 = smov 5  }
   0x4   :  { %s4269_s17 = sld [smem:[%s5525_s0 + %s4186_s14]]   ;;  %s4189_s26 = smov 6  }
   0x5   :  { %s4274_s21 = sld [smem:[%s5525_s0 + %s4187_s18]]   ;;  %s4190_s30 = smov 7  }
   0x6   :  { %s4279_s25 = sld [smem:[%s5525_s0 + %s4188_s22]]   ;;  %s4191_s4 = smov 8  }
   0x7   :  { %5541 = sst [smem:[#allocation45_spill]] %s4254_s5  ;;  %s4192_s10 = smov 9  }
   0x8   :  { %5542 = sst [smem:[#allocation46_spill]] %s4259_s9  ;;  %s4193_s15 = smov 10  }
   0x9   :  { %5543 = sst [smem:[#allocation47_spill]] %s4264_s13  ;;  %s4194_s20 = smov 11  }
   0xa   :  { %s4284_s29 = sld [smem:[%s5525_s0 + %s4189_s26]]   ;;  %s4195_s26 = smov 12  }
   0xb   :  { %s4289_s3 = sld [smem:[%s5525_s0 + %s4190_s30]]   ;;  %s4196_s1 = smov 13  }
   0xc   :  { %5544 = sst [smem:[#allocation48_spill]] %s4279_s25  ;;  %s4197_s7 = smov 14  }
   0xd   :  { %s4294_s8 = sld [smem:[%s5525_s0 + %s4191_s4]]   ;;  %s4199_s22 = smov 16  }
   0xe   :  { %s4299_s14 = sld [smem:[%s5525_s0 + %s4192_s10]]   ;;  %s4200_s28 = smov 17  }
   0xf   :  { %s4304_s19 = sld [smem:[%s5525_s0 + %s4193_s15]]   ;;  %s4198_s15 = smov 15  }
  0x10   :  { %5545 = sst [smem:[#allocation49_spill]] %s4284_s29  ;;  %s4217_s10 = smov 34  }
  0x11   :  { %5546 = sst [smem:[#allocation50_spill]] %s4289_s3 }
  0x12   :  { %s4309_s24 = sld [smem:[%s5525_s0 + %s4194_s20]]  }
  0x13   :  { %s4314_s30 = sld [smem:[%s5525_s0 + %s4195_s26]]  }
  0x14   :  { %s4319_s6 = sld [smem:[%s5525_s0 + %s4196_s1]]  }
  0x15   :  { %5547 = sst [smem:[#allocation51_spill]] %s4304_s19 }
  0x16   :  { %s4324_s12 = sld [smem:[%s5525_s0 + %s4197_s7]]   ;;  %s4201_s7 = smov 18  }
  0x17   :  { %s4329_s20 = sld [smem:[%s5525_s0 + %s4198_s15]]   ;;  %s4202_s15 = smov 19  }
  0x18   :  { %5548 = sst [smem:[#allocation52_spill]] %s4309_s24 }
  0x19   :  { %5549 = sst [smem:[#allocation53_spill]] %s4314_s30 }
  0x1a   :  { %5550 = sst [smem:[#allocation54_spill]] %s4319_s6 }
  0x1b   :  { %s4334_s27 = sld [smem:[%s5525_s0 + %s4199_s22]]   ;;  %s4203_s22 = smov 20  }
  0x1c   :  { %s4339_s4 = sld [smem:[%s5525_s0 + %s4200_s28]]   ;;  %s4204_s28 = smov 21  }
  0x1d   :  { %s4344_s13 = sld [smem:[%s5525_s0 + %s4201_s7]]   ;;  %s4205_s7 = smov 22  }
  0x1e   :  { %s4349_s9 = sld [smem:[%s5525_s0 + %s4202_s15]]   ;;  %s4206_s15 = smov 23  }
  0x1f   :  { %s4359_s3 = sld [smem:[%s5525_s0 + %s4204_s28]]   ;;  %s4208_s28 = smov 25  }
  0x20   :  { %s4364_s6 = sld [smem:[%s5525_s0 + %s4205_s7]]   ;;  %s4209_s7 = smov 26  }
  0x21   :  { %5551 = sst [smem:[#allocation55_spill]] %s4334_s27 }
  0x22   :  { %s4354_s27 = sld [smem:[%s5525_s0 + %s4203_s22]]   ;;  %s4207_s22 = smov 24  }
  0x23   :  { %s4369_s29 = sld [smem:[%s5525_s0 + %s4206_s15]]   ;;  %s4210_s15 = smov 27  }
  0x24   :  { %s4379_s25 = sld [smem:[%s5525_s0 + %s4208_s28]]   ;;  %s4212_s28 = smov 29  }
  0x25   :  { %s4389_s30 = sld [smem:[%s5525_s0 + %s4210_s15]]   ;;  %s4214_s15 = smov 31  }
  0x26   :  { %5553 = sst [smem:[#allocation57_spill]] %s4364_s6 }
  0x27   :  { %s4384_s6 = sld [smem:[%s5525_s0 + %s4209_s7]]   ;;  %s4213_s7 = smov 30  }
  0x28   :  { %5552 = sst [smem:[#allocation56_spill]] %s4354_s27 }
  0x29   :  { %5554 = sst [smem:[#allocation58_spill]] %s4369_s29 }
  0x2a   :  { %s4374_s27 = sld [smem:[%s5525_s0 + %s4207_s22]]   ;;  %s4211_s22 = smov 28  }
  0x2b   :  { %5555 = sst [smem:[#allocation59_spill]] %s4379_s25 }
  0x2c   :  { %5556 = sst [smem:[#allocation60_spill]] %s4389_s30 }
  0x2d   :  { %s4394_s24 = sld [smem:[%s5525_s0 + %s4211_s22]]   ;;  %s4215_s22 = smov 32  }
  0x2e   :  { %s4399_s19 = sld [smem:[%s5525_s0 + %s4212_s28]]   ;;  %s4216_s28 = smov 33  }
  0x2f   :  { %s4404_s5 = sld [smem:[%s5525_s0 + %s4213_s7]]  }
  0x30   :  { %s4409_s30 = sld [smem:[%s5525_s0 + %s4214_s15]]  }
  0x31   :  { %s4414_s25 = sld [smem:[%s5525_s0 + %s4215_s22]]  }
  0x32   :  { %s4422_s29 = sld [smem:[%s5525_s0 + %s4217_s10]]  }
  0x34   :  { %5557 = sst [smem:[#allocation61_spill]] %s4399_s19 }
  0x35   :  { %s3081_s19 = sld [smem:[%s5525_s0 + %s4216_s28]]  }
  0x3b   :  { %v74_v0 = vstv %s3081_s19 }
  0x3c   :  { %75 = vst [vmem:[#allocation2] sm:$0x1] %v74_v0 }
  0x3d   :  { %76 = vsyncpa [#allocation4], 0 }
  0x3e   :  { %77 = vsyncpa [#allocation6], 0 }
  0x3f   :  { %78 = vsyncpa [#allocation9], 0 }
  0x40   :  { %79 = vsyncpa [#allocation12], 0 }
  0x41   :  { %80 = vsyncpa [#allocation15], 0 }
  0x42   :  { %81 = vsyncpa [#allocation18], 0 }
  0x43   :  { %82 = vsyncpa [#allocation21], 0 }
  0x44   :  { %83 = vsyncpa [#allocation24], 0 }
  0x45   :  { %84 = vsyncpa [#allocation27], 0 }
  0x46   :  { %85 = vsyncpa [#allocation30], 0  ;;  %s108_s15 = sshll.u32 %s4274_s21, 4  ;;  %s109_s15 = int_to_ptr.hbm [resolvable:$true] %s108_s15 }
  0x47   :  { %86 = vsyncpa [#allocation33], 0  ;;  %s4218_s0 = smov [#allocation5]   ;;  %s141_s16 = sshll.u32 %s4299_s14, 4  ;;  %s142_s16 = int_to_ptr.hbm [resolvable:$true] %s141_s16 }
  0x48   :  { %s110_s19 = sshll.u32 %s4218_s0, 4  ;;  %s3682_s18 = sshra.s32 %s109_s15, 4  ;;  %s111_s19 = int_to_ptr.vmem [resolvable:$true] %s110_s19  ;;  %s3683_s18 = int_to_ptr.hbm [resolvable:$true] %s3682_s18 }
  0x49   :  { %s3684_s22 = scalar_lea.hbm %s3683_s18, 16  ;;  %s3686_s23 = scalar_lea.hbm %s4274_s21, 16 }
  0x4a   :  { %p3685_p0 = scmp.ne.s32.totalorder %s3683_s18, %s3684_s22  ;;  %p3687_p1 = scmp.lt.s32.totalorder %s3683_s18, %s4274_s21 }
  0x4b   :  { %p3688_p2 = scmp.lt.s32.totalorder %s3686_s23, %s3684_s22 }
  0x4d   :  { %p3689_p3 = por %p3688_p2, %p3687_p1 }
  0x4f   :  { %p3690_p4 = pnand %p3689_p3, %p3685_p0 }
  0x51   :  { %3693 = shalt.err (!%p3690_p4)
}
  0x52   :  { %s4219_s26 = smov 128   ;;  %s4220_s28 = smov 8  }
  0x53   :  { %116 = dma.hbm_to_vmem [thread:$0]  %s109_s15, 256, %s111_s19, [#allocation6], %s4219_s26, %s4219_s26, %s4220_s28  }
  0x54   :  { %s4221_s1 = smov [#allocation8]   ;;  %s3706_s10 = sshra.s32 %s142_s16, 4  ;;  %s3707_s10 = int_to_ptr.hbm [resolvable:$true] %s3706_s10 }
  0x55   :  { %s143_s2 = sshll.u32 %s4221_s1, 4  ;;  %s3708_s7 = scalar_lea.hbm %s3707_s10, 2  ;;  %s144_s2 = int_to_ptr.vmem [resolvable:$true] %s143_s2 }
  0x56   :  { %p3709_p5 = scmp.ne.s32.totalorder %s3707_s10, %s3708_s7  ;;  %s3710_s21 = scalar_lea.hbm %s4299_s14, 2 }
  0x57   :  { %p3711_p6 = scmp.lt.s32.totalorder %s3707_s10, %s4299_s14  ;;  %p3712_p7 = scmp.lt.s32.totalorder %s3710_s21, %s3708_s7 }
  0x59   :  { %p3713_p8 = por %p3712_p7, %p3711_p6 }
  0x5b   :  { %p3714_p9 = pnand %p3713_p8, %p3709_p5 }
  0x5d   :  { %3717 = shalt.err (!%p3714_p9)
}
  0x5e   :  { %146 = dma.hbm_to_vmem [thread:$0]  %s142_s16, 32, %s144_s2, [#allocation9]  }
  0x5f   :  { %s172_s11 = sshll.u32 %s4329_s20, 4  ;;  %s4222_s15 = smov [#allocation11]   ;;  %s173_s11 = int_to_ptr.hbm [resolvable:$true] %s172_s11 }
  0x60   :  { %s174_s0 = sshll.u32 %s4222_s15, 4  ;;  %s200_s19 = sshll.u32 %s4344_s13, 4  ;;  %s175_s0 = int_to_ptr.vmem [resolvable:$true] %s174_s0  ;;  %s201_s19 = int_to_ptr.hbm [resolvable:$true] %s200_s19 }
  0x61   :  { %s3730_s18 = sshra.s32 %s173_s11, 4  ;;  %s3734_s14 = scalar_lea.hbm %s4329_s20, 3  ;;  %s3731_s18 = int_to_ptr.hbm [resolvable:$true] %s3730_s18 }
  0x62   :  { %s3732_s22 = scalar_lea.hbm %s3731_s18, 3  ;;  %p3735_p11 = scmp.lt.s32.totalorder %s3731_s18, %s4329_s20 }
  0x63   :  { %p3733_p10 = scmp.ne.s32.totalorder %s3731_s18, %s3732_s22  ;;  %p3736_p12 = scmp.lt.s32.totalorder %s3734_s14, %s3732_s22 }
  0x65   :  { %p3737_p13 = por %p3736_p12, %p3735_p11 }
  0x67   :  { %p3738_p0 = pnand %p3737_p13, %p3733_p10 }
  0x69   :  { %3741 = shalt.err (!%p3738_p0)
}
  0x6a   :  { %s4223_s16 = smov 16   ;;  %s4224_s23 = smov 1  }
  0x6b   :  { %180 = dma.hbm_to_vmem [thread:$0]  %s173_s11, 48, %s175_s0, [#allocation12], %s4223_s16, %s4223_s16, %s4224_s23  }
  0x6c   :  { %s4225_s1 = smov [#allocation14]   ;;  %s228_s10 = sshll.u32 %s4359_s3, 4  ;;  %s4441_s10 = int_to_ptr.hbm [resolvable:$true] %s228_s10 }
  0x6d   :  { %s202_s2 = sshll.u32 %s4225_s1, 4  ;;  %s3754_s20 = sshra.s32 %s201_s19, 4  ;;  %s203_s2 = int_to_ptr.vmem [resolvable:$true] %s202_s2  ;;  %s3755_s20 = int_to_ptr.hbm [resolvable:$true] %s3754_s20 }
  0x6e   :  { %s3756_s7 = scalar_lea.hbm %s3755_s20, 3  ;;  %s3758_s21 = scalar_lea.hbm %s4344_s13, 3 }
  0x6f   :  { %p3757_p1 = scmp.ne.s32.totalorder %s3755_s20, %s3756_s7  ;;  %p3759_p2 = scmp.lt.s32.totalorder %s3755_s20, %s4344_s13 }
  0x70   :  { %p3760_p3 = scmp.lt.s32.totalorder %s3758_s21, %s3756_s7 }
  0x72   :  { %p3761_p4 = por %p3760_p3, %p3759_p2 }
  0x74   :  { %p3762_p5 = pnand %p3761_p4, %p3757_p1 }
  0x76   :  { %3765 = shalt.err (!%p3762_p5)
}
  0x77   :  { %208 = dma.hbm_to_vmem [thread:$0]  %s201_s19, 48, %s203_s2, [#allocation15], %s4223_s16, %s4223_s16, %s4224_s23  }
  0x78   :  { %s4226_s11 = smov [#allocation17]   ;;  %s256_s0 = sshll.u32 %s4374_s27, 4  ;;  %s257_s0 = int_to_ptr.hbm [resolvable:$true] %s256_s0 }
  0x79   :  { %s230_s15 = sshll.u32 %s4226_s11, 4  ;;  %s3778_s18 = sshra.s32 %s4441_s10, 4  ;;  %s231_s15 = int_to_ptr.vmem [resolvable:$true] %s230_s15  ;;  %s3779_s18 = int_to_ptr.hbm [resolvable:$true] %s3778_s18 }
  0x7a   :  { %s3780_s22 = scalar_lea.hbm %s3779_s18, 6  ;;  %s3782_s13 = scalar_lea.hbm %s4359_s3, 6 }
  0x7b   :  { %p3781_p6 = scmp.ne.s32.totalorder %s3779_s18, %s3780_s22  ;;  %p3783_p7 = scmp.lt.s32.totalorder %s3779_s18, %s4359_s3 }
  0x7c   :  { %p3784_p8 = scmp.lt.s32.totalorder %s3782_s13, %s3780_s22 }
  0x7e   :  { %p3785_p9 = por %p3784_p8, %p3783_p7 }
  0x80   :  { %p3786_p10 = pnand %p3785_p9, %p3781_p6 }
  0x82   :  { %3789 = shalt.err (!%p3786_p10)
}
  0x83   :  { %s4227_s14 = smov 32   ;;  %s4228_s19 = smov 2  }
  0x84   :  { %236 = dma.hbm_to_vmem [thread:$0]  %s4441_s10, 96, %s231_s15, [#allocation18], %s4227_s14, %s4227_s14, %s4228_s19  }
  0x85   :  { %s4229_s1 = smov [#allocation20]   ;;  %s283_s20 = sshll.u32 %s4384_s6, 4  ;;  %s284_s20 = int_to_ptr.hbm [resolvable:$true] %s283_s20 }
  0x86   :  { %s258_s2 = sshll.u32 %s4229_s1, 4  ;;  %s3802_s7 = sshra.s32 %s257_s0, 4  ;;  %s259_s2 = int_to_ptr.vmem [resolvable:$true] %s258_s2  ;;  %s3803_s7 = int_to_ptr.hbm [resolvable:$true] %s3802_s7 }
  0x87   :  { %s3804_s3 = scalar_lea.hbm %s3803_s7, 3  ;;  %s3806_s21 = scalar_lea.hbm %s4374_s27, 3 }
  0x88   :  { %p3805_p11 = scmp.ne.s32.totalorder %s3803_s7, %s3804_s3  ;;  %p3807_p12 = scmp.lt.s32.totalorder %s3803_s7, %s4374_s27 }
  0x89   :  { %p3808_p13 = scmp.lt.s32.totalorder %s3806_s21, %s3804_s3 }
  0x8b   :  { %p3809_p0 = por %p3808_p13, %p3807_p12 }
  0x8d   :  { %p3810_p1 = pnand %p3809_p0, %p3805_p11 }
  0x8f   :  { %3813 = shalt.err (!%p3810_p1)
}
  0x90   :  { %264 = dma.hbm_to_vmem [thread:$0]  %s257_s0, 48, %s259_s2, [#allocation21], %s4223_s16, %s4223_s16, %s4224_s23  }
  0x91   :  { %s305_s10 = sshll.u32 %s4394_s24, 4  ;;  %s4230_s11 = smov [#allocation23]   ;;  %s306_s10 = int_to_ptr.hbm [resolvable:$true] %s305_s10 }
  0x92   :  { %s285_s15 = sshll.u32 %s4230_s11, 4  ;;  %s3826_s18 = sshra.s32 %s284_s20, 4  ;;  %s286_s15 = int_to_ptr.vmem [resolvable:$true] %s285_s15  ;;  %s3827_s18 = int_to_ptr.hbm [resolvable:$true] %s3826_s18 }
  0x93   :  { %s3828_s22 = scalar_lea.hbm %s3827_s18, 4  ;;  %s3830_s27 = scalar_lea.hbm %s4384_s6, 4 }
  0x94   :  { %p3829_p2 = scmp.ne.s32.totalorder %s3827_s18, %s3828_s22  ;;  %p3831_p3 = scmp.lt.s32.totalorder %s3827_s18, %s4384_s6 }
  0x95   :  { %p3832_p4 = scmp.lt.s32.totalorder %s3830_s27, %s3828_s22 }
  0x97   :  { %p3833_p5 = por %p3832_p4, %p3831_p3 }
  0x99   :  { %p3834_p6 = pnand %p3833_p5, %p3829_p2 }
  0x9b   :  { %3837 = shalt.err (!%p3834_p6)
}
  0x9c   :  { %288 = dma.hbm_to_vmem [thread:$0]  %s284_s20, 64, %s286_s15, [#allocation24]  }
  0x9d   :  { %s4231_s0 = smov [#allocation26]   ;;  %s328_s14 = sshll.u32 %s4404_s5, 4  ;;  %s4463_s14 = int_to_ptr.hbm [resolvable:$true] %s328_s14 }
  0x9e   :  { %s307_s13 = sshll.u32 %s4231_s0, 4  ;;  %s3850_s19 = sshra.s32 %s306_s10, 4  ;;  %s308_s13 = int_to_ptr.vmem [resolvable:$true] %s307_s13  ;;  %s3851_s19 = int_to_ptr.hbm [resolvable:$true] %s3850_s19 }
  0x9f   :  { %s3852_s1 = scalar_lea.hbm %s3851_s19, 8  ;;  %s3854_s2 = scalar_lea.hbm %s4394_s24, 8 }
  0xa0   :  { %p3853_p7 = scmp.ne.s32.totalorder %s3851_s19, %s3852_s1  ;;  %p3855_p8 = scmp.lt.s32.totalorder %s3851_s19, %s4394_s24 }
  0xa1   :  { %p3856_p9 = scmp.lt.s32.totalorder %s3854_s2, %s3852_s1 }
  0xa3   :  { %p3857_p10 = por %p3856_p9, %p3855_p8 }
  0xa5   :  { %p3858_p11 = pnand %p3857_p10, %p3853_p7 }
  0xa7   :  { %3861 = shalt.err (!%p3858_p11)
}
  0xa8   :  { %310 = dma.hbm_to_vmem [thread:$0]  %s306_s10, 128, %s308_s13, [#allocation27]  }
  0xa9   :  { %s98_s6 = sshll.u32 %s4269_s17, 4  ;;  %s4232_s20 = smov [#allocation29]   ;;  %s99_s6 = int_to_ptr.hbm [resolvable:$true] %s98_s6 }
  0xaa   :  { %s330_s7 = sshll.u32 %s4232_s20, 4  ;;  %s3874_s3 = sshra.s32 %s4463_s14, 4  ;;  %s331_s7 = int_to_ptr.vmem [resolvable:$true] %s330_s7  ;;  %s3875_s3 = int_to_ptr.hbm [resolvable:$true] %s3874_s3 }
  0xab   :  { %s3876_s21 = scalar_lea.hbm %s3875_s3, 64  ;;  %s3878_s11 = scalar_lea.hbm %s4404_s5, 64 }
  0xac   :  { %p3877_p12 = scmp.ne.s32.totalorder %s3875_s3, %s3876_s21  ;;  %p3879_p13 = scmp.lt.s32.totalorder %s3875_s3, %s4404_s5 }
  0xad   :  { %p3880_p0 = scmp.lt.s32.totalorder %s3878_s11, %s3876_s21 }
  0xaf   :  { %p3881_p1 = por %p3880_p0, %p3879_p13 }
  0xb1   :  { %p3882_p2 = pnand %p3881_p1, %p3877_p12 }
  0xb3   :  { %3885 = shalt.err (!%p3882_p2)
}
  0xb4   :  { %336 = dma.hbm_to_vmem [thread:$0]  %s4463_s14, 1024, %s331_s7, [#allocation30], %s4219_s26, %s4219_s26, %s4220_s28  }
  0xb5   :  { %s4233_s24 = smov [#allocation3]   ;;  %s127_s15 = sshll.u32 %s4294_s8, 4  ;;  %s4476_s15 = int_to_ptr.hbm [resolvable:$true] %s127_s15 }
  0xb6   :  { %s100_s10 = sshll.u32 %s4233_s24, 4  ;;  %s3898_s18 = sshra.s32 %s99_s6, 4  ;;  %s101_s10 = int_to_ptr.vmem [resolvable:$true] %s100_s10  ;;  %s3899_s18 = int_to_ptr.hbm [resolvable:$true] %s3898_s18 }
  0xb7   :  { %s3900_s5 = scalar_lea.hbm %s3899_s18, 1  ;;  %s3902_s22 = scalar_lea.hbm %s4269_s17, 1 }
  0xb8   :  { %p3901_p3 = scmp.ne.s32.totalorder %s3899_s18, %s3900_s5  ;;  %p3903_p4 = scmp.lt.s32.totalorder %s3899_s18, %s4269_s17 }
  0xb9   :  { %p3904_p5 = scmp.lt.s32.totalorder %s3902_s22, %s3900_s5 }
  0xbb   :  { %p3905_p6 = por %p3904_p5, %p3903_p4 }
  0xbd   :  { %p3906_p7 = pnand %p3905_p6, %p3901_p3 }
  0xbf   :  { %3909 = shalt.err (!%p3906_p7)
}
  0xc0   :  { %103 = dma.hbm_to_vmem [thread:$0]  %s99_s6, 16, %s101_s10, [#allocation4]  }
  0xc1   :  { %s159_s27 = sshll.u32 %s4324_s12, 4  ;;  %s4234_s0 = smov [#allocation7]   ;;  %s4481_s27 = int_to_ptr.hbm [resolvable:$true] %s159_s27 }
  0xc2   :  { %s129_s13 = sshll.u32 %s4234_s0, 4  ;;  %s3922_s14 = sshra.s32 %s4476_s15, 4  ;;  %s130_s13 = int_to_ptr.vmem [resolvable:$true] %s129_s13  ;;  %s3923_s14 = int_to_ptr.hbm [resolvable:$true] %s3922_s14 }
  0xc3   :  { %s3924_s19 = scalar_lea.hbm %s3923_s14, 16  ;;  %s3926_s17 = scalar_lea.hbm %s4294_s8, 16 }
  0xc4   :  { %p3925_p8 = scmp.ne.s32.totalorder %s3923_s14, %s3924_s19  ;;  %p3927_p9 = scmp.lt.s32.totalorder %s3923_s14, %s4294_s8 }
  0xc5   :  { %p3928_p10 = scmp.lt.s32.totalorder %s3926_s17, %s3924_s19 }
  0xc7   :  { %p3929_p11 = por %p3928_p10, %p3927_p9 }
  0xc9   :  { %p3930_p12 = pnand %p3929_p11, %p3925_p8 }
  0xcb   :  { %3933 = shalt.err (!%p3930_p12)
}
  0xcc   :  { %135 = dma.hbm_to_vmem [thread:$0]  %s4476_s15, 256, %s130_s13, [#allocation6], %s4219_s26, %s4219_s26, %s4220_s28  }
  0xcd   :  { %s4235_s1 = smov [#allocation10]   ;;  %s187_s6 = sshll.u32 %s4339_s4, 4  ;;  %s4491_s6 = int_to_ptr.hbm [resolvable:$true] %s187_s6 }
  0xce   :  { %s161_s2 = sshll.u32 %s4235_s1, 4  ;;  %s3946_s8 = sshra.s32 %s4481_s27, 4  ;;  %s162_s2 = int_to_ptr.vmem [resolvable:$true] %s161_s2  ;;  %s3947_s8 = int_to_ptr.hbm [resolvable:$true] %s3946_s8 }
  0xcf   :  { %s3948_s20 = scalar_lea.hbm %s3947_s8, 3  ;;  %s3950_s7 = scalar_lea.hbm %s4324_s12, 3 }
  0xd0   :  { %p3949_p13 = scmp.ne.s32.totalorder %s3947_s8, %s3948_s20  ;;  %p3951_p0 = scmp.lt.s32.totalorder %s3947_s8, %s4324_s12 }
  0xd1   :  { %p3952_p1 = scmp.lt.s32.totalorder %s3950_s7, %s3948_s20 }
  0xd3   :  { %p3953_p2 = por %p3952_p1, %p3951_p0 }
  0xd5   :  { %p3954_p3 = pnand %p3953_p2, %p3949_p13 }
  0xd7   :  { %3957 = shalt.err (!%p3954_p3)
}
  0xd8   :  { %167 = dma.hbm_to_vmem [thread:$0]  %s4481_s27, 48, %s162_s2, [#allocation9], %s4223_s16, %s4223_s16, %s4224_s23  }
  0xd9   :  { %s213_s3 = sshll.u32 %s4349_s9, 4  ;;  %s4236_s21 = smov [#allocation13]   ;;  %s4501_s3 = int_to_ptr.hbm [resolvable:$true] %s213_s3 }
  0xda   :  { %s189_s11 = sshll.u32 %s4236_s21, 4  ;;  %s3970_s12 = sshra.s32 %s4491_s6, 4  ;;  %s190_s11 = int_to_ptr.vmem [resolvable:$true] %s189_s11  ;;  %s3971_s12 = int_to_ptr.hbm [resolvable:$true] %s3970_s12 }
  0xdb   :  { %s3972_s24 = scalar_lea.hbm %s3971_s12, 3  ;;  %s3974_s10 = scalar_lea.hbm %s4339_s4, 3 }
  0xdc   :  { %p3973_p4 = scmp.ne.s32.totalorder %s3971_s12, %s3972_s24  ;;  %p3975_p5 = scmp.lt.s32.totalorder %s3971_s12, %s4339_s4 }
  0xdd   :  { %p3976_p6 = scmp.lt.s32.totalorder %s3974_s10, %s3972_s24 }
  0xdf   :  { %p3977_p7 = por %p3976_p6, %p3975_p5 }
  0xe1   :  { %p3978_p8 = pnand %p3977_p7, %p3973_p4 }
  0xe3   :  { %3981 = shalt.err (!%p3978_p8)
}
  0xe4   :  { %s5558_s15 = sld [smem:[#allocation58_spill]]  ;;  %s4237_s18 = smov [#allocation16]  }
  0xe5   :  { %195 = dma.hbm_to_vmem [thread:$0]  %s4491_s6, 48, %s190_s11, [#allocation12], %s4223_s16, %s4223_s16, %s4224_s23  }
  0xe6   :  { %s215_s5 = sshll.u32 %s4237_s18, 4  ;;  %s3994_s4 = sshra.s32 %s4501_s3, 4  ;;  %s216_s5 = int_to_ptr.vmem [resolvable:$true] %s215_s5  ;;  %s3995_s4 = int_to_ptr.hbm [resolvable:$true] %s3994_s4 }
  0xe7   :  { %s3996_s27 = scalar_lea.hbm %s3995_s4, 3  ;;  %s3998_s0 = scalar_lea.hbm %s4349_s9, 3 }
  0xe8   :  { %p3997_p9 = scmp.ne.s32.totalorder %s3995_s4, %s3996_s27  ;;  %p3999_p10 = scmp.lt.s32.totalorder %s3995_s4, %s4349_s9 }
  0xe9   :  { %p4000_p11 = scmp.lt.s32.totalorder %s3998_s0, %s3996_s27 }
  0xea   :  { %s243_s22 = sshll.u32 %s5558_s15, 4  ;;  %s4511_s22 = int_to_ptr.hbm [resolvable:$true] %s243_s22 }
  0xeb   :  { %p4001_p12 = por %p4000_p11, %p3999_p10 }
  0xed   :  { %p4002_p13 = pnand %p4001_p12, %p3997_p9 }
  0xef   :  { %4005 = shalt.err (!%p4002_p13)
}
  0xf0   :  { %s5559_s13 = sld [smem:[#allocation59_spill]]  ;;  %s4238_s19 = smov [#allocation19]  }
  0xf1   :  { %221 = dma.hbm_to_vmem [thread:$0]  %s4501_s3, 48, %s216_s5, [#allocation15], %s4223_s16, %s4223_s16, %s4224_s23  }
  0xf2   :  { %s245_s17 = sshll.u32 %s4238_s19, 4  ;;  %s4018_s9 = sshra.s32 %s4511_s22, 4  ;;  %s246_s17 = int_to_ptr.vmem [resolvable:$true] %s245_s17  ;;  %s4019_s9 = int_to_ptr.hbm [resolvable:$true] %s4018_s9 }
  0xf3   :  { %s4020_s1 = scalar_lea.hbm %s4019_s9, 3  ;;  %s4022_s2 = scalar_lea.hbm %s5558_s15, 3 }
  0xf4   :  { %p4021_p0 = scmp.ne.s32.totalorder %s4019_s9, %s4020_s1  ;;  %p4023_p1 = scmp.lt.s32.totalorder %s4019_s9, %s5558_s15 }
  0xf5   :  { %p4024_p2 = scmp.lt.s32.totalorder %s4022_s2, %s4020_s1 }
  0xf6   :  { %s269_s14 = sshll.u32 %s5559_s13, 4  ;;  %s4521_s14 = int_to_ptr.hbm [resolvable:$true] %s269_s14 }
  0xf7   :  { %p4025_p3 = por %p4024_p2, %p4023_p1 }
  0xf9   :  { %p4026_p4 = pnand %p4025_p3, %p4021_p0 }
  0xfb   :  { %4029 = shalt.err (!%p4026_p4)
}
  0xfc   :  { %s5560_s6 = sld [smem:[#allocation60_spill]]  ;;  %s4239_s8 = smov [#allocation22]  }
  0xfd   :  { %251 = dma.hbm_to_vmem [thread:$0]  %s4511_s22, 48, %s246_s17, [#allocation18], %s4223_s16, %s4223_s16, %s4224_s23  }
  0xfe   :  { %s271_s20 = sshll.u32 %s4239_s8, 4  ;;  %s4042_s3 = sshra.s32 %s4521_s14, 4  ;;  %s272_s20 = int_to_ptr.vmem [resolvable:$true] %s271_s20  ;;  %s4043_s3 = int_to_ptr.hbm [resolvable:$true] %s4042_s3 }
  0xff   :  { %s4044_s21 = scalar_lea.hbm %s4043_s3, 3  ;;  %s4046_s11 = scalar_lea.hbm %s5559_s13, 3 }
 0x100   :  { %p4045_p5 = scmp.ne.s32.totalorder %s4043_s3, %s4044_s21  ;;  %p4047_p6 = scmp.lt.s32.totalorder %s4043_s3, %s5559_s13 }
 0x101   :  { %p4048_p7 = scmp.lt.s32.totalorder %s4046_s11, %s4044_s21 }
 0x102   :  { %s294_s7 = sshll.u32 %s5560_s6, 4  ;;  %s295_s7 = int_to_ptr.hbm [resolvable:$true] %s294_s7 }
 0x103   :  { %p4049_p8 = por %p4048_p7, %p4047_p6 }
 0x105   :  { %p4050_p9 = pnand %p4049_p8, %p4045_p5 }
 0x107   :  { %4053 = shalt.err (!%p4050_p9)
}
 0x108   :  { %s5561_s12 = sld [smem:[#allocation61_spill]]  ;;  %s4240_s10 = smov [#allocation25]  }
 0x109   :  { %277 = dma.hbm_to_vmem [thread:$0]  %s4521_s14, 48, %s272_s20, [#allocation21], %s4223_s16, %s4223_s16, %s4224_s23  }
 0x10a   :  { %s296_s15 = sshll.u32 %s4240_s10, 4  ;;  %s4066_s18 = sshra.s32 %s295_s7, 4  ;;  %s297_s15 = int_to_ptr.vmem [resolvable:$true] %s296_s15  ;;  %s4067_s18 = int_to_ptr.hbm [resolvable:$true] %s4066_s18 }
 0x10b   :  { %s4068_s5 = scalar_lea.hbm %s4067_s18, 1  ;;  %s4070_s22 = scalar_lea.hbm %s5560_s6, 1 }
 0x10c   :  { %p4069_p10 = scmp.ne.s32.totalorder %s4067_s18, %s4068_s5  ;;  %p4071_p11 = scmp.lt.s32.totalorder %s4067_s18, %s5560_s6 }
 0x10d   :  { %p4072_p12 = scmp.lt.s32.totalorder %s4070_s22, %s4068_s5 }
 0x10e   :  { %s315_s24 = sshll.u32 %s5561_s12, 4  ;;  %s4539_s24 = int_to_ptr.hbm [resolvable:$true] %s315_s24 }
 0x10f   :  { %p4073_p13 = por %p4072_p12, %p4071_p11 }
 0x111   :  { %p4074_p0 = pnand %p4073_p13, %p4069_p10 }
 0x113   :  { %4077 = shalt.err (!%p4074_p0)
}
 0x114   :  { %299 = dma.hbm_to_vmem [thread:$0]  %s295_s7, 16, %s297_s15, [#allocation24]  }
 0x115   :  { %s4241_s16 = smov [#allocation28]   ;;  %s342_s4 = sshll.u32 %s4409_s30, 4  ;;  %s343_s4 = int_to_ptr.hbm [resolvable:$true] %s342_s4 }
 0x116   :  { %s317_s23 = sshll.u32 %s4241_s16, 4  ;;  %s4090_s27 = sshra.s32 %s4539_s24, 4  ;;  %s318_s23 = int_to_ptr.vmem [resolvable:$true] %s317_s23  ;;  %s4091_s27 = int_to_ptr.hbm [resolvable:$true] %s4090_s27 }
 0x117   :  { %s4092_s0 = scalar_lea.hbm %s4091_s27, 24  ;;  %s4094_s13 = scalar_lea.hbm %s5561_s12, 24 }
 0x118   :  { %p4093_p1 = scmp.ne.s32.totalorder %s4091_s27, %s4092_s0  ;;  %p4095_p2 = scmp.lt.s32.totalorder %s4091_s27, %s5561_s12 }
 0x119   :  { %p4096_p3 = scmp.lt.s32.totalorder %s4094_s13, %s4092_s0 }
 0x11b   :  { %p4097_p4 = por %p4096_p3, %p4095_p2 }
 0x11d   :  { %p4098_p5 = pnand %p4097_p4, %p4093_p1 }
 0x11f   :  { %4101 = shalt.err (!%p4098_p5)
}
 0x120   :  { %323 = dma.hbm_to_vmem [thread:$0]  %s4539_s24, 384, %s318_s23, [#allocation27], %s4219_s26, %s4219_s26, %s4220_s28  }
 0x121   :  { %s353_s14 = sshll.u32 %s4414_s25, 4  ;;  %s4242_s19 = smov [#allocation31]   ;;  %s354_s14 = int_to_ptr.hbm [resolvable:$true] %s353_s14 }
 0x122   :  { %s344_s17 = sshll.u32 %s4242_s19, 4  ;;  %s4114_s9 = sshra.s32 %s343_s4, 4  ;;  %s345_s17 = int_to_ptr.vmem [resolvable:$true] %s344_s17  ;;  %s4115_s9 = int_to_ptr.hbm [resolvable:$true] %s4114_s9 }
 0x123   :  { %s4116_s1 = scalar_lea.hbm %s4115_s9, 1  ;;  %s4118_s2 = scalar_lea.hbm %s4409_s30, 1 }
 0x124   :  { %p4117_p6 = scmp.ne.s32.totalorder %s4115_s9, %s4116_s1  ;;  %p4119_p7 = scmp.lt.s32.totalorder %s4115_s9, %s4409_s30 }
 0x125   :  { %p4120_p8 = scmp.lt.s32.totalorder %s4118_s2, %s4116_s1 }
 0x127   :  { %p4121_p9 = por %p4120_p8, %p4119_p7 }
 0x129   :  { %p4122_p10 = pnand %p4121_p9, %p4117_p6 }
 0x12b   :  { %4125 = shalt.err (!%p4122_p10)
}
 0x12c   :  { %347 = dma.hbm_to_vmem [thread:$0]  %s343_s4, 16, %s345_s17, [#allocation30]  }
 0x12d   :  { %s4243_s6 = smov [#allocation32]   ;;  %s4138_s28 = sshra.s32 %s354_s14, 4  ;;  %s4139_s28 = int_to_ptr.hbm [resolvable:$true] %s4138_s28 }
 0x12e   :  { %s355_s26 = sshll.u32 %s4243_s6, 4  ;;  %s4140_s8 = scalar_lea.hbm %s4139_s28, 1  ;;  %s356_s26 = int_to_ptr.vmem [resolvable:$true] %s355_s26 }
 0x12f   :  { %p4141_p11 = scmp.ne.s32.totalorder %s4139_s28, %s4140_s8  ;;  %s4142_s20 = scalar_lea.hbm %s4414_s25, 1 }
 0x130   :  { %p4143_p12 = scmp.lt.s32.totalorder %s4139_s28, %s4414_s25  ;;  %p4144_p13 = scmp.lt.s32.totalorder %s4142_s20, %s4140_s8 }
 0x132   :  { %p4145_p0 = por %p4144_p13, %p4143_p12 }
 0x134   :  { %p4146_p1 = pnand %p4145_p0, %p4141_p11 }
 0x136   :  { %4149 = shalt.err (!%p4146_p1)
}
 0x137   :  { %358 = dma.hbm_to_vmem [thread:$0]  %s354_s14, 16, %s356_s26, [#allocation33]  }
 0x138   :  { %4162 = dma.done.wait [#allocation4], 16  }
 0x139   :  { %4163 = vsyncadd [#allocation4], 4294967280 }
 0x13a   :  { %4164 = dma.done.wait [#allocation6], 512  }
 0x13b   :  { %4165 = vsyncadd [#allocation6], 4294966784 }
 0x13c   :  { %4166 = dma.done.wait [#allocation9], 80  }
 0x13d   :  { %4167 = vsyncadd [#allocation9], 4294967216 }
 0x13e   :  { %4168 = dma.done.wait [#allocation12], 96  }
 0x13f   :  { %4169 = vsyncadd [#allocation12], 4294967200 }
 0x140   :  { %4170 = dma.done.wait [#allocation15], 96  }
 0x141   :  { %4171 = vsyncadd [#allocation15], 4294967200 }
 0x142   :  { %4172 = dma.done.wait [#allocation18], 144  }
 0x143   :  { %4173 = vsyncadd [#allocation18], 4294967152 }
 0x144   :  { %4174 = dma.done.wait [#allocation21], 96  }
 0x145   :  { %4175 = vsyncadd [#allocation21], 4294967200 }
 0x146   :  { %4176 = dma.done.wait [#allocation24], 80  }
 0x147   :  { %4177 = vsyncadd [#allocation24], 4294967216 }
 0x148   :  { %4178 = dma.done.wait [#allocation27], 512  }
 0x149   :  { %4179 = vsyncadd [#allocation27], 4294966784 }
 0x14a   :  { %4180 = dma.done.wait [#allocation30], 1040  }
 0x14b   :  { %4181 = vsyncadd [#allocation30], 4294966256 }
 0x14c   :  { %4182 = dma.done.wait [#allocation33], 16  }
 0x14d   :  { %4183 = vsyncadd [#allocation33], 4294967280  ;;  %s5562_s25 = sld [smem:[#allocation45_spill]]  ;;  %v4244_v1 = vmov 0   ;;  %v3516_v28 = vld [vmem:[#allocation3] ss:$0 sm:$0xff] }
 0x14e   :  { %s5563_s30 = sld [smem:[#allocation51_spill]]  ;;  %3515 = vset.pattern.permute.xlu0 %v4244_v1  ;;  %v459_v29 = vld [vmem:[#allocation5] sm:$0xff]  ;;  %vm527_vm0 = vcmask 523264   ;;  %v460_v33 = vld [vmem:[#allocation5 + $0x8] sm:$0xff]  ;;  %vm627_vm1 = vcmask 130048  }
 0x14f   :  { %s5564_s7 = sld [smem:[#allocation52_spill]]  ;;  %v3518_v39 = vld [vmem:[#allocation10] ss:$0 sm:$0xff]  ;;  %v3519_v44 = vld [vmem:[#allocation11] ss:$0 sm:$0xff] }
 0x150   :  { %s5565_s3 = sld [smem:[#allocation53_spill]] }
 0x151   :  { %s5566_s21 = sld [smem:[#allocation48_spill]] }
 0x152   :  { %s5567_s11 = sld [smem:[#allocation49_spill]] }
 0x153   :  { %v441_v2 = vld [vmem:[%s5562_s25] sm:$0xff]  ;;  %v442_v12 = vld [vmem:[%s5562_s25 + $0x8] sm:$0xff]  ;;  %s5568_s12 = sld [smem:[#allocation54_spill]] }
 0x154   :  { %v522_v3 = vld [vmem:[%s5563_s30 + $0x38] sm:$0xff]  ;;  %446 = vperm.xlu0 %3515, %v441_v2   ;;  %v521_v6 = vld [vmem:[%s5563_s30 + $0x30] sm:$0xff]  ;;  %v520_v9 = vld [vmem:[%s5563_s30 + $0x28] sm:$0xff]  ;;  %s5569_s24 = sld [smem:[#allocation50_spill]] }
 0x155   :  { %542 = vmatpush.msra.mxu0 %v522_v3  ;;  %v564_v4 = vld [vmem:[%s5564_s7 + $0x38] sm:$0xff]  ;;  %v563_v7 = vld [vmem:[%s5564_s7 + $0x30] sm:$0xff]  ;;  %v562_v10 = vld [vmem:[%s5564_s7 + $0x28] sm:$0xff]  ;;  %s5570_s10 = sld [smem:[#allocation55_spill]] }
 0x156   :  { %v599_v5 = vld [vmem:[%s5565_s3 + $0x38] sm:$0xff]  ;;  %577 = vmatpush.msra.mxu1 %v564_v4  ;;  %v598_v8 = vld [vmem:[%s5565_s3 + $0x30] sm:$0xff]  ;;  %v597_v11 = vld [vmem:[%s5565_s3 + $0x28] sm:$0xff]  ;;  %s5571_s15 = sld [smem:[#allocation56_spill]] }
 0x157   :  { %612 = vmatpush.msra.mxu2 %v599_v5  ;;  %543 = vmatpush.msra.mxu0 %v521_v6  ;;  %v519_v13 = vld [vmem:[%s5563_s30 + $0x20] sm:$0xff]  ;;  %v518_v16 = vld [vmem:[%s5563_s30 + $0x18] sm:$0xff]  ;;  %v517_v19 = vld [vmem:[%s5563_s30 + $0x10] sm:$0xff]  ;;  %s5572_s18 = sld [smem:[#allocation57_spill]] }
 0x158   :  { %578 = vmatpush.msra.mxu1 %v563_v7  ;;  %v561_v14 = vld [vmem:[%s5564_s7 + $0x20] sm:$0xff]  ;;  %v560_v17 = vld [vmem:[%s5564_s7 + $0x18] sm:$0xff]  ;;  %v559_v20 = vld [vmem:[%s5564_s7 + $0x10] sm:$0xff]  ;;  %s5573_s5 = sld [smem:[#allocation46_spill]] }
 0x159   :  { %613 = vmatpush.msra.mxu2 %v598_v8  ;;  %544 = vmatpush.msra.mxu0 %v520_v9  ;;  %v596_v15 = vld [vmem:[%s5565_s3 + $0x20] sm:$0xff]  ;;  %v595_v18 = vld [vmem:[%s5565_s3 + $0x18] sm:$0xff]  ;;  %v594_v21 = vld [vmem:[%s5565_s3 + $0x10] sm:$0xff]  ;;  %s5574_s22 = sld [smem:[#allocation47_spill]] }
 0x15a   :  { %579 = vmatpush.msra.mxu1 %v562_v10  ;;  %v516_v22 = vld [vmem:[%s5563_s30 + $0x8] sm:$0xff]  ;;  %v515_v25 = vld [vmem:[%s5563_s30] sm:$0xff]  ;;  %v465_v49 = vld [vmem:[%s5566_s21 + $0x10] sm:$0xff] }
 0x15b   :  { %614 = vmatpush.msra.mxu2 %v597_v11  ;;  %545 = vmatpush.msra.mxu0 %v519_v13  ;;  %v558_v23 = vld [vmem:[%s5564_s7 + $0x8] sm:$0xff]  ;;  %v557_v26 = vld [vmem:[%s5564_s7] sm:$0xff]  ;;  %v466_v50 = vld [vmem:[%s5566_s21 + $0x18] sm:$0xff] }
 0x15c   :  { %580 = vmatpush.msra.mxu1 %v561_v14  ;;  %451 = vperm.xlu0 %3515, %v442_v12   ;;  %v593_v24 = vld [vmem:[%s5565_s3 + $0x8] sm:$0xff]  ;;  %v592_v27 = vld [vmem:[%s5565_s3] sm:$0xff]  ;;  %v469_v53 = vld [vmem:[%s5566_s21 + $0x30] sm:$0xff] }
 0x15d   :  { %615 = vmatpush.msra.mxu2 %v596_v15  ;;  %546 = vmatpush.msra.mxu0 %v518_v16  ;;  %v463_v43 = vld [vmem:[%s5566_s21] sm:$0xff]  ;;  %v464_v48 = vld [vmem:[%s5566_s21 + $0x8] sm:$0xff]  ;;  %v470_v54 = vld [vmem:[%s5566_s21 + $0x38] sm:$0xff] }
 0x15e   :  { %581 = vmatpush.msra.mxu1 %v560_v17  ;;  %v467_v51 = vld [vmem:[%s5566_s21 + $0x20] sm:$0xff]  ;;  %v468_v52 = vld [vmem:[%s5566_s21 + $0x28] sm:$0xff]  ;;  %v473_v57 = vld [vmem:[%s5566_s21 + $0x50] sm:$0xff] }
 0x15f   :  { %616 = vmatpush.msra.mxu2 %v595_v18  ;;  %547 = vmatpush.msra.mxu0 %v517_v19  ;;  %v471_v55 = vld [vmem:[%s5566_s21 + $0x40] sm:$0xff]  ;;  %v472_v56 = vld [vmem:[%s5566_s21 + $0x48] sm:$0xff]  ;;  %v474_v58 = vld [vmem:[%s5566_s21 + $0x58] sm:$0xff] }
 0x160   :  { %582 = vmatpush.msra.mxu1 %v559_v20  ;;  %v475_v59 = vld [vmem:[%s5566_s21 + $0x60] sm:$0xff]  ;;  %v476_v60 = vld [vmem:[%s5566_s21 + $0x68] sm:$0xff]  ;;  %v477_v61 = vld [vmem:[%s5566_s21 + $0x70] sm:$0xff] }
 0x161   :  { %617 = vmatpush.msra.mxu2 %v594_v21  ;;  %548 = vmatpush.msra.mxu0 %v516_v22  ;;  %v478_v62 = vld [vmem:[%s5566_s21 + $0x78] sm:$0xff]  ;;  %v4653_v17 = vld [vmem:[%s5567_s11 + $0x70] sm:$0xff]  ;;  %v4658_v19 = vld [vmem:[%s5567_s11 + $0x68] sm:$0xff] }
 0x162   :  { %583 = vmatpush.msra.mxu1 %v558_v23  ;;  %v4649_v14 = vld [vmem:[%s5567_s11 + $0x78] sm:$0xff]  ;;  %v4663_v21 = vld [vmem:[%s5567_s11 + $0x60] sm:$0xff] }
 0x163   :  { %618 = vmatpush.msra.mxu2 %v593_v24  ;;  %549 = vmatpush.msra.mxu0 %v515_v25  ;;  %v4668_v23 = vld [vmem:[%s5567_s11 + $0x58] sm:$0xff]  ;;  %v4673_v25 = vld [vmem:[%s5567_s11 + $0x50] sm:$0xff] }
 0x164   :  { %584 = vmatpush.msra.mxu1 %v557_v26 }
 0x165   :  { %619 = vmatpush.msra.mxu2 %v592_v27  ;;  %v4678_v27 = vld [vmem:[%s5567_s11 + $0x48] sm:$0xff] }
 0x1c6   :  { %v447_v30 = vpop.permute.xlu0 %446 }
 0x1c7   :  { %v457_v31 = vmul.f32 %v3516_v28, %v447_v30 }
 0x1c9   :  { %v4582_v32 = vadd.f32 %v459_v29, %v457_v31  ;;  %v4683_v29 = vld [vmem:[%s5567_s11 + $0x40] sm:$0xff]  ;;  %v4688_v31 = vld [vmem:[%s5567_s11 + $0x38] sm:$0xff] }
 0x1cb   :  { %3083 = vmatmul.msk.f32.vlgmr.msra.gmra.mxu0 %vm527_vm0, %v4582_v32  ;;  %3085 = vmatmul.msk.f32.vlgmr.msra.gmra.mxu1 %vm527_vm0, %v4582_v32 }
 0x1cc   :  { %3087 = vmatmul.msk.f32.vlgmr.msra.gmra.mxu2 %vm527_vm0, %v4582_v32 }
 0x1ce   :  { %v452_v34 = vpop.permute.xlu0 %451 }
 0x1cf   :  { %v458_v35 = vmul.f32 %v3516_v28, %v452_v34  ;;  %v4693_v34 = vld [vmem:[%s5567_s11 + $0x30] sm:$0xff] }
 0x1d1   :  { %v4590_v36 = vadd.f32 %v460_v33, %v458_v35 }
 0x1d3   :  { %3084 = vmatmul.msk.f32.gmra.mxu0 %vm527_vm0, %v4590_v36  ;;  %3086 = vmatmul.msk.f32.gmra.mxu1 %vm527_vm0, %v4590_v36 }
 0x1d4   :  { %3088 = vmatmul.msk.f32.gmra.mxu2 %vm527_vm0, %v4590_v36 }
 0x248   :  { %v586_v37 = vpop.f32.mrf.mxu1 }
 0x249   :  { %v587_v42 = vadd.f32 %v3518_v39, %v586_v37  ;;  %v4698_v37 = vld [vmem:[%s5567_s11 + $0x28] sm:$0xff] }
 0x24f   :  { %v621_v38 = vpop.f32.mrf.mxu2 }
 0x250   :  { %v589_v40 = vpop.f32.mrf.mxu1  ;;  %v622_v47 = vadd.f32 %v3519_v44, %v621_v38 }
 0x251   :  { %v590_v41 = vadd.f32 %v3518_v39, %v589_v40  ;;  %v4703_v39 = vld [vmem:[%s5567_s11 + $0x20] sm:$0xff] }
 0x253   :  { %690 = vmatpush.msra.mxu3 %v590_v41  ;;  %v4708_v41 = vld [vmem:[%s5567_s11 + $0x18] sm:$0xff] }
 0x255   :  { %691 = vmatpush.msra.mxu3 %v587_v42 }
 0x256   :  { %3089 = vmatmul.msk.f32.vlgmr.msra.gmra.mxu3 %vm627_vm1, %v463_v43 }
 0x257   :  { %v624_v45 = vpop.f32.mrf.mxu2 }
 0x258   :  { %v625_v46 = vadd.f32 %v3519_v44, %v624_v45  ;;  %v4718_v45 = vld [vmem:[%s5567_s11 + $0x8] sm:$0xff] }
 0x25a   :  { %771 = vmatpush.msrb.mxu0 %v625_v46 }
 0x25c   :  { %772 = vmatpush.msrb.mxu0 %v622_v47  ;;  %v4723_v47 = vld [vmem:[%s5567_s11] sm:$0xff] }
 0x25d   :  { %3105 = vmatmul.msk.f32.vlgmr.msrb.gmra.mxu0 %vm627_vm1, %v463_v43  ;;  %v4713_v43 = vld [vmem:[%s5567_s11 + $0x10] sm:$0xff] }
 0x25e   :  { %3090 = vmatmul.msk.f32.gmra.mxu3 %vm627_vm1, %v464_v48 }
 0x265   :  { %3106 = vmatmul.msk.f32.gmra.mxu0 %vm627_vm1, %v464_v48  ;;  %v551_v48 = vpop.f32.mrf.mxu0 }
 0x266   :  { %3091 = vmatmul.msk.f32.gmra.mxu3 %vm627_vm1, %v465_v49 }
 0x26d   :  { %3107 = vmatmul.msk.f32.gmra.mxu0 %vm627_vm1, %v465_v49  ;;  %v3517_v49 = vld [vmem:[%s5568_s12] ss:$0 sm:$0xff] }
 0x26e   :  { %3092 = vmatmul.msk.f32.gmra.mxu3 %vm627_vm1, %v466_v50 }
 0x275   :  { %3108 = vmatmul.msk.f32.gmra.mxu0 %vm627_vm1, %v466_v50 }
 0x276   :  { %3093 = vmatmul.msk.f32.gmra.mxu3 %vm627_vm1, %v467_v51 }
 0x27d   :  { %3109 = vmatmul.msk.f32.gmra.mxu0 %vm627_vm1, %v467_v51  ;;  %v552_v51 = vadd.f32 %v3517_v49, %v551_v48 }
 0x27e   :  { %3094 = vmatmul.msk.f32.gmra.mxu3 %vm627_vm1, %v468_v52 }
 0x285   :  { %3110 = vmatmul.msk.f32.gmra.mxu0 %vm627_vm1, %v468_v52  ;;  %v554_v52 = vpop.f32.mrf.mxu0 }
 0x286   :  { %3095 = vmatmul.msk.f32.gmra.mxu3 %vm627_vm1, %v469_v53 }
 0x28d   :  { %3111 = vmatmul.msk.f32.gmra.mxu0 %vm627_vm1, %v469_v53  ;;  %v555_v53 = vadd.f32 %v3517_v49, %v554_v52 }
 0x28e   :  { %3096 = vmatmul.msk.f32.gmra.mxu3 %vm627_vm1, %v470_v54 }
 0x295   :  { %3112 = vmatmul.msk.f32.gmra.mxu0 %vm627_vm1, %v470_v54 }
 0x296   :  { %3097 = vmatmul.msk.f32.gmra.mxu3 %vm627_vm1, %v471_v55 }
 0x29d   :  { %3113 = vmatmul.msk.f32.gmra.mxu0 %vm627_vm1, %v471_v55 }
 0x29e   :  { %3098 = vmatmul.msk.f32.gmra.mxu3 %vm627_vm1, %v472_v56 }
 0x2a5   :  { %3114 = vmatmul.msk.f32.gmra.mxu0 %vm627_vm1, %v472_v56 }
 0x2a6   :  { %3099 = vmatmul.msk.f32.gmra.mxu3 %vm627_vm1, %v473_v57 }
 0x2ad   :  { %3115 = vmatmul.msk.f32.gmra.mxu0 %vm627_vm1, %v473_v57 }
 0x2ae   :  { %3100 = vmatmul.msk.f32.gmra.mxu3 %vm627_vm1, %v474_v58 }
 0x2b5   :  { %3116 = vmatmul.msk.f32.gmra.mxu0 %vm627_vm1, %v474_v58 }
 0x2b6   :  { %3101 = vmatmul.msk.f32.gmra.mxu3 %vm627_vm1, %v475_v59 }
 0x2bd   :  { %3117 = vmatmul.msk.f32.gmra.mxu0 %vm627_vm1, %v475_v59 }
 0x2be   :  { %3102 = vmatmul.msk.f32.gmra.mxu3 %vm627_vm1, %v476_v60 }
 0x2c5   :  { %3118 = vmatmul.msk.f32.gmra.mxu0 %vm627_vm1, %v476_v60 }
 0x2c6   :  { %3103 = vmatmul.msk.f32.gmra.mxu3 %vm627_vm1, %v477_v61 }
 0x2cd   :  { %3119 = vmatmul.msk.f32.gmra.mxu0 %vm627_vm1, %v477_v61 }
 0x2ce   :  { %3104 = vmatmul.msk.f32.gmra.mxu3 %vm627_vm1, %v478_v62 }
 0x2d5   :  { %3120 = vmatmul.msk.f32.gmra.mxu0 %vm627_vm1, %v478_v62 }
 0x2d9   :  { %v4646_v63 = vpop.f32.mrf.mxu3 }
 0x2da   :  { %v741_v50 = vmul.f32 %v4646_v63, %v4723_v47  ;;  %v4732_v54 = vpop.f32.mrf.mxu0  ;;  %v4748_v63 = vld [vmem:[%s5569_s24 + $0x78] sm:$0xff] }
 0x2db   :  { %927 = vmatpush.msrb.mxu2 %v4748_v63 }
 0x2e1   :  { %v696_v0 = vpop.f32.mrf.mxu3 }
 0x2e2   :  { %v742_v46 = vmul.f32 %v696_v0, %v4718_v45  ;;  %v4734_v55 = vpop.f32.mrf.mxu0  ;;  %v4751_v0 = vld [vmem:[%s5569_s24 + $0x70] sm:$0xff] }
 0x2e3   :  { %928 = vmatpush.msrb.mxu2 %v4751_v0 }
 0x2e9   :  { %v699_v1 = vpop.f32.mrf.mxu3 }
 0x2ea   :  { %v743_v44 = vmul.f32 %v699_v1, %v4713_v43  ;;  %v4736_v56 = vpop.f32.mrf.mxu0 }
 0x2f1   :  { %v702_v2 = vpop.f32.mrf.mxu3 }
 0x2f2   :  { %v744_v42 = vmul.f32 %v702_v2, %v4708_v41  ;;  %v4738_v57 = vpop.f32.mrf.mxu0 }
 0x2f9   :  { %v705_v3 = vpop.f32.mrf.mxu3 }
 0x2fa   :  { %v745_v40 = vmul.f32 %v705_v3, %v4703_v39  ;;  %v4740_v58 = vpop.f32.mrf.mxu0  ;;  %v4759_v3 = vld [vmem:[%s5569_s24 + $0x68] sm:$0xff] }
 0x2fb   :  { %929 = vmatpush.msrb.mxu2 %v4759_v3 }
 0x301   :  { %v708_v4 = vpop.f32.mrf.mxu3 }
 0x302   :  { %v746_v38 = vmul.f32 %v708_v4, %v4698_v37  ;;  %v4742_v59 = vpop.f32.mrf.mxu0  ;;  %v4762_v4 = vld [vmem:[%s5569_s24 + $0x60] sm:$0xff] }
 0x303   :  { %930 = vmatpush.msrb.mxu2 %v4762_v4 }
 0x309   :  { %v711_v5 = vpop.f32.mrf.mxu3 }
 0x30a   :  { %v747_v35 = vmul.f32 %v711_v5, %v4693_v34  ;;  %v792_v60 = vpop.f32.mrf.mxu0  ;;  %v4766_v5 = vld [vmem:[%s5569_s24 + $0x58] sm:$0xff] }
 0x30b   :  { %931 = vmatpush.msrb.mxu2 %v4766_v5 }
 0x311   :  { %v714_v6 = vpop.f32.mrf.mxu3 }
 0x312   :  { %v748_v33 = vmul.f32 %v714_v6, %v4688_v31  ;;  %v795_v62 = vpop.f32.mrf.mxu0  ;;  %v4770_v6 = vld [vmem:[%s5569_s24 + $0x50] sm:$0xff] }
 0x313   :  { %932 = vmatpush.msrb.mxu2 %v4770_v6 }
 0x319   :  { %v717_v7 = vpop.f32.mrf.mxu3 }
 0x31a   :  { %v749_v30 = vmul.f32 %v717_v7, %v4683_v29  ;;  %v798_v2 = vpop.f32.mrf.mxu0 }
 0x31b   :  { %v830_v49 = vmul.f32 %v798_v2, %v4683_v29  ;;  %v822_v29 = vmul.f32 %v4732_v54, %v4723_v47  ;;  %v512_v47 = vld [vmem:[#allocation7 + $0x8] sm:$0xff] }
 0x321   :  { %v720_v8 = vpop.f32.mrf.mxu3 }
 0x322   :  { %v750_v28 = vmul.f32 %v720_v8, %v4678_v27  ;;  %v801_v7 = vpop.f32.mrf.mxu0  ;;  %v4775_v8 = vld [vmem:[%s5569_s24 + $0x48] sm:$0xff] }
 0x323   :  { %933 = vmatpush.msrb.mxu2 %v4775_v8  ;;  %v831_v48 = vmul.f32 %v801_v7, %v4678_v27  ;;  %v823_v27 = vmul.f32 %v4734_v55, %v4718_v45  ;;  %v1010_v55 = vld [vmem:[%s5570_s10 + $0x38] sm:$0xff]  ;;  %v1004_v7 = vld [vmem:[%s5570_s10 + $0x8] sm:$0xff] }
 0x329   :  { %v723_v9 = vpop.f32.mrf.mxu3 }
 0x32a   :  { %v751_v26 = vmul.f32 %v723_v9, %v4673_v25  ;;  %v4778_v9 = vld [vmem:[%s5569_s24 + $0x40] sm:$0xff] }
 0x32b   :  { %934 = vmatpush.msrb.mxu2 %v4778_v9 }
 0x331   :  { %v726_v10 = vpop.f32.mrf.mxu3 }
 0x332   :  { %v752_v24 = vmul.f32 %v726_v10, %v4668_v23  ;;  %v4782_v10 = vld [vmem:[%s5569_s24 + $0x38] sm:$0xff] }
 0x333   :  { %935 = vmatpush.msrb.mxu2 %v4782_v10 }
 0x339   :  { %v729_v11 = vpop.f32.mrf.mxu3 }
 0x33a   :  { %v753_v22 = vmul.f32 %v729_v11, %v4663_v21  ;;  %v4786_v11 = vld [vmem:[%s5569_s24 + $0x30] sm:$0xff] }
 0x33b   :  { %936 = vmatpush.msrb.mxu2 %v4786_v11 }
 0x341   :  { %v732_v12 = vpop.f32.mrf.mxu3 }
 0x342   :  { %v754_v20 = vmul.f32 %v732_v12, %v4658_v19  ;;  %v804_v12 = vpop.f32.mrf.mxu0 }
 0x349   :  { %v735_v13 = vpop.f32.mrf.mxu3 }
 0x34a   :  { %v755_v18 = vmul.f32 %v735_v13, %v4653_v17  ;;  %v4791_v13 = vld [vmem:[%s5569_s24 + $0x28] sm:$0xff] }
 0x34b   :  { %937 = vmatpush.msrb.mxu2 %v4791_v13 }
 0x351   :  { %v738_v15 = vpop.f32.mrf.mxu3 }
 0x352   :  { %v756_v16 = vmul.f32 %v738_v15, %v4649_v14  ;;  %v4794_v15 = vld [vmem:[%s5569_s24 + $0x20] sm:$0xff] }
 0x353   :  { %938 = vmatpush.msrb.mxu2 %v4794_v15 }
 0x354   :  { %3121 = vmatpush.xpose.msk.msrb.mxu1 %vm527_vm0, %v756_v16  ;;  %v4798_v16 = vld [vmem:[%s5569_s24 + $0x18] sm:$0xff] }
 0x355   :  { %939 = vmatpush.msrb.mxu2 %v4798_v16 }
 0x358   :  { %3122 = vmatpush.xpose.msk.msrb.mxu1 %vm527_vm0, %v755_v18  ;;  %v4802_v18 = vld [vmem:[%s5569_s24 + $0x10] sm:$0xff] }
 0x359   :  { %940 = vmatpush.msrb.mxu2 %v4802_v18 }
 0x35c   :  { %3123 = vmatpush.xpose.msk.msrb.mxu1 %vm527_vm0, %v754_v20  ;;  %v807_v20 = vpop.f32.mrf.mxu0 }
 0x360   :  { %3124 = vmatpush.xpose.msk.msrb.mxu1 %vm527_vm0, %v753_v22  ;;  %v4807_v22 = vld [vmem:[%s5569_s24 + $0x8] sm:$0xff] }
 0x361   :  { %941 = vmatpush.msrb.mxu2 %v4807_v22 }
 0x364   :  { %3125 = vmatpush.xpose.msk.msrb.mxu1 %vm527_vm0, %v752_v24  ;;  %v4810_v24 = vld [vmem:[%s5569_s24] sm:$0xff] }
 0x365   :  { %942 = vmatpush.msrb.mxu2 %v4810_v24 }
 0x368   :  { %3126 = vmatpush.xpose.msk.msrb.mxu1 %vm527_vm0, %v751_v26  ;;  %v810_v26 = vpop.f32.mrf.mxu0 }
 0x36c   :  { %3127 = vmatpush.xpose.msk.msrb.mxu1 %vm527_vm0, %v750_v28 }
 0x370   :  { %3128 = vmatpush.xpose.msk.msrb.mxu1 %vm527_vm0, %v749_v30  ;;  %v813_v28 = vpop.f32.mrf.mxu0 }
 0x374   :  { %3129 = vmatpush.xpose.msk.msrb.mxu1 %vm527_vm0, %v748_v33 }
 0x378   :  { %3130 = vmatpush.xpose.msk.msrb.mxu1 %vm527_vm0, %v747_v35  ;;  %v816_v30 = vpop.f32.mrf.mxu0 }
 0x379   :  { %v836_v35 = vmul.f32 %v816_v30, %v4653_v17  ;;  %v828_v17 = vmul.f32 %v792_v60, %v4693_v34  ;;  %v1007_v60 = vld [vmem:[%s5570_s10 + $0x20] sm:$0xff] }
 0x37c   :  { %3131 = vmatpush.xpose.msk.msrb.mxu1 %vm527_vm0, %v746_v38 }
 0x380   :  { %3132 = vmatpush.xpose.msk.msrb.mxu1 %vm527_vm0, %v745_v40  ;;  %v819_v33 = vpop.f32.mrf.mxu0  ;;  %v835_v40 = vmul.f32 %v813_v28, %v4658_v19  ;;  %v827_v19 = vmul.f32 %v4742_v59, %v4698_v37 }
 0x381   :  { %v837_v38 = vmul.f32 %v819_v33, %v4649_v14  ;;  %v829_v14 = vmul.f32 %v795_v62, %v4688_v31  ;;  %v4846_v62 = vsub.f32 1.0, %v512_v47 }
 0x383   :  { %980 = vmatpush.msra.mxu2 %v837_v38 }
 0x384   :  { %3133 = vmatpush.xpose.msk.msrb.mxu1 %vm527_vm0, %v744_v42  ;;  %v834_v42 = vmul.f32 %v810_v26, %v4663_v21  ;;  %v826_v21 = vmul.f32 %v4740_v58, %v4703_v39  ;;  %v1008_v58 = vld [vmem:[%s5570_s10 + $0x28] sm:$0xff] }
 0x385   :  { %981 = vmatpush.msra.mxu2 %v836_v35 }
 0x387   :  { %982 = vmatpush.msra.mxu2 %v835_v40 }
 0x388   :  { %3134 = vmatpush.xpose.msk.msrb.mxu1 %vm527_vm0, %v743_v44  ;;  %v833_v44 = vmul.f32 %v807_v20, %v4668_v23  ;;  %v825_v23 = vmul.f32 %v4738_v57, %v4708_v41 }
 0x389   :  { %983 = vmatpush.msra.mxu2 %v834_v42 }
 0x38b   :  { %984 = vmatpush.msra.mxu2 %v833_v44 }
 0x38c   :  { %3135 = vmatpush.xpose.msk.msrb.mxu1 %vm527_vm0, %v742_v46  ;;  %v832_v46 = vmul.f32 %v804_v12, %v4673_v25  ;;  %v824_v25 = vmul.f32 %v4736_v56, %v4713_v43  ;;  %v511_v43 = vld [vmem:[#allocation7] sm:$0xff] }
 0x38d   :  { %v4838_v54 = vsub.f32 1.0, %v511_v43  ;;  %v1009_v56 = vld [vmem:[%s5570_s10 + $0x30] sm:$0xff] }
 0x38e   :  { %985 = vmatpush.msra.mxu2 %v832_v46 }
 0x390   :  { %3136 = vmatpush.xpose.msk.msrb.mxu1 %vm527_vm0, %v741_v50  ;;  %986 = vmatpush.msra.mxu2 %v831_v48 }
 0x392   :  { %987 = vmatpush.msra.mxu2 %v830_v49 }
 0x393   :  { %3137 = vmatmul.msk.f32.vlgmr.msrb.gmra.mxu1 %vm527_vm0, %v552_v51 }
 0x394   :  { %988 = vmatpush.msra.mxu2 %v829_v14  ;;  %1029 = vmatpush.msra.mxu1 %v1010_v55 }
 0x396   :  { %989 = vmatpush.msra.mxu2 %v828_v17  ;;  %1030 = vmatpush.msra.mxu1 %v1009_v56  ;;  %v4245_v56 = vmov 64.0  }
 0x398   :  { %990 = vmatpush.msra.mxu2 %v827_v19  ;;  %1031 = vmatpush.msra.mxu1 %v1008_v58 }
 0x39a   :  { %991 = vmatpush.msra.mxu2 %v826_v21  ;;  %1032 = vmatpush.msra.mxu1 %v1007_v60 }
 0x39b   :  { %3138 = vmatmul.msk.f32.gmra.mxu1 %vm527_vm0, %v555_v53 }
 0x39c   :  { %992 = vmatpush.msra.mxu2 %v825_v23 }
 0x39e   :  { %993 = vmatpush.msra.mxu2 %v824_v25 }
 0x3a0   :  { %994 = vmatpush.msra.mxu2 %v823_v27 }
 0x3a2   :  { %995 = vmatpush.msra.mxu2 %v822_v29 }
 0x410   :  { %v4744_v61 = vpop.f32.mrf.mxu1 }
 0x411   :  { %915 = vmax.xlane.f32.xlu1 %v4744_v61 }
 0x418   :  { %v4755_v1 = vpop.f32.mrf.mxu1 }
 0x419   :  { %917 = vmax.xlane.f32.xlu1 %v4755_v1 }
 0x484   :  { %v916_v31 = vpop.xlane.xlu1 %915 }
 0x485   :  { %v919_v34 = vsub.f32 %v4744_v61, %v916_v31  ;;  %v1006_v61 = vld [vmem:[%s5570_s10 + $0x18] sm:$0xff] }
 0x486   :  { %1033 = vmatpush.msra.mxu1 %v1006_v61 }
 0x487   :  { %v921_v37 = vmul.f32 1.442695, %v919_v34  ;;  %v1003_v34 = vld [vmem:[%s5570_s10] sm:$0xff] }
 0x489   :  { %3548 = vpow2.f32 %v921_v37 }
 0x48c   :  { %v918_v39 = vpop.xlane.xlu1 %917 }
 0x48d   :  { %v920_v41 = vsub.f32 %v4755_v1, %v918_v39  ;;  %v1005_v1 = vld [vmem:[%s5570_s10 + $0x10] sm:$0xff] }
 0x48e   :  { %1034 = vmatpush.msra.mxu1 %v1005_v1 }
 0x48f   :  { %v3549_v45 = vpop.eup %3548  ;;  %v923_v50 = vmul.f32 1.442695, %v920_v41  ;;  %v3520_v41 = vld [vmem:[#allocation13] ss:$0 sm:$0xff] }
 0x490   :  { %v925_v51 = vmul.f32 %v3549_v45, %v511_v43  ;;  %1035 = vmatpush.msra.mxu1 %v1004_v7 }
 0x491   :  { %3550 = vpow2.f32 %v923_v50 }
 0x492   :  { %943 = vmatmul.f32.vlgmr.msrb.gmra.mxu2 %v925_v51  ;;  %1036 = vmatpush.msra.mxu1 %v1003_v34 }
 0x497   :  { %v3551_v52 = vpop.eup %3550 }
 0x498   :  { %v926_v53 = vmul.f32 %v3551_v52, %v512_v47 }
 0x49a   :  { %946 = vmatmul.f32.gmra.mxu2 %v926_v53 }
 0x515   :  { %v944_v57 = vpop.f32.mrf.mxu2 }
 0x516   :  { %v945_v59 = vadd.f32 %v944_v57, %v4838_v54 }
 0x518   :  { %3552 = vrcp.f32 %v945_v59  ;;  %v961_v30 = vand.u32 2147483648, %v945_v59  ;;  %v959_v35 = vand.u32 2147483647, %v945_v59  ;;  %vm955_vm3 = vweird.f32 %v945_v59 }
 0x51a   :  { %v962_v42 = vor.u32 1.1754944e-38, %v961_v30  ;;  %vm960_vm5 = vcmp.eq.f32.partialorder %v959_v35, 8.507059e+37  ;;  %v1123_v35 = vld [vmem:[%s5571_s15 + $0x70] sm:$0xff] }
 0x51b   :  { %1145 = vmatpush.msrb.mxu2 %v1123_v35  ;;  %v1210_v35 = vld [vmem:[%s5572_s18 + $0xb8] sm:$0xff] }
 0x51d   :  { %v947_v2 = vpop.f32.mrf.mxu2 }
 0x51e   :  { %v3553_v12 = vpop.eup %3552  ;;  %v948_v20 = vadd.f32 %v947_v2, %v4846_v62 }
 0x51f   :  { %v951_v26 = vmul.f32 %v3553_v12, %v945_v59  ;;  %vm956_vm2 = vweird.f32 %v3553_v12 }
 0x520   :  { %3554 = vrcp.f32 %v948_v20  ;;  %vm957_vm4 = vmor %vm955_vm3, %vm956_vm2  ;;  %v976_v17 = vand.u32 2147483648, %v948_v20  ;;  %v974_v21 = vand.u32 2147483647, %v948_v20  ;;  %vm970_vm7 = vweird.f32 %v948_v20 }
 0x521   :  { %v952_v28 = vsub.f32 1.0, %v951_v26  ;;  %3556 = vrcp.f32 %v4245_v56 }
 0x522   :  { %v977_v25 = vor.u32 1.1754944e-38, %v976_v17  ;;  %vm975_vm9 = vcmp.eq.f32.partialorder %v974_v21, 8.507059e+37  ;;  %v1116_v17 = vld [vmem:[%s5571_s15 + $0x38] sm:$0xff]  ;;  %v1114_v21 = vld [vmem:[%s5571_s15 + $0x28] sm:$0xff] }
 0x523   :  { %v953_v33 = vmul.f32 %v3553_v12, %v952_v28 }
 0x525   :  { %v954_v38 = vadd.f32 %v3553_v12, %v953_v33 }
 0x526   :  { %v3555_v40 = vpop.eup %3554 }
 0x527   :  { %v958_v44 = vsel %vm957_vm4, %v3553_v12, %v954_v38  ;;  %v966_v46 = vmul.f32 %v3555_v40, %v948_v20  ;;  %vm971_vm6 = vweird.f32 %v3555_v40  ;;  %v3557_v57 = vpop.eup %3556  ;;  %v1124_v38 = vld [vmem:[%s5571_s15 + $0x78] sm:$0xff] }
 0x528   :  { %v963_v48 = vsel %vm960_vm5, %v962_v42, %v958_v44  ;;  %vm972_vm8 = vmor %vm970_vm7, %vm971_vm6  ;;  %v1055_v58 = vmul.f32 64.0, %v3557_v57  ;;  %vm1059_vm10 = vweird.f32 %v3557_v57  ;;  %1168 = vmatpush.msrb.mxu1 %v1124_v38  ;;  %v1122_v42 = vld [vmem:[%s5571_s15 + $0x68] sm:$0xff]  ;;  %v1119_v44 = vld [vmem:[%s5571_s15 + $0x50] sm:$0xff] }
 0x529   :  { %v964_v49 = vmul.f32 %v963_v48, %v925_v51  ;;  %v967_v14 = vsub.f32 1.0, %v966_v46  ;;  %v1120_v46 = vld [vmem:[%s5571_s15 + $0x58] sm:$0xff]  ;;  %v1117_v48 = vld [vmem:[%s5571_s15 + $0x40] sm:$0xff] }
 0x52a   :  { %v1056_v59 = vsub.f32 1.0, %v1055_v58  ;;  %1169 = vmatpush.msrb.mxu1 %v1122_v42  ;;  %v1195_v42 = vld [vmem:[%s5572_s18 + $0x40] sm:$0xff] }
 0x52b   :  { %996 = vmatmul.f32.vlgmr.msra.gmra.mxu2 %v964_v49  ;;  %v968_v19 = vmul.f32 %v3555_v40, %v967_v14  ;;  %v1118_v49 = vld [vmem:[%s5571_s15 + $0x48] sm:$0xff]  ;;  %v1115_v14 = vld [vmem:[%s5571_s15 + $0x30] sm:$0xff] }
 0x52c   :  { %v1057_v60 = vmul.f32 %v3557_v57, %v1056_v59  ;;  %1170 = vmatpush.msrb.mxu1 %v1120_v46  ;;  %v1199_v59 = vld [vmem:[%s5572_s18 + $0x60] sm:$0xff]  ;;  %v1209_v46 = vld [vmem:[%s5572_s18 + $0xb0] sm:$0xff] }
 0x52d   :  { %v969_v23 = vadd.f32 %v3555_v40, %v968_v19  ;;  %v1113_v19 = vld [vmem:[%s5571_s15 + $0x20] sm:$0xff] }
 0x52e   :  { %v1058_v61 = vadd.f32 %v3557_v57, %v1057_v60  ;;  %1171 = vmatpush.msrb.mxu1 %v1118_v49  ;;  %v1213_v60 = vld [vmem:[%s5572_s18 + $0xd0] sm:$0xff] }
 0x52f   :  { %v973_v27 = vsel %vm972_vm8, %v3555_v40, %v969_v23  ;;  %v1121_v40 = vld [vmem:[%s5571_s15 + $0x60] sm:$0xff]  ;;  %v1111_v23 = vld [vmem:[%s5571_s15 + $0x10] sm:$0xff] }
 0x530   :  { %v978_v29 = vsel %vm975_vm9, %v977_v25, %v973_v27  ;;  %1146 = vmatpush.msrb.mxu2 %v1121_v40  ;;  %1172 = vmatpush.msrb.mxu1 %v1116_v17  ;;  %v1112_v25 = vld [vmem:[%s5571_s15 + $0x18] sm:$0xff]  ;;  %v1109_v27 = vld [vmem:[%s5571_s15] sm:$0xff] }
 0x531   :  { %v979_v31 = vmul.f32 %v978_v29, %v926_v53  ;;  %v1110_v29 = vld [vmem:[%s5571_s15 + $0x8] sm:$0xff] }
 0x532   :  { %1147 = vmatpush.msrb.mxu2 %v1119_v44  ;;  %1173 = vmatpush.msrb.mxu1 %v1114_v21  ;;  %v3521_v44 = vld [vmem:[#allocation14] ss:$0 sm:$0xff]  ;;  %v1208_v21 = vld [vmem:[%s5572_s18 + $0xa8] sm:$0xff] }
 0x533   :  { %999 = vmatmul.f32.gmra.mxu2 %v979_v31 }
 0x534   :  { %1148 = vmatpush.msrb.mxu2 %v1117_v48  ;;  %1174 = vmatpush.msrb.mxu1 %v1112_v25  ;;  %v1193_v25 = vld [vmem:[%s5572_s18 + $0x30] sm:$0xff] }
 0x536   :  { %1149 = vmatpush.msrb.mxu2 %v1115_v14  ;;  %1175 = vmatpush.msrb.mxu1 %v1110_v29  ;;  %v1194_v14 = vld [vmem:[%s5572_s18 + $0x38] sm:$0xff]  ;;  %v1207_v29 = vld [vmem:[%s5572_s18 + $0xa0] sm:$0xff] }
 0x538   :  { %1150 = vmatpush.msrb.mxu2 %v1113_v19  ;;  %v3522_v19 = vld [vmem:[#allocation16] ss:$0 sm:$0xff] }
 0x53a   :  { %1151 = vmatpush.msrb.mxu2 %v1111_v23 }
 0x53c   :  { %1152 = vmatpush.msrb.mxu2 %v1109_v27 }
 0x5ae   :  { %v997_v37 = vpop.f32.mrf.mxu2 }
 0x5af   :  { %3139 = vmatmul.msk.f32.vlgmr.msra.gmra.mxu1 %vm527_vm0, %v997_v37 }
 0x5b6   :  { %v1000_v39 = vpop.f32.mrf.mxu2 }
 0x5b7   :  { %3140 = vmatmul.msk.f32.gmra.mxu1 %vm527_vm0, %v1000_v39  ;;  %v1218_v39 = vld [vmem:[%s5572_s18 + $0xf8] sm:$0xff] }
 0x5b8   :  { %1246 = vmatpush.msrb.mxu3 %v1218_v39 }
 0x62c   :  { %v1038_v43 = vpop.f32.mrf.mxu1 }
 0x62d   :  { %v1039_v45 = vadd.f32 %v3520_v41, %v1038_v43  ;;  %v1216_v43 = vld [vmem:[%s5572_s18 + $0xe8] sm:$0xff] }
 0x62f   :  { %v1044_v50 = vadd.f32 %v1039_v45, %v4582_v32  ;;  %v4858_v32 = vsel %vm1059_vm10, %v3557_v57, %v1058_v61  ;;  %v1214_v57 = vld [vmem:[%s5572_s18 + $0xd8] sm:$0xff] }
 0x631   :  { %v1048_v51 = vsel %vm527_vm0, %v1044_v50, 0.0 }
 0x632   :  { %1049 = vadd.xlane.f32.xlu2 %v1048_v51 }
 0x634   :  { %v1041_v47 = vpop.f32.mrf.mxu1 }
 0x635   :  { %v1042_v52 = vadd.f32 %v3520_v41, %v1041_v47  ;;  %v1217_v41 = vld [vmem:[%s5572_s18 + $0xf0] sm:$0xff]  ;;  %v1215_v47 = vld [vmem:[%s5572_s18 + $0xe0] sm:$0xff] }
 0x636   :  { %1247 = vmatpush.msrb.mxu3 %v1217_v41 }
 0x637   :  { %v1045_v53 = vadd.f32 %v1042_v52, %v4590_v36  ;;  %v1201_v52 = vld [vmem:[%s5572_s18 + $0x70] sm:$0xff] }
 0x638   :  { %1248 = vmatpush.msrb.mxu3 %v1216_v43 }
 0x639   :  { %v1051_v55 = vsel %vm527_vm0, %v1045_v53, 0.0 }
 0x63a   :  { %1052 = vadd.xlane.f32.xlu2 %v1051_v55  ;;  %1249 = vmatpush.msrb.mxu3 %v1215_v47  ;;  %v1191_v47 = vld [vmem:[%s5572_s18 + $0x20] sm:$0xff] }
 0x63c   :  { %1250 = vmatpush.msrb.mxu3 %v1214_v57  ;;  %v1187_v57 = vld [vmem:[%s5572_s18] sm:$0xff] }
 0x63e   :  { %1251 = vmatpush.msrb.mxu3 %v1213_v60 }
 0x6a5   :  { %v1050_v1 = vpop.xlane.xlu2 %1049 }
 0x6a6   :  { %v1061_v2 = vmul.f32 %v4858_v32, %v1050_v1  ;;  %v1198_v1 = vld [vmem:[%s5572_s18 + $0x58] sm:$0xff] }
 0x6a8   :  { %v4861_v36 = vsub.f32 %v1044_v50, %v1061_v2  ;;  %v1202_v50 = vld [vmem:[%s5572_s18 + $0x78] sm:$0xff]  ;;  %v1212_v2 = vld [vmem:[%s5572_s18 + $0xc8] sm:$0xff] }
 0x6a9   :  { %1223 = vmatpush.msra.mxu2 %v1202_v50  ;;  %1252 = vmatpush.msrb.mxu3 %v1212_v2  ;;  %v1192_v50 = vld [vmem:[%s5572_s18 + $0x28] sm:$0xff] }
 0x6aa   :  { %v1065_v7 = vmul.f32 %v4861_v36, %v4861_v36 }
 0x6ab   :  { %1224 = vmatpush.msra.mxu2 %v1201_v52  ;;  %v1204_v52 = vld [vmem:[%s5572_s18 + $0x88] sm:$0xff] }
 0x6ac   :  { %v1067_v12 = vsel %vm527_vm0, %v1065_v7, 0.0 }
 0x6ad   :  { %1068 = vadd.xlane.f32.xlu0 %v1067_v12  ;;  %v1053_v20 = vpop.xlane.xlu2 %1052  ;;  %v1197_v12 = vld [vmem:[%s5572_s18 + $0x50] sm:$0xff] }
 0x6ae   :  { %v1062_v26 = vmul.f32 %v4858_v32, %v1053_v20  ;;  %v1211_v20 = vld [vmem:[%s5572_s18 + $0xc0] sm:$0xff] }
 0x6af   :  { %1253 = vmatpush.msrb.mxu3 %v1211_v20 }
 0x6b0   :  { %v4867_v28 = vsub.f32 %v1045_v53, %v1062_v26  ;;  %v1200_v53 = vld [vmem:[%s5572_s18 + $0x68] sm:$0xff] }
 0x6b1   :  { %1225 = vmatpush.msra.mxu2 %v1200_v53  ;;  %1254 = vmatpush.msrb.mxu3 %v1210_v35  ;;  %v1190_v53 = vld [vmem:[%s5572_s18 + $0x18] sm:$0xff] }
 0x6b2   :  { %v1066_v30 = vmul.f32 %v4867_v28, %v4867_v28 }
 0x6b3   :  { %1226 = vmatpush.msra.mxu2 %v1199_v59  ;;  %1255 = vmatpush.msrb.mxu3 %v1209_v46 }
 0x6b4   :  { %v1070_v33 = vsel %vm527_vm0, %v1066_v30, 0.0  ;;  %v1196_v30 = vld [vmem:[%s5572_s18 + $0x48] sm:$0xff] }
 0x6b5   :  { %1071 = vadd.xlane.f32.xlu1 %v1070_v33  ;;  %1227 = vmatpush.msra.mxu2 %v1198_v1 }
 0x6b6   :  { %1256 = vmatpush.msrb.mxu3 %v1208_v21 }
 0x6b7   :  { %1228 = vmatpush.msra.mxu2 %v1197_v12 }
 0x6b8   :  { %1257 = vmatpush.msrb.mxu3 %v1207_v29 }
 0x6b9   :  { %1229 = vmatpush.msra.mxu2 %v1196_v30 }
 0x6bb   :  { %1230 = vmatpush.msra.mxu2 %v1195_v42  ;;  %v3523_v42 = vld [vmem:[#allocation19] ss:$0 sm:$0xff] }
 0x6bd   :  { %1231 = vmatpush.msra.mxu2 %v1194_v14 }
 0x6bf   :  { %1232 = vmatpush.msra.mxu2 %v1193_v25 }
 0x6c1   :  { %1233 = vmatpush.msra.mxu2 %v1192_v50 }
 0x6c3   :  { %1234 = vmatpush.msra.mxu2 %v1191_v47  ;;  %v3152_v47 = vld [vmem:[%s5563_s30 + $0x78] sm:$0xff] }
 0x6c4   :  { %1355 = vmatpush.msra.mxu1 %v3152_v47  ;;  %v3528_v47 = vld [vmem:[#allocation10 + $0x1] ss:$0 sm:$0xff] }
 0x6c5   :  { %1235 = vmatpush.msra.mxu2 %v1190_v53  ;;  %v3151_v53 = vld [vmem:[%s5563_s30 + $0x70] sm:$0xff] }
 0x6c6   :  { %1356 = vmatpush.msra.mxu1 %v3151_v53 }
 0x720   :  { %v1069_v31 = vpop.xlane.xlu0 %1068 }
 0x721   :  { %v1073_v34 = vmul.f32 %v1069_v31, %v4858_v32 }
 0x723   :  { %v1075_v37 = vadd.f32 1e-05, %v1073_v34 }
 0x725   :  { %3558 = vrsqrt.f32 %v1075_v37  ;;  %vm1083_vm12 = vweird.f32 %v1075_v37 }
 0x728   :  { %v1072_v45 = vpop.xlane.xlu1 %1071 }
 0x729   :  { %v1074_v51 = vmul.f32 %v1072_v45, %v4858_v32 }
 0x72b   :  { %v3559_v55 = vpop.eup %3558  ;;  %v1076_v56 = vadd.f32 1e-05, %v1074_v51  ;;  %v1205_v51 = vld [vmem:[%s5572_s18 + $0x90] sm:$0xff] }
 0x72c   :  { %v1078_v58 = vmul.f32 %v3559_v55, %v1075_v37  ;;  %vm1084_vm11 = vweird.f32 %v3559_v55  ;;  %v1206_v37 = vld [vmem:[%s5572_s18 + $0x98] sm:$0xff] }
 0x72d   :  { %3560 = vrsqrt.f32 %v1076_v56  ;;  %vm1085_vm13 = vmor %vm1083_vm12, %vm1084_vm11  ;;  %vm1093_vm15 = vweird.f32 %v1076_v56  ;;  %1258 = vmatpush.msrb.mxu3 %v1206_v37 }
 0x72e   :  { %v1079_v61 = vmul.f32 %v3559_v55, %v1078_v58  ;;  %v1125_v58 = vld [vmem:[#allocation17] sm:$0x3] }
 0x72f   :  { %1259 = vmatpush.msrb.mxu3 %v1205_v51  ;;  %v1128_v59 = vperm.slane %v1125_v58, 1  ;;  %v1127_v2 = vperm.slane %v1125_v58, 0  ;;  %v3170_v58 = vld [vmem:[%s5565_s3 + $0x60] sm:$0xff] }
 0x730   :  { %v1080_v7 = vmul.f32 0.5, %v1079_v61 }
 0x731   :  { %1260 = vmatpush.msrb.mxu3 %v1204_v52  ;;  %v3173_v52 = vld [vmem:[%s5565_s3 + $0x78] sm:$0xff] }
 0x732   :  { %v1081_v26 = vsub.f32 1.5, %v1080_v7 }
 0x733   :  { %v3561_v33 = vpop.eup %3560 }
 0x734   :  { %v1082_v38 = vmul.f32 %v3559_v55, %v1081_v26  ;;  %v1088_v40 = vmul.f32 %v3561_v33, %v1076_v56  ;;  %vm1094_vm14 = vweird.f32 %v3561_v33  ;;  %v1188_v56 = vld [vmem:[%s5572_s18 + $0x8] sm:$0xff] }
 0x735   :  { %vm1095_vm2 = vmor %vm1093_vm15, %vm1094_vm14 }
 0x736   :  { %v1086_v48 = vsel %vm1085_vm13, %v3559_v55, %v1082_v38  ;;  %v1089_v49 = vmul.f32 %v3561_v33, %v1088_v40  ;;  %v1203_v55 = vld [vmem:[%s5572_s18 + $0x80] sm:$0xff] }
 0x737   :  { %v1097_v17 = vmul.f32 %v1086_v48, %v4861_v36  ;;  %1261 = vmatpush.msrb.mxu3 %v1203_v55  ;;  %v3172_v55 = vld [vmem:[%s5565_s3 + $0x70] sm:$0xff] }
 0x738   :  { %v1090_v23 = vmul.f32 0.5, %v1089_v49 }
 0x739   :  { %v1102_v27 = vmul.f32 %v3521_v44, %v1097_v17 }
 0x73a   :  { %v1091_v31 = vsub.f32 1.5, %v1090_v23 }
 0x73b   :  { %v1107_v34 = vadd.f32 %v3522_v19, %v1102_v27 }
 0x73c   :  { %v1092_v39 = vmul.f32 %v3561_v33, %v1091_v31 }
 0x73d   :  { %3141 = vmatmul.msk.f32.vlgmr.msrb.gmra.mxu2 %vm527_vm0, %v1107_v34  ;;  %3143 = vmatmul.msk.f32.vlgmr.msrb.gmra.mxu1 %vm527_vm0, %v1107_v34 }
 0x73e   :  { %v1096_v36 = vsel %vm1095_vm2, %v3561_v33, %v1092_v39 }
 0x73f   :  { %v1098_v41 = vmul.f32 %v1096_v36, %v4867_v28  ;;  %v1189_v28 = vld [vmem:[%s5572_s18 + $0x10] sm:$0xff] }
 0x740   :  { %1236 = vmatpush.msra.mxu2 %v1189_v28  ;;  %v3150_v28 = vld [vmem:[%s5563_s30 + $0x68] sm:$0xff] }
 0x741   :  { %v1103_v43 = vmul.f32 %v3521_v44, %v1098_v41  ;;  %1357 = vmatpush.msra.mxu1 %v3150_v28  ;;  %v3599_v28 = vld [vmem:[%s5566_s21 + $0x8] sm:$0xff] }
 0x742   :  { %1237 = vmatpush.msra.mxu2 %v1188_v56  ;;  %v3171_v56 = vld [vmem:[%s5565_s3 + $0x68] sm:$0xff] }
 0x743   :  { %v1108_v45 = vadd.f32 %v3522_v19, %v1103_v43 }
 0x744   :  { %1238 = vmatpush.msra.mxu2 %v1187_v57  ;;  %v3149_v57 = vld [vmem:[%s5563_s30 + $0x60] sm:$0xff] }
 0x745   :  { %3142 = vmatmul.msk.f32.gmra.mxu2 %vm527_vm0, %v1108_v45  ;;  %3144 = vmatmul.msk.f32.gmra.mxu1 %vm527_vm0, %v1108_v45 }
 0x746   :  { %1429 = vmatpush.msrb.mxu2 %v3173_v52  ;;  %1358 = vmatpush.msra.mxu1 %v3149_v57  ;;  %v3601_v57 = vld [vmem:[%s5566_s21 + $0x18] sm:$0xff] }
 0x748   :  { %1430 = vmatpush.msrb.mxu2 %v3172_v55 }
 0x74a   :  { %1431 = vmatpush.msrb.mxu2 %v3171_v56  ;;  %v3600_v56 = vld [vmem:[%s5566_s21 + $0x10] sm:$0xff] }
 0x74c   :  { %1432 = vmatpush.msrb.mxu2 %v3170_v58  ;;  %v3602_v58 = vld [vmem:[%s5566_s21 + $0x20] sm:$0xff] }
 0x7ba   :  { %v1177_v60 = vpop.f32.mrf.mxu1 }
 0x7bb   :  { %v1178_v61 = vadd.f32 %v1177_v60, %v1128_v59  ;;  %v3169_v60 = vld [vmem:[%s5565_s3 + $0x58] sm:$0xff] }
 0x7bc   :  { %1433 = vmatpush.msrb.mxu2 %v3169_v60  ;;  %v3604_v60 = vld [vmem:[%s5566_s21 + $0x30] sm:$0xff] }
 0x7bd   :  { %v1184_v1 = vmax.f32 %v1178_v61, 0.0  ;;  %v3147_v61 = vld [vmem:[%s5563_s30 + $0x50] sm:$0xff] }
 0x7bf   :  { %1262 = vmatmul.f32.vlgmr.msrb.gmra.mxu3 %v1184_v1  ;;  %v3168_v1 = vld [vmem:[%s5565_s3 + $0x50] sm:$0xff] }
 0x7c0   :  { %v1154_v7 = vpop.f32.mrf.mxu2  ;;  %1434 = vmatpush.msrb.mxu2 %v3168_v1  ;;  %v3606_v1 = vld [vmem:[%s5566_s21 + $0x40] sm:$0xff] }
 0x7c1   :  { %v1155_v12 = vadd.f32 %v1154_v7, %v1127_v2  ;;  %v3167_v7 = vld [vmem:[%s5565_s3 + $0x48] sm:$0xff] }
 0x7c2   :  { %v1180_v20 = vpop.f32.mrf.mxu1  ;;  %1435 = vmatpush.msrb.mxu2 %v3167_v7  ;;  %v3608_v7 = vld [vmem:[%s5566_s21 + $0x50] sm:$0xff] }
 0x7c3   :  { %v1183_v26 = vmax.f32 %v1155_v12, 0.0  ;;  %v1181_v30 = vadd.f32 %v1180_v20, %v1128_v59  ;;  %v3148_v59 = vld [vmem:[%s5563_s30 + $0x58] sm:$0xff]  ;;  %v3145_v12 = vld [vmem:[%s5563_s30 + $0x40] sm:$0xff] }
 0x7c4   :  { %1359 = vmatpush.msra.mxu1 %v3148_v59  ;;  %v3166_v20 = vld [vmem:[%s5565_s3 + $0x40] sm:$0xff]  ;;  %v3603_v59 = vld [vmem:[%s5566_s21 + $0x28] sm:$0xff] }
 0x7c5   :  { %1239 = vmatmul.f32.vlgmr.msra.gmra.mxu2 %v1183_v26  ;;  %v1186_v33 = vmax.f32 %v1181_v30, 0.0  ;;  %v3163_v26 = vld [vmem:[%s5564_s7 + $0x78] sm:$0xff]  ;;  %v3162_v30 = vld [vmem:[%s5564_s7 + $0x70] sm:$0xff] }
 0x7c6   :  { %1360 = vmatpush.msra.mxu1 %v3147_v61  ;;  %1436 = vmatpush.msrb.mxu2 %v3166_v20  ;;  %v3605_v61 = vld [vmem:[%s5566_s21 + $0x38] sm:$0xff]  ;;  %v3610_v20 = vld [vmem:[%s5566_s21 + $0x60] sm:$0xff] }
 0x7c7   :  { %1265 = vmatmul.f32.gmra.mxu3 %v1186_v33 }
 0x7c8   :  { %v1157_v35 = vpop.f32.mrf.mxu2  ;;  %1695 = vmatpush.msra.mxu2 %v4748_v63  ;;  %v3159_v63 = vld [vmem:[%s5564_s7 + $0x58] sm:$0xff] }
 0x7c9   :  { %v1158_v38 = vadd.f32 %v1157_v35, %v1127_v2  ;;  %v3146_v2 = vld [vmem:[%s5563_s30 + $0x48] sm:$0xff] }
 0x7ca   :  { %1361 = vmatpush.msra.mxu1 %v3146_v2  ;;  %v3161_v35 = vld [vmem:[%s5564_s7 + $0x68] sm:$0xff]  ;;  %1696 = vmatpush.msra.mxu2 %v4751_v0 }
 0x7cb   :  { %v1185_v40 = vmax.f32 %v1158_v38, 0.0  ;;  %v3157_v0 = vld [vmem:[%s5564_s7 + $0x48] sm:$0xff] }
 0x7cc   :  { %1362 = vmatpush.msra.mxu1 %v3145_v12  ;;  %1697 = vmatpush.msra.mxu2 %v4759_v3  ;;  %v3607_v2 = vld [vmem:[%s5566_s21 + $0x48] sm:$0xff]  ;;  %v3609_v12 = vld [vmem:[%s5566_s21 + $0x58] sm:$0xff] }
 0x7cd   :  { %1242 = vmatmul.f32.gmra.mxu2 %v1185_v40  ;;  %v3160_v40 = vld [vmem:[%s5564_s7 + $0x60] sm:$0xff] }
 0x7ce   :  { %1392 = vmatpush.msrb.mxu1 %v3163_v26  ;;  %1698 = vmatpush.msra.mxu2 %v4762_v4  ;;  %v3611_v26 = vld [vmem:[%s5566_s21 + $0x68] sm:$0xff] }
 0x7d0   :  { %1393 = vmatpush.msrb.mxu1 %v3162_v30  ;;  %1699 = vmatpush.msra.mxu2 %v4766_v5  ;;  %v3612_v30 = vld [vmem:[%s5566_s21 + $0x70] sm:$0xff] }
 0x7d2   :  { %1394 = vmatpush.msrb.mxu1 %v3161_v35  ;;  %1700 = vmatpush.msra.mxu2 %v4770_v6 }
 0x7d4   :  { %1395 = vmatpush.msrb.mxu1 %v3160_v40  ;;  %1701 = vmatpush.msra.mxu2 %v4775_v8 }
 0x7d6   :  { %1396 = vmatpush.msrb.mxu1 %v3159_v63  ;;  %1702 = vmatpush.msra.mxu2 %v4778_v9 }
 0x7d8   :  { %1703 = vmatpush.msra.mxu2 %v4782_v10 }
 0x7da   :  { %1704 = vmatpush.msra.mxu2 %v4786_v11 }
 0x7dc   :  { %1705 = vmatpush.msra.mxu2 %v4791_v13 }
 0x7de   :  { %1706 = vmatpush.msra.mxu2 %v4794_v15 }
 0x7e0   :  { %1707 = vmatpush.msra.mxu2 %v4798_v16 }
 0x7e2   :  { %1708 = vmatpush.msra.mxu2 %v4802_v18 }
 0x7e4   :  { %1709 = vmatpush.msra.mxu2 %v4807_v22 }
 0x7e6   :  { %1710 = vmatpush.msra.mxu2 %v4810_v24 }
 0x842   :  { %v1263_v44 = vpop.f32.mrf.mxu3 }
 0x848   :  { %v1240_v46 = vpop.f32.mrf.mxu2 }
 0x849   :  { %v1241_v48 = vadd.f32 %v3523_v42, %v1240_v46 }
 0x84a   :  { %v1266_v23 = vpop.f32.mrf.mxu3 }
 0x84b   :  { %v1264_v49 = vadd.f32 %v1263_v44, %v1241_v48  ;;  %v3158_v44 = vld [vmem:[%s5564_s7 + $0x50] sm:$0xff] }
 0x84c   :  { %1397 = vmatpush.msrb.mxu1 %v3158_v44 }
 0x84d   :  { %v1269_v14 = vadd.f32 %v1264_v49, %v1107_v34  ;;  %v3156_v49 = vld [vmem:[%s5564_s7 + $0x40] sm:$0xff] }
 0x84e   :  { %1398 = vmatpush.msrb.mxu1 %v3157_v0 }
 0x84f   :  { %v1273_v17 = vsel %vm527_vm0, %v1269_v14, 0.0 }
 0x850   :  { %1274 = vadd.xlane.f32.xlu2 %v1273_v17  ;;  %v1243_v19 = vpop.f32.mrf.mxu2  ;;  %1399 = vmatpush.msrb.mxu1 %v3156_v49 }
 0x851   :  { %v1244_v21 = vadd.f32 %v3523_v42, %v1243_v19 }
 0x853   :  { %v1267_v25 = vadd.f32 %v1266_v23, %v1244_v21  ;;  %v3524_v23 = vld [vmem:[#allocation20] ss:$0 sm:$0xff] }
 0x855   :  { %v1270_v27 = vadd.f32 %v1267_v25, %v1108_v45 }
 0x857   :  { %v1276_v29 = vsel %vm527_vm0, %v1270_v27, 0.0 }
 0x858   :  { %1277 = vadd.xlane.f32.xlu1 %v1276_v29 }
 0x8c3   :  { %v1275_v31 = vpop.xlane.xlu2 %1274 }
 0x8c4   :  { %v1279_v37 = vmul.f32 %v1275_v31, %v4858_v32 }
 0x8c6   :  { %v4931_v39 = vsub.f32 %v1269_v14, %v1279_v37 }
 0x8c8   :  { %v1283_v34 = vmul.f32 %v4931_v39, %v4931_v39 }
 0x8ca   :  { %v1285_v36 = vsel %vm527_vm0, %v1283_v34, 0.0 }
 0x8cb   :  { %1286 = vadd.xlane.f32.xlu2 %v1285_v36  ;;  %v1278_v41 = vpop.xlane.xlu1 %1277  ;;  %v3527_v36 = vld [vmem:[#allocation11 + $0x1] ss:$0 sm:$0xff] }
 0x8cc   :  { %v1280_v43 = vmul.f32 %v1278_v41, %v4858_v32 }
 0x8ce   :  { %v4937_v45 = vsub.f32 %v1270_v27, %v1280_v43  ;;  %v3525_v27 = vld [vmem:[#allocation22] ss:$0 sm:$0xff] }
 0x8d0   :  { %v1284_v50 = vmul.f32 %v4937_v45, %v4937_v45 }
 0x8d2   :  { %v1288_v51 = vsel %vm527_vm0, %v1284_v50, 0.0 }
 0x8d3   :  { %1289 = vadd.xlane.f32.xlu1 %v1288_v51  ;;  %v3598_v51 = vld [vmem:[%s5566_s21] sm:$0xff] }
 0x93e   :  { %v1287_v33 = vpop.xlane.xlu2 %1286 }
 0x93f   :  { %v1291_v38 = vmul.f32 %v1287_v33, %v4858_v32  ;;  %v3613_v33 = vld [vmem:[%s5566_s21 + $0x78] sm:$0xff] }
 0x941   :  { %v1293_v42 = vadd.f32 1e-05, %v1291_v38 }
 0x943   :  { %3562 = vrsqrt.f32 %v1293_v42  ;;  %vm1301_vm4 = vweird.f32 %v1293_v42 }
 0x946   :  { %v1290_v46 = vpop.xlane.xlu1 %1289 }
 0x947   :  { %v1292_v48 = vmul.f32 %v1290_v46, %v4858_v32 }
 0x949   :  { %v3563_v3 = vpop.eup %3562  ;;  %v1294_v14 = vadd.f32 1e-05, %v1292_v48 }
 0x94a   :  { %v1296_v4 = vmul.f32 %v3563_v3, %v1293_v42  ;;  %vm1302_vm3 = vweird.f32 %v3563_v3 }
 0x94b   :  { %3564 = vrsqrt.f32 %v1294_v14  ;;  %vm1303_vm5 = vmor %vm1301_vm4, %vm1302_vm3  ;;  %vm1311_vm7 = vweird.f32 %v1294_v14 }
 0x94c   :  { %v1297_v5 = vmul.f32 %v3563_v3, %v1296_v4 }
 0x94e   :  { %v1298_v17 = vmul.f32 0.5, %v1297_v5 }
 0x950   :  { %v1299_v6 = vsub.f32 1.5, %v1298_v17 }
 0x951   :  { %v3565_v19 = vpop.eup %3564 }
 0x952   :  { %v1300_v8 = vmul.f32 %v3563_v3, %v1299_v6  ;;  %v1306_v21 = vmul.f32 %v3565_v19, %v1294_v14  ;;  %vm1312_vm6 = vweird.f32 %v3565_v19 }
 0x953   :  { %vm1313_vm8 = vmor %vm1311_vm7, %vm1312_vm6 }
 0x954   :  { %v1304_v9 = vsel %vm1303_vm5, %v3563_v3, %v1300_v8  ;;  %v1307_v25 = vmul.f32 %v3565_v19, %v1306_v21  ;;  %v5062_v21 = vld [vmem:[%s5567_s11 + $0x70] sm:$0xff] }
 0x955   :  { %v1315_v10 = vmul.f32 %v1304_v9, %v4931_v39  ;;  %v5067_v9 = vld [vmem:[%s5567_s11 + $0x68] sm:$0xff] }
 0x956   :  { %v1308_v11 = vmul.f32 0.5, %v1307_v25 }
 0x957   :  { %v1320_v29 = vmul.f32 %v3524_v23, %v1315_v10  ;;  %v5072_v10 = vld [vmem:[%s5567_s11 + $0x60] sm:$0xff] }
 0x958   :  { %v1309_v13 = vsub.f32 1.5, %v1308_v11  ;;  %v5077_v11 = vld [vmem:[%s5567_s11 + $0x58] sm:$0xff] }
 0x959   :  { %v4984_v31 = vadd.f32 %v3525_v27, %v1320_v29 }
 0x95a   :  { %v1310_v15 = vmul.f32 %v3565_v19, %v1309_v13  ;;  %v5082_v13 = vld [vmem:[%s5567_s11 + $0x50] sm:$0xff] }
 0x95b   :  { %3154 = vmatmul.msk.f32.vlgmr.msra.gmra.mxu1 %vm527_vm0, %v4984_v31  ;;  %3174 = vmatmul.msk.f32.vlgmr.msrb.gmra.mxu2 %vm527_vm0, %v4984_v31 }
 0x95c   :  { %v1314_v16 = vsel %vm1313_vm8, %v3565_v19, %v1310_v15  ;;  %v5057_v19 = vld [vmem:[%s5567_s11 + $0x78] sm:$0xff] }
 0x95d   :  { %v1316_v18 = vmul.f32 %v1314_v16, %v4937_v45  ;;  %v5087_v16 = vld [vmem:[%s5567_s11 + $0x48] sm:$0xff] }
 0x95f   :  { %v1321_v37 = vmul.f32 %v3524_v23, %v1316_v18 }
 0x961   :  { %v4992_v39 = vadd.f32 %v3525_v27, %v1321_v37  ;;  %v5092_v37 = vld [vmem:[%s5567_s11 + $0x40] sm:$0xff] }
 0x963   :  { %3155 = vmatmul.msk.f32.gmra.mxu1 %vm527_vm0, %v4992_v39  ;;  %3175 = vmatmul.msk.f32.gmra.mxu2 %vm527_vm0, %v4992_v39 }
 0x96b   :  { %3164 = vmatmul.msk.f32.vlgmr.msrb.gmra.mxu1 %vm527_vm0, %v4984_v31 }
 0x973   :  { %3165 = vmatmul.msk.f32.gmra.mxu1 %vm527_vm0, %v4992_v39 }
 0x9d8   :  { %v5002_v22 = vpop.f32.mrf.mxu1 }
 0x9de   :  { %v1438_v24 = vpop.f32.mrf.mxu2 }
 0x9df   :  { %v1439_v50 = vadd.f32 %v3527_v36, %v1438_v24 }
 0x9e0   :  { %v5004_v34 = vpop.f32.mrf.mxu1 }
 0x9e6   :  { %v1441_v41 = vpop.f32.mrf.mxu2 }
 0x9e7   :  { %v1442_v43 = vadd.f32 %v3527_v36, %v1441_v41  ;;  %v5097_v36 = vld [vmem:[%s5567_s11 + $0x38] sm:$0xff] }
 0x9e8   :  { %v1401_v45 = vpop.f32.mrf.mxu1 }
 0x9e9   :  { %1539 = vmatpush.msra.mxu0 %v1442_v43  ;;  %v1402_v55 = vadd.f32 %v3528_v47, %v1401_v45  ;;  %v3623_v43 = vld [vmem:[%s5567_s11 + $0x30] sm:$0xff] }
 0x9eb   :  { %1540 = vmatpush.msra.mxu0 %v1439_v50  ;;  %v3624_v50 = vld [vmem:[%s5567_s11 + $0x28] sm:$0xff] }
 0x9ec   :  { %3192 = vmatmul.msk.f32.vlgmr.msra.gmra.mxu0 %vm627_vm1, %v3598_v51 }
 0x9f0   :  { %v1404_v52 = vpop.f32.mrf.mxu1 }
 0x9f1   :  { %v1405_v53 = vadd.f32 %v3528_v47, %v1404_v52  ;;  %v3625_v47 = vld [vmem:[%s5567_s11 + $0x20] sm:$0xff] }
 0x9f3   :  { %1458 = vmatpush.msra.mxu3 %v1405_v53  ;;  %v3626_v53 = vld [vmem:[%s5567_s11 + $0x18] sm:$0xff] }
 0x9f4   :  { %3193 = vmatmul.msk.f32.gmra.mxu0 %vm627_vm1, %v3599_v28 }
 0x9f5   :  { %1459 = vmatpush.msra.mxu3 %v1402_v55 }
 0x9f6   :  { %3176 = vmatmul.msk.f32.vlgmr.msra.gmra.mxu3 %vm627_vm1, %v3598_v51 }
 0x9fc   :  { %3194 = vmatmul.msk.f32.gmra.mxu0 %vm627_vm1, %v3600_v56 }
 0x9fe   :  { %3177 = vmatmul.msk.f32.gmra.mxu3 %vm627_vm1, %v3599_v28  ;;  %v3627_v28 = vld [vmem:[%s5567_s11 + $0x10] sm:$0xff] }
 0xa04   :  { %3195 = vmatmul.msk.f32.gmra.mxu0 %vm627_vm1, %v3601_v57 }
 0xa06   :  { %3178 = vmatmul.msk.f32.gmra.mxu3 %vm627_vm1, %v3600_v56 }
 0xa0c   :  { %3196 = vmatmul.msk.f32.gmra.mxu0 %vm627_vm1, %v3602_v58 }
 0xa0e   :  { %3179 = vmatmul.msk.f32.gmra.mxu3 %vm627_vm1, %v3601_v57  ;;  %v3628_v57 = vld [vmem:[%s5567_s11 + $0x8] sm:$0xff] }
 0xa14   :  { %3197 = vmatmul.msk.f32.gmra.mxu0 %vm627_vm1, %v3603_v59 }
 0xa16   :  { %3180 = vmatmul.msk.f32.gmra.mxu3 %vm627_vm1, %v3602_v58 }
 0xa1c   :  { %3198 = vmatmul.msk.f32.gmra.mxu0 %vm627_vm1, %v3604_v60 }
 0xa1e   :  { %3181 = vmatmul.msk.f32.gmra.mxu3 %vm627_vm1, %v3603_v59  ;;  %v3526_v59 = vld [vmem:[%s5568_s12 + $0x1] ss:$0 sm:$0xff] }
 0xa24   :  { %3199 = vmatmul.msk.f32.gmra.mxu0 %vm627_vm1, %v3605_v61 }
 0xa26   :  { %3182 = vmatmul.msk.f32.gmra.mxu3 %vm627_vm1, %v3604_v60  ;;  %v3629_v60 = vld [vmem:[%s5567_s11] sm:$0xff] }
 0xa2c   :  { %3200 = vmatmul.msk.f32.gmra.mxu0 %vm627_vm1, %v3606_v1 }
 0xa2e   :  { %3183 = vmatmul.msk.f32.gmra.mxu3 %vm627_vm1, %v3605_v61 }
 0xa34   :  { %3201 = vmatmul.msk.f32.gmra.mxu0 %vm627_vm1, %v3607_v2 }
 0xa36   :  { %3184 = vmatmul.msk.f32.gmra.mxu3 %vm627_vm1, %v3606_v1  ;;  %v1365_v1 = vadd.f32 %v3526_v59, %v5002_v22 }
 0xa3c   :  { %3202 = vmatmul.msk.f32.gmra.mxu0 %vm627_vm1, %v3608_v7 }
 0xa3e   :  { %3185 = vmatmul.msk.f32.gmra.mxu3 %vm627_vm1, %v3607_v2  ;;  %v1368_v2 = vadd.f32 %v3526_v59, %v5004_v34 }
 0xa44   :  { %3203 = vmatmul.msk.f32.gmra.mxu0 %vm627_vm1, %v3609_v12 }
 0xa46   :  { %3186 = vmatmul.msk.f32.gmra.mxu3 %vm627_vm1, %v3608_v7 }
 0xa4c   :  { %3204 = vmatmul.msk.f32.gmra.mxu0 %vm627_vm1, %v3610_v20 }
 0xa4e   :  { %3187 = vmatmul.msk.f32.gmra.mxu3 %vm627_vm1, %v3609_v12 }
 0xa54   :  { %3205 = vmatmul.msk.f32.gmra.mxu0 %vm627_vm1, %v3611_v26 }
 0xa56   :  { %3188 = vmatmul.msk.f32.gmra.mxu3 %vm627_vm1, %v3610_v20 }
 0xa5c   :  { %3206 = vmatmul.msk.f32.gmra.mxu0 %vm627_vm1, %v3612_v30 }
 0xa5e   :  { %3189 = vmatmul.msk.f32.gmra.mxu3 %vm627_vm1, %v3611_v26 }
 0xa64   :  { %3207 = vmatmul.msk.f32.gmra.mxu0 %vm627_vm1, %v3613_v33 }
 0xa66   :  { %3190 = vmatmul.msk.f32.gmra.mxu3 %vm627_vm1, %v3612_v30 }
 0xa69   :  { %v1542_v7 = vpop.f32.mrf.mxu0 }
 0xa6e   :  { %3191 = vmatmul.msk.f32.gmra.mxu3 %vm627_vm1, %v3613_v33 }
 0xa71   :  { %v1545_v12 = vpop.f32.mrf.mxu0 }
 0xa79   :  { %v5054_v35 = vpop.f32.mrf.mxu3  ;;  %v1548_v20 = vpop.f32.mrf.mxu0 }
 0xa7a   :  { %v1509_v61 = vmul.f32 %v3629_v60, %v5054_v35 }
 0xa81   :  { %v1464_v38 = vpop.f32.mrf.mxu3  ;;  %v1551_v26 = vpop.f32.mrf.mxu0 }
 0xa82   :  { %v1510_v58 = vmul.f32 %v3628_v57, %v1464_v38 }
 0xa89   :  { %v1467_v40 = vpop.f32.mrf.mxu3  ;;  %v1554_v30 = vpop.f32.mrf.mxu0 }
 0xa8a   :  { %v1511_v56 = vmul.f32 %v3627_v28, %v1467_v40 }
 0xa91   :  { %v1470_v42 = vpop.f32.mrf.mxu3  ;;  %v1557_v33 = vpop.f32.mrf.mxu0 }
 0xa92   :  { %v1512_v55 = vmul.f32 %v3626_v53, %v1470_v42 }
 0xa99   :  { %v1473_v63 = vpop.f32.mrf.mxu3  ;;  %v1560_v38 = vpop.f32.mrf.mxu0 }
 0xa9a   :  { %v1513_v52 = vmul.f32 %v3625_v47, %v1473_v63 }
 0xaa1   :  { %v1476_v44 = vpop.f32.mrf.mxu3  ;;  %v1563_v35 = vpop.f32.mrf.mxu0 }
 0xaa2   :  { %v1514_v51 = vmul.f32 %v3624_v50, %v1476_v44 }
 0xaa9   :  { %v1479_v46 = vpop.f32.mrf.mxu3  ;;  %v1566_v63 = vpop.f32.mrf.mxu0 }
 0xaaa   :  { %v1515_v45 = vmul.f32 %v3623_v43, %v1479_v46 }
 0xab1   :  { %v1482_v0 = vpop.f32.mrf.mxu3  ;;  %v1569_v22 = vpop.f32.mrf.mxu0 }
 0xab2   :  { %v1516_v41 = vmul.f32 %v5097_v36, %v1482_v0 }
 0xab9   :  { %v1485_v48 = vpop.f32.mrf.mxu3  ;;  %v1572_v44 = vpop.f32.mrf.mxu0 }
 0xaba   :  { %v1517_v24 = vmul.f32 %v5092_v37, %v1485_v48 }
 0xac1   :  { %v1488_v49 = vpop.f32.mrf.mxu3  ;;  %v1575_v46 = vpop.f32.mrf.mxu0 }
 0xac2   :  { %v1518_v18 = vmul.f32 %v5087_v16, %v1488_v49 }
 0xac9   :  { %v1491_v3 = vpop.f32.mrf.mxu3  ;;  %v1578_v0 = vpop.f32.mrf.mxu0 }
 0xaca   :  { %v1519_v15 = vmul.f32 %v5082_v13, %v1491_v3 }
 0xad1   :  { %v1494_v14 = vpop.f32.mrf.mxu3  ;;  %v1581_v34 = vpop.f32.mrf.mxu0 }
 0xad2   :  { %v1520_v29 = vmul.f32 %v5077_v11, %v1494_v14 }
 0xad9   :  { %v1497_v4 = vpop.f32.mrf.mxu3  ;;  %v1584_v48 = vpop.f32.mrf.mxu0 }
 0xada   :  { %v1521_v27 = vmul.f32 %v5072_v10, %v1497_v4  ;;  %v1604_v3 = vmul.f32 %v5062_v21, %v1584_v48  ;;  %v1603_v4 = vmul.f32 %v5067_v9, %v1581_v34 }
 0xae1   :  { %v1500_v5 = vpop.f32.mrf.mxu3  ;;  %v1587_v49 = vpop.f32.mrf.mxu0 }
 0xae2   :  { %v1522_v25 = vmul.f32 %v5067_v9, %v1500_v5  ;;  %v1605_v14 = vmul.f32 %v5057_v19, %v1587_v49  ;;  %v1602_v5 = vmul.f32 %v5072_v10, %v1578_v0  ;;  %v1595_v9 = vmul.f32 %v3624_v50, %v1557_v33  ;;  %v3631_v50 = vld [vmem:[#allocation7 + $0x8] sm:$0xff] }
 0xae3   :  { %v1593_v10 = vmul.f32 %v3626_v53, %v1551_v26 }
 0xae4   :  { %1748 = vmatpush.msrb.mxu2 %v1605_v14 }
 0xae6   :  { %1749 = vmatpush.msrb.mxu2 %v1604_v3 }
 0xae8   :  { %1750 = vmatpush.msrb.mxu2 %v1603_v4  ;;  %v3226_v4 = vld [vmem:[%s5570_s10 + $0x40] sm:$0xff] }
 0xae9   :  { %v1503_v17 = vpop.f32.mrf.mxu3 }
 0xaea   :  { %v1523_v23 = vmul.f32 %v5062_v21, %v1503_v17  ;;  %v1601_v17 = vmul.f32 %v5077_v11, %v1575_v46  ;;  %1751 = vmatpush.msrb.mxu2 %v1602_v5  ;;  %v1596_v21 = vmul.f32 %v3623_v43, %v1560_v38  ;;  %v1591_v11 = vmul.f32 %v3628_v57, %v1545_v12  ;;  %v3229_v57 = vld [vmem:[%s5570_s10 + $0x58] sm:$0xff] }
 0xaec   :  { %1752 = vmatpush.msrb.mxu2 %v1601_v17 }
 0xaf1   :  { %v1506_v6 = vpop.f32.mrf.mxu3 }
 0xaf2   :  { %v1524_v8 = vmul.f32 %v5057_v19, %v1506_v6  ;;  %v1600_v6 = vmul.f32 %v5082_v13, %v1572_v44  ;;  %v1597_v19 = vmul.f32 %v5097_v36, %v1563_v35 }
 0xaf4   :  { %3208 = vmatpush.xpose.msk.msra.mxu1 %vm527_vm0, %v1524_v8  ;;  %v1599_v8 = vmul.f32 %v5087_v16, %v1569_v22  ;;  %1753 = vmatpush.msrb.mxu2 %v1600_v6  ;;  %v3529_v6 = vld [vmem:[#allocation13 + $0x1] ss:$0 sm:$0xff] }
 0xaf6   :  { %1754 = vmatpush.msrb.mxu2 %v1599_v8 }
 0xaf8   :  { %3209 = vmatpush.xpose.msk.msra.mxu1 %vm527_vm0, %v1523_v23  ;;  %v1598_v23 = vmul.f32 %v5092_v37, %v1566_v63 }
 0xafa   :  { %1755 = vmatpush.msrb.mxu2 %v1598_v23 }
 0xafc   :  { %3210 = vmatpush.xpose.msk.msra.mxu1 %vm527_vm0, %v1522_v25  ;;  %1756 = vmatpush.msrb.mxu2 %v1597_v19  ;;  %v1594_v25 = vmul.f32 %v3625_v47, %v1554_v30  ;;  %v3233_v47 = vld [vmem:[%s5570_s10 + $0x78] sm:$0xff] }
 0xafe   :  { %1757 = vmatpush.msrb.mxu2 %v1596_v21 }
 0xb00   :  { %3211 = vmatpush.xpose.msk.msra.mxu1 %vm527_vm0, %v1521_v27  ;;  %1758 = vmatpush.msrb.mxu2 %v1595_v9  ;;  %v1592_v27 = vmul.f32 %v3627_v28, %v1548_v20 }
 0xb02   :  { %1759 = vmatpush.msrb.mxu2 %v1594_v25 }
 0xb04   :  { %3212 = vmatpush.xpose.msk.msra.mxu1 %vm527_vm0, %v1520_v29  ;;  %1760 = vmatpush.msrb.mxu2 %v1593_v10  ;;  %v1590_v29 = vmul.f32 %v3629_v60, %v1542_v7  ;;  %v3227_v60 = vld [vmem:[%s5570_s10 + $0x48] sm:$0xff] }
 0xb06   :  { %1761 = vmatpush.msrb.mxu2 %v1592_v27 }
 0xb08   :  { %3213 = vmatpush.xpose.msk.msra.mxu1 %vm527_vm0, %v1519_v15  ;;  %1762 = vmatpush.msrb.mxu2 %v1591_v11 }
 0xb0a   :  { %1763 = vmatpush.msrb.mxu2 %v1590_v29 }
 0xb0c   :  { %3214 = vmatpush.xpose.msk.msra.mxu1 %vm527_vm0, %v1518_v18 }
 0xb10   :  { %3215 = vmatpush.xpose.msk.msra.mxu1 %vm527_vm0, %v1517_v24 }
 0xb14   :  { %3216 = vmatpush.xpose.msk.msra.mxu1 %vm527_vm0, %v1516_v41  ;;  %v3630_v41 = vld [vmem:[#allocation7] sm:$0xff] }
 0xb18   :  { %3217 = vmatpush.xpose.msk.msra.mxu1 %vm527_vm0, %v1515_v45 }
 0xb1c   :  { %3218 = vmatpush.xpose.msk.msra.mxu1 %vm527_vm0, %v1514_v51 }
 0xb20   :  { %3219 = vmatpush.xpose.msk.msra.mxu1 %vm527_vm0, %v1513_v52  ;;  %v3232_v52 = vld [vmem:[%s5570_s10 + $0x70] sm:$0xff] }
 0xb24   :  { %3220 = vmatpush.xpose.msk.msra.mxu1 %vm527_vm0, %v1512_v55  ;;  %v3231_v55 = vld [vmem:[%s5570_s10 + $0x68] sm:$0xff] }
 0xb28   :  { %3221 = vmatpush.xpose.msk.msra.mxu1 %vm527_vm0, %v1511_v56  ;;  %v3230_v56 = vld [vmem:[%s5570_s10 + $0x60] sm:$0xff] }
 0xb2c   :  { %3222 = vmatpush.xpose.msk.msra.mxu1 %vm527_vm0, %v1510_v58  ;;  %v3228_v58 = vld [vmem:[%s5570_s10 + $0x50] sm:$0xff] }
 0xb30   :  { %3223 = vmatpush.xpose.msk.msra.mxu1 %vm527_vm0, %v1509_v61 }
 0xb33   :  { %3224 = vmatmul.msk.f32.vlgmr.msra.gmra.mxu1 %vm527_vm0, %v1365_v1 }
 0xb34   :  { %1799 = vmatpush.msrb.mxu1 %v3233_v47  ;;  %v3244_v47 = vld [vmem:[%s5571_s15 + $0xc0] sm:$0xff] }
 0xb36   :  { %1800 = vmatpush.msrb.mxu1 %v3232_v52  ;;  %v3245_v52 = vld [vmem:[%s5571_s15 + $0xc8] sm:$0xff] }
 0xb38   :  { %1801 = vmatpush.msrb.mxu1 %v3231_v55  ;;  %v3243_v55 = vld [vmem:[%s5571_s15 + $0xb8] sm:$0xff] }
 0xb3a   :  { %1802 = vmatpush.msrb.mxu1 %v3230_v56  ;;  %v3241_v56 = vld [vmem:[%s5571_s15 + $0xa8] sm:$0xff] }
 0xb3b   :  { %3225 = vmatmul.msk.f32.gmra.mxu1 %vm527_vm0, %v1368_v2 }
 0xb3c   :  { %1803 = vmatpush.msrb.mxu1 %v3229_v57  ;;  %v3238_v57 = vld [vmem:[%s5571_s15 + $0x90] sm:$0xff] }
 0xb3e   :  { %1804 = vmatpush.msrb.mxu1 %v3228_v58  ;;  %v3239_v58 = vld [vmem:[%s5571_s15 + $0x98] sm:$0xff] }
 0xb40   :  { %1805 = vmatpush.msrb.mxu1 %v3227_v60  ;;  %v3237_v60 = vld [vmem:[%s5571_s15 + $0x88] sm:$0xff] }
 0xb42   :  { %1806 = vmatpush.msrb.mxu1 %v3226_v4  ;;  %v3265_v4 = vld [vmem:[%s5572_s18 + $0x148] sm:$0xff] }
 0xbb0   :  { %v1677_v40 = vpop.f32.mrf.mxu1 }
 0xbb1   :  { %1683 = vmax.xlane.f32.xlu2 %v1677_v40 }
 0xbb8   :  { %v1680_v42 = vpop.f32.mrf.mxu1 }
 0xbb9   :  { %1685 = vmax.xlane.f32.xlu1 %v1680_v42 }
 0xc24   :  { %v1684_v13 = vpop.xlane.xlu2 %1683 }
 0xc25   :  { %v1687_v15 = vsub.f32 %v1677_v40, %v1684_v13 }
 0xc27   :  { %v1689_v16 = vmul.f32 1.442695, %v1687_v15 }
 0xc29   :  { %3566 = vpow2.f32 %v1689_v16 }
 0xc2c   :  { %v1686_v18 = vpop.xlane.xlu1 %1685 }
 0xc2d   :  { %v1688_v37 = vsub.f32 %v1680_v42, %v1686_v18 }
 0xc2f   :  { %v3567_v24 = vpop.eup %3566  ;;  %v1691_v36 = vmul.f32 1.442695, %v1688_v37 }
 0xc30   :  { %v1693_v43 = vmul.f32 %v3630_v41, %v3567_v24  ;;  %v3251_v41 = vld [vmem:[%s5571_s15 + $0xf8] sm:$0xff] }
 0xc31   :  { %3568 = vpow2.f32 %v1691_v36  ;;  %v3250_v36 = vld [vmem:[%s5571_s15 + $0xf0] sm:$0xff]  ;;  %1935 = vmatpush.msra.mxu1 %v3251_v41 }
 0xc32   :  { %1711 = vmatmul.f32.vlgmr.msra.gmra.mxu2 %v1693_v43 }
 0xc33   :  { %1912 = vmatpush.msra.mxu2 %v3250_v36 }
 0xc37   :  { %v3569_v45 = vpop.eup %3568 }
 0xc38   :  { %v1694_v51 = vmul.f32 %v3631_v50, %v3569_v45  ;;  %v3249_v45 = vld [vmem:[%s5571_s15 + $0xe8] sm:$0xff]  ;;  %v3246_v50 = vld [vmem:[%s5571_s15 + $0xd0] sm:$0xff] }
 0xc39   :  { %1936 = vmatpush.msra.mxu1 %v3249_v45 }
 0xc3a   :  { %1714 = vmatmul.f32.gmra.mxu2 %v1694_v51 }
 0xcb5   :  { %v1712_v53 = vpop.f32.mrf.mxu2 }
 0xcb6   :  { %v1713_v28 = vadd.f32 %v1712_v53, %v4838_v54  ;;  %v3242_v53 = vld [vmem:[%s5571_s15 + $0xb0] sm:$0xff] }
 0xcb8   :  { %3570 = vrcp.f32 %v1713_v28  ;;  %v1729_v12 = vand.u32 2147483648, %v1713_v28  ;;  %v1727_v26 = vand.u32 2147483647, %v1713_v28  ;;  %vm1723_vm10 = vweird.f32 %v1713_v28 }
 0xcba   :  { %v1730_v38 = vor.u32 1.1754944e-38, %v1729_v12  ;;  %vm1728_vm12 = vcmp.eq.f32.partialorder %v1727_v26, 8.507059e+37  ;;  %v3286_v12 = vld [vmem:[%s5572_s18 + $0x1f0] sm:$0xff] }
 0xcbb   :  { %v3270_v26 = vld [vmem:[%s5572_s18 + $0x170] sm:$0xff] }
 0xcbd   :  { %v1715_v59 = vpop.f32.mrf.mxu2 }
 0xcbe   :  { %v3571_v61 = vpop.eup %3570  ;;  %v1716_v1 = vadd.f32 %v1715_v59, %v4846_v62  ;;  %v3236_v59 = vld [vmem:[%s5571_s15 + $0x80] sm:$0xff] }
 0xcbf   :  { %v1719_v2 = vmul.f32 %v3571_v61, %v1713_v28  ;;  %vm1724_vm9 = vweird.f32 %v3571_v61  ;;  %v3240_v28 = vld [vmem:[%s5571_s15 + $0xa0] sm:$0xff] }
 0xcc0   :  { %3572 = vrcp.f32 %v1716_v1  ;;  %vm1725_vm11 = vmor %vm1723_vm10, %vm1724_vm9  ;;  %v1744_v44 = vand.u32 2147483648, %v1716_v1  ;;  %v1742_v0 = vand.u32 2147483647, %v1716_v1  ;;  %vm1738_vm14 = vweird.f32 %v1716_v1 }
 0xcc1   :  { %v1720_v7 = vsub.f32 1.0, %v1719_v2 }
 0xcc2   :  { %v1745_v48 = vor.u32 1.1754944e-38, %v1744_v44  ;;  %vm1743_vm2 = vcmp.eq.f32.partialorder %v1742_v0, 8.507059e+37  ;;  %v3283_v44 = vld [vmem:[%s5572_s18 + $0x1d8] sm:$0xff] }
 0xcc3   :  { %v1721_v20 = vmul.f32 %v3571_v61, %v1720_v7  ;;  %v3287_v7 = vld [vmem:[%s5572_s18 + $0x1f8] sm:$0xff] }
 0xcc4   :  { %v3267_v0 = vld [vmem:[%s5572_s18 + $0x158] sm:$0xff] }
 0xcc5   :  { %v1722_v30 = vadd.f32 %v3571_v61, %v1721_v20  ;;  %v3271_v20 = vld [vmem:[%s5572_s18 + $0x178] sm:$0xff] }
 0xcc6   :  { %v3573_v33 = vpop.eup %3572 }
 0xcc7   :  { %v1726_v40 = vsel %vm1725_vm11, %v3571_v61, %v1722_v30  ;;  %v1734_v35 = vmul.f32 %v3573_v33, %v1716_v1  ;;  %vm1739_vm13 = vweird.f32 %v3573_v33  ;;  %v3285_v30 = vld [vmem:[%s5572_s18 + $0x1e8] sm:$0xff] }
 0xcc8   :  { %v1731_v42 = vsel %vm1728_vm12, %v1730_v38, %v1726_v40  ;;  %vm1740_vm15 = vmor %vm1738_vm14, %vm1739_vm13  ;;  %v3269_v38 = vld [vmem:[%s5572_s18 + $0x168] sm:$0xff] }
 0xcc9   :  { %v1732_v63 = vmul.f32 %v1731_v42, %v1693_v43  ;;  %v1735_v22 = vsub.f32 1.0, %v1734_v35  ;;  %v3248_v43 = vld [vmem:[%s5571_s15 + $0xe0] sm:$0xff] }
 0xcca   :  { %1913 = vmatpush.msra.mxu2 %v3248_v43  ;;  %v3284_v35 = vld [vmem:[%s5572_s18 + $0x1e0] sm:$0xff]  ;;  %v3275_v43 = vld [vmem:[%s5572_s18 + $0x198] sm:$0xff] }
 0xccb   :  { %1764 = vmatmul.f32.vlgmr.msrb.gmra.mxu2 %v1732_v63  ;;  %v1736_v46 = vmul.f32 %v3573_v33, %v1735_v22  ;;  %v3268_v42 = vld [vmem:[%s5572_s18 + $0x160] sm:$0xff] }
 0xccc   :  { %1914 = vmatpush.msra.mxu2 %v3246_v50 }
 0xccd   :  { %v1737_v34 = vadd.f32 %v3573_v33, %v1736_v46 }
 0xcce   :  { %1915 = vmatpush.msra.mxu2 %v3244_v47 }
 0xccf   :  { %v1741_v49 = vsel %vm1740_vm15, %v3573_v33, %v1737_v34  ;;  %v3282_v34 = vld [vmem:[%s5572_s18 + $0x1d0] sm:$0xff] }
 0xcd0   :  { %v1746_v3 = vsel %vm1743_vm2, %v1745_v48, %v1741_v49  ;;  %1916 = vmatpush.msra.mxu2 %v3242_v53  ;;  %v3266_v49 = vld [vmem:[%s5572_s18 + $0x150] sm:$0xff] }
 0xcd1   :  { %v1747_v14 = vmul.f32 %v1746_v3, %v1694_v51  ;;  %v3247_v51 = vld [vmem:[%s5571_s15 + $0xd8] sm:$0xff]  ;;  %v3281_v3 = vld [vmem:[%s5572_s18 + $0x1c8] sm:$0xff]  ;;  %v3274_v53 = vld [vmem:[%s5572_s18 + $0x190] sm:$0xff] }
 0xcd2   :  { %1937 = vmatpush.msra.mxu1 %v3247_v51  ;;  %1917 = vmatpush.msra.mxu2 %v3240_v28  ;;  %v3273_v28 = vld [vmem:[%s5572_s18 + $0x188] sm:$0xff] }
 0xcd3   :  { %1767 = vmatmul.f32.gmra.mxu2 %v1747_v14 }
 0xcd4   :  { %1938 = vmatpush.msra.mxu1 %v3245_v52  ;;  %1918 = vmatpush.msra.mxu2 %v3238_v57  ;;  %v3261_v52 = vld [vmem:[%s5572_s18 + $0x128] sm:$0xff]  ;;  %v3272_v57 = vld [vmem:[%s5572_s18 + $0x180] sm:$0xff] }
 0xcd6   :  { %1939 = vmatpush.msra.mxu1 %v3243_v55  ;;  %1919 = vmatpush.msra.mxu2 %v3236_v59  ;;  %v3260_v55 = vld [vmem:[%s5572_s18 + $0x120] sm:$0xff] }
 0xcd7   :  { %v3256_v59 = vld [vmem:[%s5572_s18 + $0x100] sm:$0xff] }
 0xcd8   :  { %1940 = vmatpush.msra.mxu1 %v3241_v56  ;;  %1992 = vmatpush.msrb.mxu2 %v3271_v20  ;;  %v3259_v56 = vld [vmem:[%s5572_s18 + $0x118] sm:$0xff] }
 0xcda   :  { %1941 = vmatpush.msra.mxu1 %v3239_v58  ;;  %1993 = vmatpush.msrb.mxu2 %v3270_v26  ;;  %v3257_v58 = vld [vmem:[%s5572_s18 + $0x108] sm:$0xff] }
 0xcdc   :  { %1942 = vmatpush.msra.mxu1 %v3237_v60  ;;  %1994 = vmatpush.msrb.mxu2 %v3269_v38  ;;  %v1892_v60 = vld [vmem:[#allocation17 + $0x2] sm:$0x3] }
 0xcde   :  { %1995 = vmatpush.msrb.mxu2 %v3268_v42 }
 0xce0   :  { %1996 = vmatpush.msrb.mxu2 %v3267_v0 }
 0xce2   :  { %1997 = vmatpush.msrb.mxu2 %v3266_v49 }
 0xce4   :  { %1998 = vmatpush.msrb.mxu2 %v3265_v4 }
 0xd4e   :  { %v1765_v5 = vpop.f32.mrf.mxu2 }
 0xd4f   :  { %3234 = vmatmul.msk.f32.vlgmr.msrb.gmra.mxu1 %vm527_vm0, %v1765_v5  ;;  %v3280_v5 = vld [vmem:[%s5572_s18 + $0x1c0] sm:$0xff] }
 0xd50   :  { %2015 = vmatpush.msrb.mxu1 %v3287_v7 }
 0xd52   :  { %2016 = vmatpush.msrb.mxu1 %v3286_v12  ;;  %v1894_v12 = vperm.slane %v1892_v60, 0 }
 0xd54   :  { %2017 = vmatpush.msrb.mxu1 %v3285_v30 }
 0xd56   :  { %v1768_v17 = vpop.f32.mrf.mxu2  ;;  %2018 = vmatpush.msrb.mxu1 %v3284_v35 }
 0xd57   :  { %3235 = vmatmul.msk.f32.gmra.mxu1 %vm527_vm0, %v1768_v17 }
 0xd58   :  { %2019 = vmatpush.msrb.mxu1 %v3283_v44 }
 0xd5a   :  { %2020 = vmatpush.msrb.mxu1 %v3282_v34 }
 0xd5c   :  { %2021 = vmatpush.msrb.mxu1 %v3281_v3 }
 0xd5e   :  { %2022 = vmatpush.msrb.mxu1 %v3280_v5 }
 0xdcc   :  { %v1808_v8 = vpop.f32.mrf.mxu1 }
 0xdcd   :  { %v1809_v23 = vadd.f32 %v3529_v6, %v1808_v8 }
 0xdcf   :  { %v1814_v19 = vadd.f32 %v1809_v23, %v4984_v31  ;;  %v3279_v23 = vld [vmem:[%s5572_s18 + $0x1b8] sm:$0xff] }
 0xdd0   :  { %2023 = vmatpush.msrb.mxu1 %v3279_v23  ;;  %v3305_v23 = vld [vmem:[%s5564_s7 + $0xb0] sm:$0xff] }
 0xdd1   :  { %v1820_v21 = vsel %vm527_vm0, %v1814_v19, 0.0 }
 0xdd2   :  { %1821 = vadd.xlane.f32.xlu2 %v1820_v21 }
 0xdd4   :  { %v1811_v9 = vpop.f32.mrf.mxu1 }
 0xdd5   :  { %v1812_v25 = vadd.f32 %v3529_v6, %v1811_v9  ;;  %v3264_v6 = vld [vmem:[%s5572_s18 + $0x140] sm:$0xff]  ;;  %v3263_v9 = vld [vmem:[%s5572_s18 + $0x138] sm:$0xff] }
 0xdd6   :  { %1999 = vmatpush.msrb.mxu2 %v3264_v6 }
 0xdd7   :  { %v1815_v10 = vadd.f32 %v1812_v25, %v4992_v39  ;;  %v3530_v25 = vld [vmem:[#allocation14 + $0x1] ss:$0 sm:$0xff] }
 0xdd8   :  { %2000 = vmatpush.msrb.mxu2 %v3263_v9  ;;  %v3302_v9 = vld [vmem:[%s5564_s7 + $0x98] sm:$0xff] }
 0xdd9   :  { %v1823_v27 = vsel %vm527_vm0, %v1815_v10, 0.0 }
 0xdda   :  { %1824 = vadd.xlane.f32.xlu1 %v1823_v27 }
 0xe45   :  { %v1822_v11 = vpop.xlane.xlu2 %1821 }
 0xe46   :  { %v1826_v29 = vmul.f32 %v1822_v11, %v4858_v32 }
 0xe48   :  { %v5147_v13 = vsub.f32 %v1814_v19, %v1826_v29  ;;  %v3262_v29 = vld [vmem:[%s5572_s18 + $0x130] sm:$0xff] }
 0xe49   :  { %2001 = vmatpush.msrb.mxu2 %v3262_v29 }
 0xe4a   :  { %v1830_v31 = vmul.f32 %v5147_v13, %v5147_v13 }
 0xe4b   :  { %2002 = vmatpush.msrb.mxu2 %v3261_v52  ;;  %v3291_v52 = vld [vmem:[%s5563_s30 + $0x98] sm:$0xff] }
 0xe4c   :  { %v1832_v15 = vsel %vm527_vm0, %v1830_v31, 0.0 }
 0xe4d   :  { %1833 = vadd.xlane.f32.xlu2 %v1832_v15  ;;  %v1825_v39 = vpop.xlane.xlu1 %1824  ;;  %v3531_v15 = vld [vmem:[#allocation16 + $0x1] ss:$0 sm:$0xff]  ;;  %2003 = vmatpush.msrb.mxu2 %v3260_v55 }
 0xe4e   :  { %v1827_v16 = vmul.f32 %v1825_v39, %v4858_v32  ;;  %v3277_v39 = vld [vmem:[%s5572_s18 + $0x1a8] sm:$0xff]  ;;  %v3290_v55 = vld [vmem:[%s5563_s30 + $0x90] sm:$0xff] }
 0xe4f   :  { %2004 = vmatpush.msrb.mxu2 %v3259_v56  ;;  %v3300_v56 = vld [vmem:[%s5564_s7 + $0x88] sm:$0xff] }
 0xe50   :  { %v5153_v18 = vsub.f32 %v1815_v10, %v1827_v16  ;;  %v3278_v10 = vld [vmem:[%s5572_s18 + $0x1b0] sm:$0xff] }
 0xe51   :  { %2024 = vmatpush.msrb.mxu1 %v3278_v10 }
 0xe52   :  { %v1831_v37 = vmul.f32 %v5153_v18, %v5153_v18 }
 0xe53   :  { %2025 = vmatpush.msrb.mxu1 %v3277_v39 }
 0xe54   :  { %v1835_v24 = vsel %vm527_vm0, %v1831_v37, 0.0 }
 0xe55   :  { %1836 = vadd.xlane.f32.xlu1 %v1835_v24  ;;  %v3276_v24 = vld [vmem:[%s5572_s18 + $0x1a0] sm:$0xff] }
 0xe56   :  { %2026 = vmatpush.msrb.mxu1 %v3276_v24 }
 0xe58   :  { %2027 = vmatpush.msrb.mxu1 %v3275_v43  ;;  %v3294_v43 = vld [vmem:[%s5563_s30 + $0xb0] sm:$0xff] }
 0xe5a   :  { %2028 = vmatpush.msrb.mxu1 %v3274_v53  ;;  %v3312_v53 = vld [vmem:[%s5565_s3 + $0x98] sm:$0xff] }
 0xe5c   :  { %2029 = vmatpush.msrb.mxu1 %v3273_v28  ;;  %v3311_v28 = vld [vmem:[%s5565_s3 + $0x90] sm:$0xff] }
 0xe5e   :  { %2030 = vmatpush.msrb.mxu1 %v3272_v57  ;;  %v3289_v57 = vld [vmem:[%s5563_s30 + $0x88] sm:$0xff] }
 0xec0   :  { %v1834_v61 = vpop.xlane.xlu2 %1833 }
 0xec1   :  { %v1838_v1 = vmul.f32 %v1834_v61, %v4858_v32  ;;  %v1895_v61 = vperm.slane %v1892_v60, 1  ;;  %v3309_v60 = vld [vmem:[%s5565_s3 + $0x80] sm:$0xff] }
 0xec3   :  { %v1840_v2 = vadd.f32 1e-05, %v1838_v1 }
 0xec5   :  { %3574 = vrsqrt.f32 %v1840_v2  ;;  %vm1848_vm4 = vweird.f32 %v1840_v2 }
 0xec8   :  { %v1837_v33 = vpop.xlane.xlu1 %1836 }
 0xec9   :  { %v1839_v40 = vmul.f32 %v1837_v33, %v4858_v32 }
 0xecb   :  { %v3575_v63 = vpop.eup %3574  ;;  %v1841_v22 = vadd.f32 1e-05, %v1839_v40 }
 0xecc   :  { %v1843_v46 = vmul.f32 %v3575_v63, %v1840_v2  ;;  %vm1849_vm3 = vweird.f32 %v3575_v63 }
 0xecd   :  { %3576 = vrsqrt.f32 %v1841_v22  ;;  %vm1850_vm5 = vmor %vm1848_vm4, %vm1849_vm3  ;;  %vm1858_vm7 = vweird.f32 %v1841_v22 }
 0xece   :  { %v1844_v48 = vmul.f32 %v3575_v63, %v1843_v46 }
 0xed0   :  { %v1845_v14 = vmul.f32 0.5, %v1844_v48 }
 0xed2   :  { %v1846_v17 = vsub.f32 1.5, %v1845_v14 }
 0xed3   :  { %v3577_v8 = vpop.eup %3576 }
 0xed4   :  { %v1847_v19 = vmul.f32 %v3575_v63, %v1846_v17  ;;  %v1853_v21 = vmul.f32 %v3577_v8, %v1841_v22  ;;  %vm1859_vm6 = vweird.f32 %v3577_v8  ;;  %v3532_v22 = vld [vmem:[#allocation19 + $0x1] ss:$0 sm:$0xff] }
 0xed5   :  { %vm1860_vm8 = vmor %vm1858_vm7, %vm1859_vm6 }
 0xed6   :  { %v1851_v27 = vsel %vm1850_vm5, %v3575_v63, %v1847_v19  ;;  %v1854_v11 = vmul.f32 %v3577_v8, %v1853_v21  ;;  %v3304_v19 = vld [vmem:[%s5564_s7 + $0xa8] sm:$0xff]  ;;  %v3303_v21 = vld [vmem:[%s5564_s7 + $0xa0] sm:$0xff] }
 0xed7   :  { %v1862_v31 = vmul.f32 %v1851_v27, %v5147_v13 }
 0xed8   :  { %v1855_v16 = vmul.f32 0.5, %v1854_v11 }
 0xed9   :  { %v1867_v37 = vmul.f32 %v3530_v25, %v1862_v31 }
 0xeda   :  { %v1856_v36 = vsub.f32 1.5, %v1855_v16 }
 0xedb   :  { %v1872_v41 = vadd.f32 %v3531_v15, %v1867_v37 }
 0xedc   :  { %v1857_v45 = vmul.f32 %v3577_v8, %v1856_v36  ;;  %v3295_v36 = vld [vmem:[%s5563_s30 + $0xb8] sm:$0xff] }
 0xedd   :  { %3252 = vmatmul.msk.f32.vlgmr.msra.gmra.mxu2 %vm527_vm0, %v1872_v41  ;;  %3254 = vmatmul.msk.f32.vlgmr.msra.gmra.mxu1 %vm527_vm0, %v1872_v41 }
 0xede   :  { %v1861_v13 = vsel %vm1860_vm8, %v3577_v8, %v1857_v45  ;;  %v3306_v8 = vld [vmem:[%s5564_s7 + $0xb8] sm:$0xff]  ;;  %v3315_v45 = vld [vmem:[%s5565_s3 + $0xb0] sm:$0xff] }
 0xedf   :  { %v1863_v50 = vmul.f32 %v1861_v13, %v5153_v18  ;;  %v3258_v18 = vld [vmem:[%s5572_s18 + $0x110] sm:$0xff]  ;;  %2163 = vmatpush.msrb.mxu3 %v3306_v8  ;;  %v3293_v13 = vld [vmem:[%s5563_s30 + $0xa8] sm:$0xff] }
 0xee0   :  { %2005 = vmatpush.msrb.mxu2 %v3258_v18  ;;  %v3310_v18 = vld [vmem:[%s5565_s3 + $0x88] sm:$0xff] }
 0xee1   :  { %v1868_v51 = vmul.f32 %v3530_v25, %v1863_v50  ;;  %2164 = vmatpush.msrb.mxu3 %v3305_v23  ;;  %v3301_v25 = vld [vmem:[%s5564_s7 + $0x90] sm:$0xff]  ;;  %v3314_v50 = vld [vmem:[%s5565_s3 + $0xa8] sm:$0xff] }
 0xee2   :  { %2006 = vmatpush.msrb.mxu2 %v3257_v58  ;;  %v3299_v58 = vld [vmem:[%s5564_s7 + $0x80] sm:$0xff] }
 0xee3   :  { %v1873_v47 = vadd.f32 %v3531_v15, %v1868_v51  ;;  %2165 = vmatpush.msrb.mxu3 %v3304_v19  ;;  %v3292_v51 = vld [vmem:[%s5563_s30 + $0xa0] sm:$0xff] }
 0xee4   :  { %2007 = vmatpush.msrb.mxu2 %v3256_v59  ;;  %v3288_v59 = vld [vmem:[%s5563_s30 + $0x80] sm:$0xff] }
 0xee5   :  { %3253 = vmatmul.msk.f32.gmra.mxu2 %vm527_vm0, %v1873_v47  ;;  %3255 = vmatmul.msk.f32.gmra.mxu1 %vm527_vm0, %v1873_v47 }
 0xee6   :  { %2166 = vmatpush.msrb.mxu3 %v3303_v21  ;;  %2126 = vmatpush.msra.mxu2 %v3295_v36  ;;  %v3534_v21 = vld [vmem:[#allocation22 + $0x1] ss:$0 sm:$0xff] }
 0xee8   :  { %2167 = vmatpush.msrb.mxu3 %v3302_v9  ;;  %2127 = vmatpush.msra.mxu2 %v3294_v43  ;;  %v3644_v9 = vld [vmem:[%s5569_s24 + $0x18] sm:$0xff] }
 0xeea   :  { %2168 = vmatpush.msrb.mxu3 %v3301_v25  ;;  %2128 = vmatpush.msra.mxu2 %v3293_v13  ;;  %v3535_v13 = vld [vmem:[#allocation11 + $0x2] ss:$0 sm:$0xff] }
 0xeec   :  { %2129 = vmatpush.msra.mxu2 %v3292_v51  ;;  %2169 = vmatpush.msrb.mxu3 %v3300_v56  ;;  %v3649_v56 = vld [vmem:[%s5566_s21 + $0x8] sm:$0xff] }
 0xeee   :  { %2130 = vmatpush.msra.mxu2 %v3291_v52  ;;  %2170 = vmatpush.msrb.mxu3 %v3299_v58  ;;  %v3652_v58 = vld [vmem:[%s5566_s21 + $0x20] sm:$0xff] }
 0xef0   :  { %2131 = vmatpush.msra.mxu2 %v3290_v55  ;;  %v3648_v55 = vld [vmem:[%s5566_s21] sm:$0xff] }
 0xef2   :  { %2132 = vmatpush.msra.mxu2 %v3289_v57  ;;  %v3650_v57 = vld [vmem:[%s5566_s21 + $0x10] sm:$0xff] }
 0xef4   :  { %2133 = vmatpush.msra.mxu2 %v3288_v59  ;;  %v3653_v59 = vld [vmem:[%s5566_s21 + $0x28] sm:$0xff] }
 0xf5a   :  { %v1944_v1 = vpop.f32.mrf.mxu1 }
 0xf5b   :  { %v1945_v2 = vadd.f32 %v1944_v1, %v1895_v61 }
 0xf5d   :  { %v1951_v7 = vmax.f32 %v1945_v2, 0.0 }
 0xf5f   :  { %2031 = vmatmul.f32.vlgmr.msrb.gmra.mxu1 %v1951_v7  ;;  %v3633_v7 = vld [vmem:[%s5569_s24 + $0x70] sm:$0xff] }
 0xf60   :  { %v1921_v20 = vpop.f32.mrf.mxu2 }
 0xf61   :  { %v1922_v26 = vadd.f32 %v1921_v20, %v1894_v12  ;;  %v3634_v20 = vld [vmem:[%s5569_s24 + $0x68] sm:$0xff] }
 0xf62   :  { %v1947_v30 = vpop.f32.mrf.mxu1 }
 0xf63   :  { %v1950_v33 = vmax.f32 %v1922_v26, 0.0  ;;  %v1948_v38 = vadd.f32 %v1947_v30, %v1895_v61  ;;  %v3632_v61 = vld [vmem:[%s5569_s24 + $0x78] sm:$0xff]  ;;  %v3635_v26 = vld [vmem:[%s5569_s24 + $0x60] sm:$0xff] }
 0xf64   :  { %v3636_v30 = vld [vmem:[%s5569_s24 + $0x58] sm:$0xff] }
 0xf65   :  { %v1953_v40 = vmax.f32 %v1948_v38, 0.0  ;;  %2008 = vmatmul.f32.vlgmr.msrb.gmra.mxu2 %v1950_v33 }
 0xf67   :  { %2034 = vmatmul.f32.gmra.mxu1 %v1953_v40  ;;  %v3637_v40 = vld [vmem:[%s5569_s24 + $0x50] sm:$0xff] }
 0xf68   :  { %v1924_v35 = vpop.f32.mrf.mxu2 }
 0xf69   :  { %v1925_v42 = vadd.f32 %v1924_v35, %v1894_v12 }
 0xf6b   :  { %v1952_v63 = vmax.f32 %v1925_v42, 0.0 }
 0xf6d   :  { %2011 = vmatmul.f32.gmra.mxu2 %v1952_v63  ;;  %v3638_v63 = vld [vmem:[%s5569_s24 + $0x48] sm:$0xff] }
 0xfdc   :  { %v2032_v44 = vpop.f32.mrf.mxu1 }
 0xfe4   :  { %v2035_v4 = vpop.f32.mrf.mxu1 }
 0xfe8   :  { %v2009_v46 = vpop.f32.mrf.mxu2 }
 0xfe9   :  { %v2010_v0 = vadd.f32 %v3532_v22, %v2009_v46 }
 0xfeb   :  { %v2033_v34 = vadd.f32 %v2032_v44, %v2010_v0  ;;  %v3639_v44 = vld [vmem:[%s5569_s24 + $0x40] sm:$0xff]  ;;  %v3640_v0 = vld [vmem:[%s5569_s24 + $0x38] sm:$0xff] }
 0xfed   :  { %v2038_v48 = vadd.f32 %v2033_v34, %v1872_v41  ;;  %v3316_v41 = vld [vmem:[%s5565_s3 + $0xb8] sm:$0xff] }
 0xfee   :  { %2200 = vmatpush.msrb.mxu0 %v3316_v41 }
 0xfef   :  { %v2044_v49 = vsel %vm527_vm0, %v2038_v48, 0.0 }
 0xff0   :  { %2045 = vadd.xlane.f32.xlu2 %v2044_v49  ;;  %v2012_v3 = vpop.f32.mrf.mxu2  ;;  %2201 = vmatpush.msrb.mxu0 %v3315_v45 }
 0xff1   :  { %v2013_v14 = vadd.f32 %v3532_v22, %v2012_v3 }
 0xff2   :  { %2202 = vmatpush.msrb.mxu0 %v3314_v50 }
 0xff3   :  { %v2036_v5 = vadd.f32 %v2035_v4, %v2013_v14  ;;  %v3642_v14 = vld [vmem:[%s5569_s24 + $0x28] sm:$0xff] }
 0xff5   :  { %v2039_v17 = vadd.f32 %v2036_v5, %v1873_v47  ;;  %v3313_v47 = vld [vmem:[%s5565_s3 + $0xa0] sm:$0xff] }
 0xff6   :  { %2203 = vmatpush.msrb.mxu0 %v3313_v47  ;;  %v3537_v47 = vld [vmem:[#allocation10 + $0x2] ss:$0 sm:$0xff] }
 0xff7   :  { %v2047_v6 = vsel %vm527_vm0, %v2039_v17, 0.0 }
 0xff8   :  { %2048 = vadd.xlane.f32.xlu0 %v2047_v6  ;;  %2204 = vmatpush.msrb.mxu0 %v3312_v53  ;;  %v3643_v6 = vld [vmem:[%s5569_s24 + $0x20] sm:$0xff] }
 0xffa   :  { %2205 = vmatpush.msrb.mxu0 %v3311_v28 }
 0xffc   :  { %2206 = vmatpush.msrb.mxu0 %v3310_v18  ;;  %v3651_v18 = vld [vmem:[%s5566_s21 + $0x18] sm:$0xff] }
 0xffe   :  { %2207 = vmatpush.msrb.mxu0 %v3309_v60  ;;  %v3654_v60 = vld [vmem:[%s5566_s21 + $0x30] sm:$0xff] }
0x1000   :  { %2466 = vmatpush.msra.mxu0 %v3632_v61  ;;  %v3655_v61 = vld [vmem:[%s5566_s21 + $0x38] sm:$0xff] }
0x1002   :  { %2467 = vmatpush.msra.mxu0 %v3633_v7  ;;  %v3658_v7 = vld [vmem:[%s5566_s21 + $0x50] sm:$0xff] }
0x1004   :  { %2468 = vmatpush.msra.mxu0 %v3634_v20  ;;  %v3660_v20 = vld [vmem:[%s5566_s21 + $0x60] sm:$0xff] }
0x1006   :  { %2469 = vmatpush.msra.mxu0 %v3635_v26  ;;  %v3661_v26 = vld [vmem:[%s5566_s21 + $0x68] sm:$0xff] }
0x1008   :  { %2470 = vmatpush.msra.mxu0 %v3636_v30  ;;  %v3662_v30 = vld [vmem:[%s5566_s21 + $0x70] sm:$0xff] }
0x100a   :  { %2471 = vmatpush.msra.mxu0 %v3637_v40 }
0x100c   :  { %2472 = vmatpush.msra.mxu0 %v3638_v63 }
0x100e   :  { %2473 = vmatpush.msra.mxu0 %v3639_v44 }
0x1010   :  { %2474 = vmatpush.msra.mxu0 %v3640_v0 }
0x1063   :  { %v2046_v10 = vpop.xlane.xlu2 %2045 }
0x1064   :  { %v2050_v27 = vmul.f32 %v2046_v10, %v4858_v32 }
0x1066   :  { %v5223_v11 = vsub.f32 %v2038_v48, %v2050_v27  ;;  %v3641_v48 = vld [vmem:[%s5569_s24 + $0x30] sm:$0xff] }
0x1067   :  { %2475 = vmatpush.msra.mxu0 %v3641_v48  ;;  %v3645_v27 = vld [vmem:[%s5569_s24 + $0x10] sm:$0xff] }
0x1068   :  { %v2054_v29 = vmul.f32 %v5223_v11, %v5223_v11 }
0x1069   :  { %2476 = vmatpush.msra.mxu0 %v3642_v14 }
0x106a   :  { %v2056_v31 = vsel %vm527_vm0, %v2054_v29, 0.0 }
0x106b   :  { %2057 = vadd.xlane.f32.xlu1 %v2056_v31  ;;  %v2049_v15 = vpop.xlane.xlu0 %2048  ;;  %2477 = vmatpush.msra.mxu0 %v3643_v6 }
0x106c   :  { %v2051_v39 = vmul.f32 %v2049_v15, %v4858_v32  ;;  %v3646_v15 = vld [vmem:[%s5569_s24 + $0x8] sm:$0xff] }
0x106d   :  { %2478 = vmatpush.msra.mxu0 %v3644_v9  ;;  %v5354_v9 = vld [vmem:[%s5567_s11 + $0x60] sm:$0xff] }
0x106e   :  { %v5229_v16 = vsub.f32 %v2039_v17, %v2051_v39  ;;  %v3533_v17 = vld [vmem:[#allocation20 + $0x1] ss:$0 sm:$0xff] }
0x106f   :  { %2479 = vmatpush.msra.mxu0 %v3645_v27 }
0x1070   :  { %v2055_v37 = vmul.f32 %v5229_v16, %v5229_v16 }
0x1071   :  { %2480 = vmatpush.msra.mxu0 %v3646_v15 }
0x1072   :  { %v2059_v24 = vsel %vm527_vm0, %v2055_v37, 0.0 }
0x1073   :  { %2060 = vadd.xlane.f32.xlu2 %v2059_v24  ;;  %v3647_v24 = vld [vmem:[%s5569_s24] sm:$0xff] }
0x1074   :  { %2481 = vmatpush.msra.mxu0 %v3647_v24 }
0x10de   :  { %v2058_v1 = vpop.xlane.xlu1 %2057 }
0x10df   :  { %v2062_v2 = vmul.f32 %v2058_v1, %v4858_v32  ;;  %v3656_v1 = vld [vmem:[%s5566_s21 + $0x40] sm:$0xff] }
0x10e1   :  { %v2064_v12 = vadd.f32 1e-05, %v2062_v2  ;;  %v3657_v2 = vld [vmem:[%s5566_s21 + $0x48] sm:$0xff] }
0x10e3   :  { %3578 = vrsqrt.f32 %v2064_v12  ;;  %vm2072_vm10 = vweird.f32 %v2064_v12 }
0x10e6   :  { %v2061_v33 = vpop.xlane.xlu2 %2060 }
0x10e7   :  { %v2063_v38 = vmul.f32 %v2061_v33, %v4858_v32  ;;  %v3663_v33 = vld [vmem:[%s5566_s21 + $0x78] sm:$0xff] }
0x10e9   :  { %v3579_v35 = vpop.eup %3578  ;;  %v2065_v42 = vadd.f32 1e-05, %v2063_v38 }
0x10ea   :  { %v2067_v22 = vmul.f32 %v3579_v35, %v2064_v12  ;;  %vm2073_vm9 = vweird.f32 %v3579_v35  ;;  %v3659_v12 = vld [vmem:[%s5566_s21 + $0x58] sm:$0xff] }
0x10eb   :  { %3580 = vrsqrt.f32 %v2065_v42  ;;  %vm2074_vm11 = vmor %vm2072_vm10, %vm2073_vm9  ;;  %vm2082_vm13 = vweird.f32 %v2065_v42 }
0x10ec   :  { %v2068_v46 = vmul.f32 %v3579_v35, %v2067_v22 }
0x10ee   :  { %v2069_v34 = vmul.f32 0.5, %v2068_v46 }
0x10f0   :  { %v2070_v49 = vsub.f32 1.5, %v2069_v34 }
0x10f1   :  { %v3581_v3 = vpop.eup %3580 }
0x10f2   :  { %v2071_v4 = vmul.f32 %v3579_v35, %v2070_v49  ;;  %v2077_v5 = vmul.f32 %v3581_v3, %v2065_v42  ;;  %vm2083_vm12 = vweird.f32 %v3581_v3 }
0x10f3   :  { %vm2084_vm14 = vmor %vm2082_vm13, %vm2083_vm12 }
0x10f4   :  { %v2075_v8 = vsel %vm2074_vm11, %v3579_v35, %v2071_v4  ;;  %v2078_v23 = vmul.f32 %v3581_v3, %v2077_v5 }
0x10f5   :  { %v2086_v19 = vmul.f32 %v2075_v8, %v5223_v11  ;;  %v5344_v8 = vld [vmem:[%s5567_s11 + $0x70] sm:$0xff] }
0x10f6   :  { %v2079_v25 = vmul.f32 0.5, %v2078_v23 }
0x10f7   :  { %v2091_v10 = vmul.f32 %v3533_v17, %v2086_v19  ;;  %v5349_v19 = vld [vmem:[%s5567_s11 + $0x68] sm:$0xff] }
0x10f8   :  { %v2080_v29 = vsub.f32 1.5, %v2079_v25 }
0x10f9   :  { %v5269_v31 = vadd.f32 %v3534_v21, %v2091_v10  ;;  %v5359_v10 = vld [vmem:[%s5567_s11 + $0x58] sm:$0xff] }
0x10fa   :  { %v2081_v39 = vmul.f32 %v3581_v3, %v2080_v29  ;;  %v5364_v29 = vld [vmem:[%s5567_s11 + $0x50] sm:$0xff] }
0x10fb   :  { %3297 = vmatmul.msk.f32.vlgmr.msra.gmra.mxu2 %vm527_vm0, %v5269_v31  ;;  %3307 = vmatmul.msk.f32.vlgmr.msrb.gmra.mxu3 %vm527_vm0, %v5269_v31 }
0x10fc   :  { %v2085_v11 = vsel %vm2084_vm14, %v3581_v3, %v2081_v39  ;;  %3317 = vmatmul.msk.f32.vlgmr.msrb.gmra.mxu0 %vm527_vm0, %v5269_v31  ;;  %v5369_v39 = vld [vmem:[%s5567_s11 + $0x48] sm:$0xff] }
0x10fd   :  { %v2087_v37 = vmul.f32 %v2085_v11, %v5229_v16 }
0x10ff   :  { %v2092_v36 = vmul.f32 %v3533_v17, %v2087_v37  ;;  %v5339_v17 = vld [vmem:[%s5567_s11 + $0x78] sm:$0xff]  ;;  %v5374_v37 = vld [vmem:[%s5567_s11 + $0x40] sm:$0xff] }
0x1101   :  { %v5280_v41 = vadd.f32 %v3534_v21, %v2092_v36  ;;  %v5379_v36 = vld [vmem:[%s5567_s11 + $0x38] sm:$0xff] }
0x1103   :  { %3298 = vmatmul.msk.f32.gmra.mxu2 %vm527_vm0, %v5280_v41  ;;  %3308 = vmatmul.msk.f32.gmra.mxu3 %vm527_vm0, %v5280_v41 }
0x1104   :  { %3318 = vmatmul.msk.f32.gmra.mxu0 %vm527_vm0, %v5280_v41 }
0x1179   :  { %v2209_v43 = vpop.f32.mrf.mxu0 }
0x117a   :  { %v2210_v51 = vadd.f32 %v3535_v13, %v2209_v43 }
0x117e   :  { %v2172_v45 = vpop.f32.mrf.mxu3 }
0x117f   :  { %v2173_v28 = vadd.f32 %v3537_v47, %v2172_v45  ;;  %v5384_v45 = vld [vmem:[%s5567_s11 + $0x30] sm:$0xff] }
0x1181   :  { %v2212_v16 = vpop.f32.mrf.mxu0 }
0x1182   :  { %v2213_v50 = vadd.f32 %v3535_v13, %v2212_v16  ;;  %v5389_v16 = vld [vmem:[%s5567_s11 + $0x28] sm:$0xff] }
0x1184   :  { %2310 = vmatpush.msrb.mxu2 %v2213_v50 }
0x1186   :  { %2311 = vmatpush.msrb.mxu2 %v2210_v51  ;;  %v2175_v52 = vpop.f32.mrf.mxu3  ;;  %v3675_v51 = vld [vmem:[%s5567_s11 + $0x20] sm:$0xff] }
0x1187   :  { %v2176_v53 = vadd.f32 %v3537_v47, %v2175_v52  ;;  %3335 = vmatmul.msk.f32.vlgmr.msrb.gmra.mxu2 %vm627_vm1, %v3648_v55  ;;  %v3676_v52 = vld [vmem:[%s5567_s11 + $0x18] sm:$0xff] }
0x1189   :  { %2229 = vmatpush.msra.mxu1 %v2176_v53 }
0x118b   :  { %2230 = vmatpush.msra.mxu1 %v2173_v28 }
0x118c   :  { %3319 = vmatmul.msk.f32.vlgmr.msra.gmra.mxu1 %vm627_vm1, %v3648_v55  ;;  %v3677_v55 = vld [vmem:[%s5567_s11 + $0x10] sm:$0xff] }
0x118f   :  { %3336 = vmatmul.msk.f32.gmra.mxu2 %vm627_vm1, %v3649_v56 }
0x1194   :  { %3320 = vmatmul.msk.f32.gmra.mxu1 %vm627_vm1, %v3649_v56  ;;  %v3678_v56 = vld [vmem:[%s5567_s11 + $0x8] sm:$0xff] }
0x1197   :  { %3337 = vmatmul.msk.f32.gmra.mxu2 %vm627_vm1, %v3650_v57 }
0x119c   :  { %3321 = vmatmul.msk.f32.gmra.mxu1 %vm627_vm1, %v3650_v57 }
0x119f   :  { %3338 = vmatmul.msk.f32.gmra.mxu2 %vm627_vm1, %v3651_v18 }
0x11a4   :  { %3322 = vmatmul.msk.f32.gmra.mxu1 %vm627_vm1, %v3651_v18  ;;  %v2135_v18 = vpop.f32.mrf.mxu2 }
0x11a7   :  { %3339 = vmatmul.msk.f32.gmra.mxu2 %vm627_vm1, %v3652_v58 }
0x11ac   :  { %3323 = vmatmul.msk.f32.gmra.mxu1 %vm627_vm1, %v3652_v58  ;;  %v3536_v58 = vld [vmem:[%s5568_s12 + $0x2] ss:$0 sm:$0xff] }
0x11af   :  { %3340 = vmatmul.msk.f32.gmra.mxu2 %vm627_vm1, %v3653_v59 }
0x11b4   :  { %3324 = vmatmul.msk.f32.gmra.mxu1 %vm627_vm1, %v3653_v59  ;;  %v3679_v59 = vld [vmem:[%s5567_s11] sm:$0xff] }
0x11b7   :  { %3341 = vmatmul.msk.f32.gmra.mxu2 %vm627_vm1, %v3654_v60 }
0x11bc   :  { %3325 = vmatmul.msk.f32.gmra.mxu1 %vm627_vm1, %v3654_v60 }
0x11bf   :  { %3342 = vmatmul.msk.f32.gmra.mxu2 %vm627_vm1, %v3655_v61 }
0x11c4   :  { %3326 = vmatmul.msk.f32.gmra.mxu1 %vm627_vm1, %v3655_v61  ;;  %v2136_v61 = vadd.f32 %v3536_v58, %v2135_v18  ;;  %v3372_v18 = vld [vmem:[%s5570_s10 + $0x98] sm:$0xff] }
0x11c7   :  { %3343 = vmatmul.msk.f32.gmra.mxu2 %vm627_vm1, %v3656_v1 }
0x11cc   :  { %3327 = vmatmul.msk.f32.gmra.mxu1 %vm627_vm1, %v3656_v1  ;;  %v2138_v1 = vpop.f32.mrf.mxu2 }
0x11cf   :  { %3344 = vmatmul.msk.f32.gmra.mxu2 %vm627_vm1, %v3657_v2 }
0x11d4   :  { %3328 = vmatmul.msk.f32.gmra.mxu1 %vm627_vm1, %v3657_v2  ;;  %v2139_v2 = vadd.f32 %v3536_v58, %v2138_v1  ;;  %v3371_v58 = vld [vmem:[%s5570_s10 + $0x90] sm:$0xff] }
0x11d7   :  { %3345 = vmatmul.msk.f32.gmra.mxu2 %vm627_vm1, %v3658_v7 }
0x11dc   :  { %3329 = vmatmul.msk.f32.gmra.mxu1 %vm627_vm1, %v3658_v7 }
0x11df   :  { %3346 = vmatmul.msk.f32.gmra.mxu2 %vm627_vm1, %v3659_v12 }
0x11e4   :  { %3330 = vmatmul.msk.f32.gmra.mxu1 %vm627_vm1, %v3659_v12 }
0x11e7   :  { %3347 = vmatmul.msk.f32.gmra.mxu2 %vm627_vm1, %v3660_v20 }
0x11ec   :  { %3331 = vmatmul.msk.f32.gmra.mxu1 %vm627_vm1, %v3660_v20 }
0x11ef   :  { %3348 = vmatmul.msk.f32.gmra.mxu2 %vm627_vm1, %v3661_v26 }
0x11f4   :  { %3332 = vmatmul.msk.f32.gmra.mxu1 %vm627_vm1, %v3661_v26 }
0x11f7   :  { %3349 = vmatmul.msk.f32.gmra.mxu2 %vm627_vm1, %v3662_v30 }
0x11fc   :  { %3333 = vmatmul.msk.f32.gmra.mxu1 %vm627_vm1, %v3662_v30 }
0x11ff   :  { %3350 = vmatmul.msk.f32.gmra.mxu2 %vm627_vm1, %v3663_v33 }
0x1204   :  { %3334 = vmatmul.msk.f32.gmra.mxu1 %vm627_vm1, %v3663_v33 }
0x1209   :  { %v5336_v38 = vpop.f32.mrf.mxu1 }
0x120a   :  { %v2280_v60 = vmul.f32 %v3679_v59, %v5336_v38  ;;  %v2313_v7 = vpop.f32.mrf.mxu2 }
0x1211   :  { %v2235_v40 = vpop.f32.mrf.mxu1 }
0x1212   :  { %v2281_v57 = vmul.f32 %v3678_v56, %v2235_v40  ;;  %v2316_v12 = vpop.f32.mrf.mxu2 }
0x1219   :  { %v2238_v35 = vpop.f32.mrf.mxu1 }
0x121a   :  { %v2282_v28 = vmul.f32 %v3677_v55, %v2238_v35  ;;  %v2319_v20 = vpop.f32.mrf.mxu2 }
0x1221   :  { %v2241_v42 = vpop.f32.mrf.mxu1 }
0x1222   :  { %v2283_v53 = vmul.f32 %v3676_v52, %v2241_v42  ;;  %v2322_v26 = vpop.f32.mrf.mxu2 }
0x1229   :  { %v2244_v63 = vpop.f32.mrf.mxu1 }
0x122a   :  { %v2284_v47 = vmul.f32 %v3675_v51, %v2244_v63  ;;  %v2325_v30 = vpop.f32.mrf.mxu2 }
0x1231   :  { %v2247_v22 = vpop.f32.mrf.mxu1 }
0x1232   :  { %v2285_v50 = vmul.f32 %v5389_v16, %v2247_v22  ;;  %v2328_v33 = vpop.f32.mrf.mxu2 }
0x1239   :  { %v2250_v44 = vpop.f32.mrf.mxu1 }
0x123a   :  { %v2286_v13 = vmul.f32 %v5384_v45, %v2250_v44  ;;  %v2331_v40 = vpop.f32.mrf.mxu2 }
0x1241   :  { %v2253_v46 = vpop.f32.mrf.mxu1 }
0x1242   :  { %v2287_v43 = vmul.f32 %v5379_v36, %v2253_v46  ;;  %v2334_v35 = vpop.f32.mrf.mxu2 }
0x1249   :  { %v2256_v0 = vpop.f32.mrf.mxu1 }
0x124a   :  { %v2288_v24 = vmul.f32 %v5374_v37, %v2256_v0  ;;  %v2337_v38 = vpop.f32.mrf.mxu2 }
0x1251   :  { %v2259_v34 = vpop.f32.mrf.mxu1 }
0x1252   :  { %v2289_v11 = vmul.f32 %v5369_v39, %v2259_v34  ;;  %v2340_v22 = vpop.f32.mrf.mxu2 }
0x1259   :  { %v2262_v48 = vpop.f32.mrf.mxu1 }
0x125a   :  { %v2290_v15 = vmul.f32 %v5364_v29, %v2262_v48  ;;  %v2343_v44 = vpop.f32.mrf.mxu2 }
0x1261   :  { %v2265_v49 = vpop.f32.mrf.mxu1 }
0x1262   :  { %v2291_v27 = vmul.f32 %v5359_v10, %v2265_v49  ;;  %v2346_v46 = vpop.f32.mrf.mxu2 }
0x1269   :  { %v2268_v3 = vpop.f32.mrf.mxu1 }
0x126a   :  { %v2292_v25 = vmul.f32 %v5354_v9, %v2268_v3  ;;  %v2349_v0 = vpop.f32.mrf.mxu2 }
0x1271   :  { %v2271_v14 = vpop.f32.mrf.mxu1 }
0x1272   :  { %v2293_v21 = vmul.f32 %v5349_v19, %v2271_v14  ;;  %v2352_v34 = vpop.f32.mrf.mxu2 }
0x1279   :  { %v2274_v4 = vpop.f32.mrf.mxu1 }
0x127a   :  { %v2294_v23 = vmul.f32 %v5344_v8, %v2274_v4  ;;  %v2355_v48 = vpop.f32.mrf.mxu2  ;;  %v2374_v4 = vmul.f32 %v5349_v19, %v2352_v34  ;;  %v2366_v19 = vmul.f32 %v5389_v16, %v2328_v33 }
0x127b   :  { %v2375_v3 = vmul.f32 %v5344_v8, %v2355_v48  ;;  %v2367_v8 = vmul.f32 %v5384_v45, %v2331_v40 }
0x1281   :  { %v2277_v5 = vpop.f32.mrf.mxu1 }
0x1282   :  { %v2295_v6 = vmul.f32 %v5339_v17, %v2277_v5  ;;  %v2358_v49 = vpop.f32.mrf.mxu2  ;;  %v2373_v5 = vmul.f32 %v5354_v9, %v2349_v0  ;;  %v2365_v9 = vmul.f32 %v3675_v51, %v2325_v30  ;;  %v3681_v51 = vld [vmem:[#allocation7 + $0x8] sm:$0xff] }
0x1283   :  { %v2376_v14 = vmul.f32 %v5339_v17, %v2358_v49  ;;  %v2368_v17 = vmul.f32 %v5379_v36, %v2334_v35 }
0x1284   :  { %3351 = vmatpush.xpose.msk.msra.mxu3 %vm527_vm0, %v2295_v6  ;;  %v2372_v6 = vmul.f32 %v5359_v10, %v2346_v46  ;;  %v2364_v10 = vmul.f32 %v3676_v52, %v2322_v26  ;;  %v3376_v52 = vld [vmem:[%s5570_s10 + $0xb8] sm:$0xff] }
0x1285   :  { %2519 = vmatpush.msrb.mxu0 %v2376_v14 }
0x1287   :  { %2520 = vmatpush.msrb.mxu0 %v2375_v3  ;;  %v3369_v3 = vld [vmem:[%s5570_s10 + $0x80] sm:$0xff] }
0x1288   :  { %3352 = vmatpush.xpose.msk.msra.mxu3 %vm527_vm0, %v2294_v23  ;;  %v2371_v23 = vmul.f32 %v5364_v29, %v2343_v44  ;;  %v2362_v29 = vmul.f32 %v3678_v56, %v2316_v12 }
0x1289   :  { %2521 = vmatpush.msrb.mxu0 %v2374_v4 }
0x128b   :  { %2522 = vmatpush.msrb.mxu0 %v2373_v5  ;;  %v3538_v5 = vld [vmem:[#allocation13 + $0x2] ss:$0 sm:$0xff] }
0x128c   :  { %3353 = vmatpush.xpose.msk.msra.mxu3 %vm527_vm0, %v2293_v21  ;;  %v2370_v21 = vmul.f32 %v5369_v39, %v2340_v22 }
0x128d   :  { %2523 = vmatpush.msrb.mxu0 %v2372_v6 }
0x128f   :  { %2524 = vmatpush.msrb.mxu0 %v2371_v23 }
0x1290   :  { %3354 = vmatpush.xpose.msk.msra.mxu3 %vm527_vm0, %v2292_v25  ;;  %v2369_v25 = vmul.f32 %v5374_v37, %v2337_v38 }
0x1291   :  { %2525 = vmatpush.msrb.mxu0 %v2370_v21 }
0x1293   :  { %2526 = vmatpush.msrb.mxu0 %v2369_v25 }
0x1294   :  { %3355 = vmatpush.xpose.msk.msra.mxu3 %vm527_vm0, %v2291_v27  ;;  %v2363_v27 = vmul.f32 %v3677_v55, %v2319_v20 }
0x1295   :  { %2527 = vmatpush.msrb.mxu0 %v2368_v17 }
0x1297   :  { %2528 = vmatpush.msrb.mxu0 %v2367_v8 }
0x1298   :  { %3356 = vmatpush.xpose.msk.msra.mxu3 %vm527_vm0, %v2290_v15  ;;  %v2361_v15 = vmul.f32 %v3679_v59, %v2313_v7 }
0x1299   :  { %2529 = vmatpush.msrb.mxu0 %v2366_v19 }
0x129b   :  { %2530 = vmatpush.msrb.mxu0 %v2365_v9 }
0x129c   :  { %3357 = vmatpush.xpose.msk.msra.mxu3 %vm527_vm0, %v2289_v11 }
0x129d   :  { %2531 = vmatpush.msrb.mxu0 %v2364_v10 }
0x129f   :  { %2532 = vmatpush.msrb.mxu0 %v2363_v27 }
0x12a0   :  { %3358 = vmatpush.xpose.msk.msra.mxu3 %vm527_vm0, %v2288_v24 }
0x12a1   :  { %2533 = vmatpush.msrb.mxu0 %v2362_v29 }
0x12a3   :  { %2534 = vmatpush.msrb.mxu0 %v2361_v15 }
0x12a4   :  { %3359 = vmatpush.xpose.msk.msra.mxu3 %vm527_vm0, %v2287_v43 }
0x12a8   :  { %3360 = vmatpush.xpose.msk.msra.mxu3 %vm527_vm0, %v2286_v13  ;;  %v3680_v13 = vld [vmem:[#allocation7] sm:$0xff] }
0x12ac   :  { %3361 = vmatpush.xpose.msk.msra.mxu3 %vm527_vm0, %v2285_v50 }
0x12b0   :  { %3362 = vmatpush.xpose.msk.msra.mxu3 %vm527_vm0, %v2284_v47 }
0x12b4   :  { %3363 = vmatpush.xpose.msk.msra.mxu3 %vm527_vm0, %v2283_v53  ;;  %v3375_v53 = vld [vmem:[%s5570_s10 + $0xb0] sm:$0xff] }
0x12b8   :  { %3364 = vmatpush.xpose.msk.msra.mxu3 %vm527_vm0, %v2282_v28  ;;  %v3374_v28 = vld [vmem:[%s5570_s10 + $0xa8] sm:$0xff] }
0x12bc   :  { %3365 = vmatpush.xpose.msk.msra.mxu3 %vm527_vm0, %v2281_v57  ;;  %v3373_v57 = vld [vmem:[%s5570_s10 + $0xa0] sm:$0xff] }
0x12c0   :  { %3366 = vmatpush.xpose.msk.msra.mxu3 %vm527_vm0, %v2280_v60  ;;  %v3370_v60 = vld [vmem:[%s5570_s10 + $0x88] sm:$0xff] }
0x12c3   :  { %3367 = vmatmul.msk.f32.vlgmr.msra.gmra.mxu3 %vm527_vm0, %v2136_v61 }
0x12c4   :  { %2570 = vmatpush.msrb.mxu3 %v3376_v52  ;;  %v3385_v52 = vld [vmem:[%s5571_s15 + $0x130] sm:$0xff] }
0x12c6   :  { %2571 = vmatpush.msrb.mxu3 %v3375_v53  ;;  %v3386_v53 = vld [vmem:[%s5571_s15 + $0x138] sm:$0xff] }
0x12c8   :  { %2572 = vmatpush.msrb.mxu3 %v3374_v28  ;;  %v3384_v28 = vld [vmem:[%s5571_s15 + $0x128] sm:$0xff] }
0x12ca   :  { %2573 = vmatpush.msrb.mxu3 %v3373_v57  ;;  %v3382_v57 = vld [vmem:[%s5571_s15 + $0x118] sm:$0xff] }
0x12cb   :  { %3368 = vmatmul.msk.f32.gmra.mxu3 %vm527_vm0, %v2139_v2 }
0x12cc   :  { %2574 = vmatpush.msrb.mxu3 %v3372_v18  ;;  %v3379_v18 = vld [vmem:[%s5571_s15 + $0x100] sm:$0xff] }
0x12ce   :  { %2575 = vmatpush.msrb.mxu3 %v3371_v58  ;;  %v3380_v58 = vld [vmem:[%s5571_s15 + $0x108] sm:$0xff] }
0x12d0   :  { %2576 = vmatpush.msrb.mxu3 %v3370_v60 }
0x12d2   :  { %2577 = vmatpush.msrb.mxu3 %v3369_v3  ;;  %v3424_v3 = vld [vmem:[%s5572_s18 + $0x2c8] sm:$0xff] }
0x1346   :  { %v2448_v42 = vpop.f32.mrf.mxu3 }
0x1347   :  { %2454 = vmax.xlane.f32.xlu0 %v2448_v42 }
0x134e   :  { %v2451_v63 = vpop.f32.mrf.mxu3 }
0x134f   :  { %2456 = vmax.xlane.f32.xlu1 %v2451_v63 }
0x13ba   :  { %v2455_v39 = vpop.xlane.xlu0 %2454 }
0x13bb   :  { %v2458_v11 = vsub.f32 %v2448_v42, %v2455_v39 }
0x13bd   :  { %v2460_v37 = vmul.f32 1.442695, %v2458_v11 }
0x13bf   :  { %3582 = vpow2.f32 %v2460_v37 }
0x13c2   :  { %v2457_v24 = vpop.xlane.xlu1 %2456 }
0x13c3   :  { %v2459_v36 = vsub.f32 %v2451_v63, %v2457_v24 }
0x13c5   :  { %v3583_v43 = vpop.eup %3582  ;;  %v2462_v45 = vmul.f32 1.442695, %v2459_v36  ;;  %v3393_v36 = vld [vmem:[%s5571_s15 + $0x170] sm:$0xff] }
0x13c6   :  { %v2464_v16 = vmul.f32 %v3680_v13, %v3583_v43  ;;  %v3394_v43 = vld [vmem:[%s5571_s15 + $0x178] sm:$0xff]  ;;  %v3392_v13 = vld [vmem:[%s5571_s15 + $0x168] sm:$0xff] }
0x13c7   :  { %3584 = vpow2.f32 %v2462_v45  ;;  %2706 = vmatpush.msra.mxu3 %v3394_v43  ;;  %v3391_v45 = vld [vmem:[%s5571_s15 + $0x160] sm:$0xff] }
0x13c8   :  { %2482 = vmatmul.f32.vlgmr.msra.gmra.mxu0 %v2464_v16 }
0x13c9   :  { %2683 = vmatpush.msra.mxu0 %v3393_v36  ;;  %2707 = vmatpush.msra.mxu3 %v3392_v13  ;;  %v3402_v36 = vld [vmem:[%s5572_s18 + $0x218] sm:$0xff] }
0x13cb   :  { %2684 = vmatpush.msra.mxu0 %v3391_v45 }
0x13cd   :  { %v3585_v50 = vpop.eup %3584 }
0x13ce   :  { %v2465_v47 = vmul.f32 %v3681_v51, %v3585_v50  ;;  %v3390_v50 = vld [vmem:[%s5571_s15 + $0x158] sm:$0xff]  ;;  %v3387_v51 = vld [vmem:[%s5571_s15 + $0x140] sm:$0xff] }
0x13cf   :  { %2708 = vmatpush.msra.mxu3 %v3390_v50  ;;  %v3401_v50 = vld [vmem:[%s5572_s18 + $0x210] sm:$0xff] }
0x13d0   :  { %2485 = vmatmul.f32.gmra.mxu0 %v2465_v47 }
0x1445   :  { %v2483_v55 = vpop.f32.mrf.mxu0 }
0x1446   :  { %v2484_v56 = vadd.f32 %v2483_v55, %v4838_v54  ;;  %v3383_v55 = vld [vmem:[%s5571_s15 + $0x120] sm:$0xff] }
0x1448   :  { %3586 = vrcp.f32 %v2484_v56  ;;  %v2500_v12 = vand.u32 2147483648, %v2484_v56  ;;  %v2498_v20 = vand.u32 2147483647, %v2484_v56  ;;  %vm2494_vm2 = vweird.f32 %v2484_v56 }
0x144a   :  { %v2501_v33 = vor.u32 1.1754944e-38, %v2500_v12  ;;  %vm2499_vm4 = vcmp.eq.f32.partialorder %v2498_v20, 8.507059e+37  ;;  %v3429_v20 = vld [vmem:[%s5572_s18 + $0x2f0] sm:$0xff] }
0x144d   :  { %v2486_v59 = vpop.f32.mrf.mxu0 }
0x144e   :  { %v3587_v61 = vpop.eup %3586  ;;  %v2487_v1 = vadd.f32 %v2486_v59, %v4846_v62 }
0x144f   :  { %v2490_v2 = vmul.f32 %v3587_v61, %v2484_v56  ;;  %vm2495_vm15 = vweird.f32 %v3587_v61  ;;  %v3381_v56 = vld [vmem:[%s5571_s15 + $0x110] sm:$0xff] }
0x1450   :  { %3588 = vrcp.f32 %v2487_v1  ;;  %vm2496_vm3 = vmor %vm2494_vm2, %vm2495_vm15  ;;  %v2515_v63 = vand.u32 2147483648, %v2487_v1  ;;  %v2513_v44 = vand.u32 2147483647, %v2487_v1  ;;  %vm2509_vm6 = vweird.f32 %v2487_v1 }
0x1451   :  { %v2491_v7 = vsub.f32 1.0, %v2490_v2  ;;  %v3413_v2 = vld [vmem:[%s5572_s18 + $0x270] sm:$0xff]  ;;  %vm2903_vm15 = vcmask 1043456   ;;  %vm2899_vm2 = vcmask 31744  }
0x1452   :  { %v2516_v0 = vor.u32 1.1754944e-38, %v2515_v63  ;;  %vm2514_vm8 = vcmp.eq.f32.partialorder %v2513_v44, 8.507059e+37  ;;  %v3409_v63 = vld [vmem:[%s5572_s18 + $0x250] sm:$0xff]  ;;  %v3426_v44 = vld [vmem:[%s5572_s18 + $0x2d8] sm:$0xff] }
0x1453   :  { %v2492_v54 = vmul.f32 %v3587_v61, %v2491_v7  ;;  %v3412_v7 = vld [vmem:[%s5572_s18 + $0x268] sm:$0xff] }
0x1455   :  { %v2493_v26 = vadd.f32 %v3587_v61, %v2492_v54  ;;  %v3430_v54 = vld [vmem:[%s5572_s18 + $0x2f8] sm:$0xff] }
0x1456   :  { %v3589_v30 = vpop.eup %3588 }
0x1457   :  { %v2505_v40 = vmul.f32 %v3589_v30, %v2487_v1  ;;  %v2497_v35 = vsel %vm2496_vm3, %v3587_v61, %v2493_v26  ;;  %vm2510_vm5 = vweird.f32 %v3589_v30  ;;  %v3414_v1 = vld [vmem:[%s5572_s18 + $0x278] sm:$0xff] }
0x1458   :  { %v2502_v42 = vsel %vm2499_vm4, %v2501_v33, %v2497_v35  ;;  %vm2511_vm7 = vmor %vm2509_vm6, %vm2510_vm5  ;;  %3437 = vmatpush.msrb.mxu1 %v3414_v1  ;;  %v3428_v33 = vld [vmem:[%s5572_s18 + $0x2e8] sm:$0xff] }
0x1459   :  { %v2506_v38 = vsub.f32 1.0, %v2505_v40  ;;  %v2503_v62 = vmul.f32 %v2502_v42, %v2464_v16  ;;  %v3389_v16 = vld [vmem:[%s5571_s15 + $0x150] sm:$0xff]  ;;  %v3410_v42 = vld [vmem:[%s5572_s18 + $0x258] sm:$0xff] }
0x145a   :  { %2685 = vmatpush.msra.mxu0 %v3389_v16  ;;  %3438 = vmatpush.msrb.mxu1 %v3413_v2 }
0x145b   :  { %2535 = vmatmul.f32.vlgmr.msrb.gmra.mxu0 %v2503_v62  ;;  %v2507_v22 = vmul.f32 %v3589_v30, %v2506_v38  ;;  %v3427_v62 = vld [vmem:[%s5572_s18 + $0x2e0] sm:$0xff] }
0x145c   :  { %2686 = vmatpush.msra.mxu0 %v3387_v51  ;;  %3439 = vmatpush.msrb.mxu1 %v3412_v7  ;;  %v3420_v51 = vld [vmem:[%s5572_s18 + $0x2a8] sm:$0xff] }
0x145d   :  { %v2508_v46 = vadd.f32 %v3589_v30, %v2507_v22 }
0x145e   :  { %2687 = vmatpush.msra.mxu0 %v3385_v52  ;;  %v3419_v52 = vld [vmem:[%s5572_s18 + $0x2a0] sm:$0xff] }
0x145f   :  { %v2512_v34 = vsel %vm2511_vm7, %v3589_v30, %v2508_v46  ;;  %v3411_v30 = vld [vmem:[%s5572_s18 + $0x260] sm:$0xff]  ;;  %v3408_v46 = vld [vmem:[%s5572_s18 + $0x248] sm:$0xff] }
0x1460   :  { %v2517_v48 = vsel %vm2514_vm8, %v2516_v0, %v2512_v34  ;;  %2688 = vmatpush.msra.mxu0 %v3383_v55  ;;  %3440 = vmatpush.msrb.mxu1 %v3411_v30  ;;  %v3425_v34 = vld [vmem:[%s5572_s18 + $0x2d0] sm:$0xff] }
0x1461   :  { %v2518_v49 = vmul.f32 %v2517_v48, %v2465_v47  ;;  %v3388_v47 = vld [vmem:[%s5571_s15 + $0x148] sm:$0xff]  ;;  %v3407_v48 = vld [vmem:[%s5572_s18 + $0x240] sm:$0xff]  ;;  %v3417_v55 = vld [vmem:[%s5572_s18 + $0x290] sm:$0xff] }
0x1462   :  { %2709 = vmatpush.msra.mxu3 %v3388_v47  ;;  %2689 = vmatpush.msra.mxu0 %v3381_v56  ;;  %v3400_v47 = vld [vmem:[%s5572_s18 + $0x208] sm:$0xff]  ;;  %v3415_v56 = vld [vmem:[%s5572_s18 + $0x280] sm:$0xff] }
0x1463   :  { %2538 = vmatmul.f32.gmra.mxu0 %v2518_v49  ;;  %3441 = vmatpush.msrb.mxu1 %v3410_v42 }
0x1464   :  { %2710 = vmatpush.msra.mxu3 %v3386_v53  ;;  %2690 = vmatpush.msra.mxu0 %v3379_v18  ;;  %v3399_v53 = vld [vmem:[%s5572_s18 + $0x200] sm:$0xff] }
0x1465   :  { %3442 = vmatpush.msrb.mxu1 %v3409_v63 }
0x1466   :  { %2711 = vmatpush.msra.mxu3 %v3384_v28  ;;  %2763 = vmatpush.msrb.mxu0 %v3414_v1  ;;  %v3416_v28 = vld [vmem:[%s5572_s18 + $0x288] sm:$0xff] }
0x1467   :  { %3443 = vmatpush.msrb.mxu1 %v3408_v46 }
0x1468   :  { %2712 = vmatpush.msra.mxu3 %v3382_v57  ;;  %2764 = vmatpush.msrb.mxu0 %v3413_v2  ;;  %v2663_v57 = vld [vmem:[#allocation17 + $0x4] sm:$0x3] }
0x1469   :  { %3444 = vmatpush.msrb.mxu1 %v3407_v48  ;;  %v2665_v18 = vperm.slane %v2663_v57, 0 }
0x146a   :  { %2713 = vmatpush.msra.mxu3 %v3380_v58  ;;  %2765 = vmatpush.msrb.mxu0 %v3412_v7 }
0x146c   :  { %2766 = vmatpush.msrb.mxu0 %v3411_v30 }
0x146e   :  { %2767 = vmatpush.msrb.mxu0 %v3410_v42 }
0x1470   :  { %2768 = vmatpush.msrb.mxu0 %v3409_v63 }
0x1472   :  { %2769 = vmatpush.msrb.mxu0 %v3408_v46 }
0x1474   :  { %2770 = vmatpush.msrb.mxu0 %v3407_v48 }
0x14d8   :  { %v2536_v14 = vpop.f32.mrf.mxu0 }
0x14d9   :  { %3377 = vmatmul.msk.f32.vlgmr.msrb.gmra.mxu3 %vm527_vm0, %v2536_v14 }
0x14da   :  { %2786 = vmatpush.msrb.mxu3 %v3430_v54 }
0x14dc   :  { %2787 = vmatpush.msrb.mxu3 %v3429_v20 }
0x14de   :  { %2788 = vmatpush.msrb.mxu3 %v3428_v33 }
0x14e0   :  { %v2539_v4 = vpop.f32.mrf.mxu0  ;;  %2789 = vmatpush.msrb.mxu3 %v3427_v62 }
0x14e1   :  { %3378 = vmatmul.msk.f32.gmra.mxu3 %vm527_vm0, %v2539_v4  ;;  %v3406_v4 = vld [vmem:[%s5572_s18 + $0x238] sm:$0xff] }
0x14e2   :  { %2790 = vmatpush.msrb.mxu3 %v3426_v44  ;;  %3445 = vmatpush.msrb.mxu1 %v3406_v4 }
0x14e3   :  { %2771 = vmatpush.msrb.mxu0 %v3406_v4 }
0x14e4   :  { %2791 = vmatpush.msrb.mxu3 %v3425_v34 }
0x14e6   :  { %2792 = vmatpush.msrb.mxu3 %v3424_v3 }
0x155c   :  { %v2579_v6 = vpop.f32.mrf.mxu3 }
0x155d   :  { %v2580_v23 = vadd.f32 %v3538_v5, %v2579_v6 }
0x155f   :  { %v2585_v21 = vadd.f32 %v2580_v23, %v5269_v31  ;;  %v3423_v23 = vld [vmem:[%s5572_s18 + $0x2c0] sm:$0xff] }
0x1560   :  { %2793 = vmatpush.msrb.mxu3 %v3423_v23 }
0x1561   :  { %v2591_v25 = vsel %vm527_vm0, %v2585_v21, 0.0 }
0x1562   :  { %2592 = vadd.xlane.f32.xlu2 %v2591_v25  ;;  %v3405_v25 = vld [vmem:[%s5572_s18 + $0x230] sm:$0xff] }
0x1563   :  { %3446 = vmatpush.msrb.mxu1 %v3405_v25  ;;  %2772 = vmatpush.msrb.mxu0 %v3405_v25 }
0x1564   :  { %v2582_v17 = vpop.f32.mrf.mxu3 }
0x1565   :  { %v2583_v8 = vadd.f32 %v3538_v5, %v2582_v17 }
0x1567   :  { %v2586_v19 = vadd.f32 %v2583_v8, %v5280_v41 }
0x1569   :  { %v2594_v9 = vsel %vm527_vm0, %v2586_v19, 0.0 }
0x156a   :  { %2595 = vadd.xlane.f32.xlu0 %v2594_v9  ;;  %v3540_v9 = vld [vmem:[#allocation16 + $0x2] ss:$0 sm:$0xff] }
0x15d5   :  { %v2593_v10 = vpop.xlane.xlu2 %2592 }
0x15d6   :  { %v2597_v27 = vmul.f32 %v2593_v10, %v4858_v32 }
0x15d8   :  { %v5435_v29 = vsub.f32 %v2585_v21, %v2597_v27  ;;  %v3539_v21 = vld [vmem:[#allocation14 + $0x2] ss:$0 sm:$0xff]  ;;  %v3404_v27 = vld [vmem:[%s5572_s18 + $0x228] sm:$0xff] }
0x15d9   :  { %3447 = vmatpush.msrb.mxu1 %v3404_v27  ;;  %2773 = vmatpush.msrb.mxu0 %v3404_v27 }
0x15da   :  { %v2601_v31 = vmul.f32 %v5435_v29, %v5435_v29 }
0x15dc   :  { %v2603_v15 = vsel %vm527_vm0, %v2601_v31, 0.0 }
0x15dd   :  { %2604 = vadd.xlane.f32.xlu1 %v2603_v15  ;;  %v2596_v41 = vpop.xlane.xlu0 %2595  ;;  %v3421_v15 = vld [vmem:[%s5572_s18 + $0x2b0] sm:$0xff] }
0x15de   :  { %v2598_v39 = vmul.f32 %v2596_v41, %v4858_v32 }
0x15e0   :  { %v5441_v11 = vsub.f32 %v2586_v19, %v2598_v39  ;;  %v3422_v19 = vld [vmem:[%s5572_s18 + $0x2b8] sm:$0xff]  ;;  %v3403_v39 = vld [vmem:[%s5572_s18 + $0x220] sm:$0xff] }
0x15e1   :  { %2794 = vmatpush.msrb.mxu3 %v3422_v19  ;;  %2774 = vmatpush.msrb.mxu0 %v3403_v39  ;;  %v2894_v19 = vld [vmem:[#allocation23] sm:$0xf] }
0x15e2   :  { %v2602_v37 = vmul.f32 %v5441_v11, %v5441_v11  ;;  %3448 = vmatpush.msrb.mxu1 %v3403_v39  ;;  %v2930_v39 = vld [vmem:[#allocation28 + $0x8] sm:$0xff] }
0x15e3   :  { %2795 = vmatpush.msrb.mxu3 %v3421_v15  ;;  %2775 = vmatpush.msrb.mxu0 %v3402_v36  ;;  %v2931_v15 = vld [vmem:[#allocation28 + $0x10] sm:$0xff] }
0x15e4   :  { %v2606_v24 = vsel %vm527_vm0, %v2602_v37, 0.0  ;;  %3449 = vmatpush.msrb.mxu1 %v3402_v36  ;;  %2949 = vmatpush.msra.mxu2 %v2931_v15  ;;  %v2929_v36 = vld [vmem:[#allocation28] sm:$0xff] }
0x15e5   :  { %2607 = vadd.xlane.f32.xlu2 %v2606_v24  ;;  %2776 = vmatpush.msrb.mxu0 %v3401_v50 }
0x15e6   :  { %2796 = vmatpush.msrb.mxu3 %v3420_v51  ;;  %3450 = vmatpush.msrb.mxu1 %v3401_v50 }
0x15e7   :  { %2777 = vmatpush.msrb.mxu0 %v3400_v47  ;;  %2950 = vmatpush.msra.mxu2 %v2930_v39 }
0x15e8   :  { %2797 = vmatpush.msrb.mxu3 %v3419_v52  ;;  %3451 = vmatpush.msrb.mxu1 %v3400_v47 }
0x15e9   :  { %2778 = vmatpush.msrb.mxu0 %v3399_v53  ;;  %2951 = vmatpush.msra.mxu2 %v2929_v36 }
0x15ea   :  { %3452 = vmatpush.msrb.mxu1 %v3399_v53 }
0x15ec   :  { %3432 = vmatpush.msk.msra.mxu1 %vm2903_vm15, %v2894_v19 }
0x1650   :  { %v2605_v59 = vpop.xlane.xlu1 %2604 }
0x1651   :  { %v2609_v60 = vmul.f32 %v2605_v59, %v4858_v32 }
0x1653   :  { %v2611_v61 = vadd.f32 1e-05, %v2609_v60 }
0x1655   :  { %3590 = vrsqrt.f32 %v2611_v61  ;;  %vm2619_vm10 = vweird.f32 %v2611_v61 }
0x1658   :  { %v2608_v12 = vpop.xlane.xlu2 %2607 }
0x1659   :  { %v2610_v26 = vmul.f32 %v2608_v12, %v4858_v32 }
0x165b   :  { %v3591_v40 = vpop.eup %3590  ;;  %v5471_v35 = vadd.f32 1e-05, %v2610_v26 }
0x165c   :  { %v2614_v38 = vmul.f32 %v3591_v40, %v2611_v61  ;;  %vm2620_vm9 = vweird.f32 %v3591_v40  ;;  %v2666_v61 = vperm.slane %v2663_v57, 1 }
0x165d   :  { %3592 = vrsqrt.f32 %v5471_v35  ;;  %vm2621_vm11 = vmor %vm2619_vm10, %vm2620_vm9  ;;  %vm2629_vm13 = vweird.f32 %v5471_v35  ;;  %vm2932_vm9 = vcmask 195584   ;;  %vm2956_vm10 = vcmask 64512  }
0x165e   :  { %v2615_v22 = vmul.f32 %v3591_v40, %v2614_v38 }
0x1660   :  { %v2616_v0 = vmul.f32 0.5, %v2615_v22 }
0x1662   :  { %v2617_v49 = vsub.f32 1.5, %v2616_v0 }
0x1663   :  { %v3593_v14 = vpop.eup %3592 }
0x1664   :  { %v2618_v5 = vmul.f32 %v3591_v40, %v2617_v49  ;;  %v2624_v6 = vmul.f32 %v3593_v14, %v5471_v35  ;;  %vm2630_vm12 = vweird.f32 %v3593_v14 }
0x1665   :  { %vm2631_vm14 = vmor %vm2629_vm13, %vm2630_vm12 }
0x1666   :  { %v2622_v17 = vsel %vm2621_vm11, %v3591_v40, %v2618_v5  ;;  %v2625_v8 = vmul.f32 %v3593_v14, %v2624_v6  ;;  %v3541_v40 = vld [vmem:[#allocation19 + $0x2] ss:$0 sm:$0xff]  ;;  %vm3032_vm11 = vcmask 1024  }
0x1667   :  { %v2633_v10 = vmul.f32 %v2622_v17, %v5435_v29 }
0x1668   :  { %v2626_v31 = vmul.f32 0.5, %v2625_v8 }
0x1669   :  { %v2638_v41 = vmul.f32 %v3539_v21, %v2633_v10 }
0x166a   :  { %v2627_v37 = vsub.f32 1.5, %v2626_v31 }
0x166b   :  { %v5491_v24 = vadd.f32 %v3540_v9, %v2638_v41 }
0x166c   :  { %v2628_v43 = vmul.f32 %v3593_v14, %v2627_v37  ;;  %v2927_v37 = vld [vmem:[#allocation26] sm:$0xff] }
0x166d   :  { %3395 = vmatmul.msk.f32.vlgmr.msra.gmra.mxu0 %vm527_vm0, %v5491_v24  ;;  %3397 = vmatmul.msk.f32.vlgmr.msra.gmra.mxu3 %vm527_vm0, %v5491_v24 }
0x166e   :  { %v2632_v29 = vsel %vm2631_vm14, %v3593_v14, %v2628_v43 }
0x166f   :  { %v2634_v45 = vmul.f32 %v2632_v29, %v5441_v11  ;;  %v3418_v11 = vld [vmem:[%s5572_s18 + $0x298] sm:$0xff] }
0x1670   :  { %2798 = vmatpush.msrb.mxu3 %v3418_v11 }
0x1671   :  { %v2639_v13 = vmul.f32 %v3539_v21, %v2634_v45 }
0x1672   :  { %2799 = vmatpush.msrb.mxu3 %v3417_v55 }
0x1673   :  { %v2644_v16 = vadd.f32 %v3540_v9, %v2639_v13  ;;  %v2893_v9 = vld [vmem:[%s5573_s5] sm:$0x3] }
0x1674   :  { %2800 = vmatpush.msrb.mxu3 %v3416_v28 }
0x1675   :  { %3396 = vmatmul.msk.f32.gmra.mxu0 %vm527_vm0, %v2644_v16  ;;  %3398 = vmatmul.msk.f32.gmra.mxu3 %vm527_vm0, %v2644_v16 }
0x1676   :  { %2801 = vmatpush.msrb.mxu3 %v3415_v56  ;;  %v3542_v56 = vld [vmem:[#allocation20 + $0x2] ss:$0 sm:$0xff] }
0x1678   :  { %2975 = vmatpush.msra.mxu3 %v2927_v37 }
0x16ea   :  { %v2692_v58 = vpop.f32.mrf.mxu0 }
0x16eb   :  { %v2693_v59 = vadd.f32 %v2692_v58, %v2665_v18 }
0x16ed   :  { %v2721_v60 = vmax.f32 %v2693_v59, 0.0 }
0x16ef   :  { %2779 = vmatmul.f32.vlgmr.msrb.gmra.mxu0 %v2721_v60  ;;  %v3543_v60 = vld [vmem:[#allocation22 + $0x2] ss:$0 sm:$0xff] }
0x16f0   :  { %v2715_v1 = vpop.f32.mrf.mxu3 }
0x16f1   :  { %v2716_v2 = vadd.f32 %v2715_v1, %v2666_v61 }
0x16f2   :  { %v2695_v7 = vpop.f32.mrf.mxu0 }
0x16f3   :  { %v2722_v12 = vmax.f32 %v2716_v2, 0.0  ;;  %v2696_v54 = vadd.f32 %v2695_v7, %v2665_v18  ;;  %v2869_v7 = vld [vmem:[#allocation8] sm:$0x3] }
0x16f5   :  { %v2723_v20 = vmax.f32 %v2696_v54, 0.0  ;;  %2802 = vmatmul.f32.vlgmr.msrb.gmra.mxu3 %v2722_v12  ;;  %v2987_v12 = vld [vmem:[#allocation29 + $0x38] sm:$0xff]  ;;  %v2986_v54 = vld [vmem:[#allocation29 + $0x30] sm:$0xff] }
0x16f7   :  { %2782 = vmatmul.f32.vlgmr.msrb.gmra.mxu1 %v2723_v20  ;;  %v2985_v20 = vld [vmem:[#allocation29 + $0x28] sm:$0xff] }
0x16f8   :  { %v2718_v26 = vpop.f32.mrf.mxu3 }
0x16f9   :  { %v2719_v30 = vadd.f32 %v2718_v26, %v2666_v61  ;;  %v2984_v26 = vld [vmem:[#allocation29 + $0x20] sm:$0xff] }
0x16fb   :  { %v2724_v33 = vmax.f32 %v2719_v30, 0.0  ;;  %v2928_v30 = vld [vmem:[%s5574_s22] sm:$0x3] }
0x16fc   :  { %3434 = vmatmul.msk.f32.vlgmr.msra.gmra.mxu2 %vm2932_vm9, %v2928_v30 }
0x16fd   :  { %2805 = vmatmul.f32.gmra.mxu3 %v2724_v33  ;;  %v2983_v33 = vld [vmem:[#allocation29 + $0x18] sm:$0xff] }
0x16ff   :  { %3433 = vmatmul.msk.f32.vlgmr.msra.gmra.mxu1 %vm2899_vm2, %v2893_v9 }
0x176c   :  { %v2780_v35 = vpop.f32.mrf.mxu0 }
0x176d   :  { %v2781_v42 = vadd.f32 %v3541_v40, %v2780_v35  ;;  %v2981_v35 = vld [vmem:[#allocation29 + $0x8] sm:$0xff] }
0x1774   :  { %v2783_v22 = vpop.f32.mrf.mxu1 }
0x1775   :  { %v2784_v46 = vadd.f32 %v3541_v40, %v2783_v22  ;;  %v2982_v40 = vld [vmem:[#allocation29 + $0x10] sm:$0xff] }
0x1778   :  { %v2803_v38 = vpop.f32.mrf.mxu3 }
0x1779   :  { %v2804_v62 = vadd.f32 %v2803_v38, %v2781_v42  ;;  %v3544_v42 = vld [vmem:[#allocation25] ss:$0 sm:$0xff] }
0x177b   :  { %v2809_v63 = vadd.f32 %v2804_v62, %v5491_v24 }
0x177c   :  { %v2924_v38 = vpop.f32.mrf.mxu1 }
0x177d   :  { %v2815_v44 = vsel %vm527_vm0, %v2809_v63, 0.0  ;;  %v2925_v62 = vadd.f32 %v3544_v42, %v2924_v38 }
0x177e   :  { %2816 = vadd.xlane.f32.xlu1 %v2815_v44 }
0x177f   :  { %3435 = vmatmul.msk.f32.vlgmr.msra.gmra.mxu3 %vm2956_vm10, %v2925_v62  ;;  %v2953_v44 = vpop.f32.mrf.mxu2 }
0x1780   :  { %v2806_v0 = vpop.f32.mrf.mxu3 }
0x1781   :  { %v2807_v34 = vadd.f32 %v2806_v0, %v2784_v46 }
0x1783   :  { %v2810_v48 = vadd.f32 %v2807_v34, %v2644_v16  ;;  %v3545_v34 = vld [vmem:[#allocation31] ss:$0 sm:$0xff] }
0x1785   :  { %v2818_v49 = vsel %vm527_vm0, %v2810_v48, 0.0 }
0x1786   :  { %2819 = vadd.xlane.f32.xlu0 %v2818_v49 }
0x17f1   :  { %v2817_v3 = vpop.xlane.xlu1 %2816 }
0x17f2   :  { %v2821_v14 = vmul.f32 %v2817_v3, %v4858_v32 }
0x17f4   :  { %v2823_v4 = vsub.f32 %v2809_v63, %v2821_v14  ;;  %v2980_v63 = vld [vmem:[#allocation29] sm:$0xff] }
0x17f5   :  { %v3546_v14 = vld [vmem:[#allocation32] ss:$0 sm:$0xff] }
0x17f6   :  { %v2825_v5 = vmul.f32 %v2823_v4, %v2823_v4 }
0x17f8   :  { %v2827_v6 = vsel %vm527_vm0, %v2825_v5, 0.0 }
0x17f9   :  { %2828 = vadd.xlane.f32.xlu0 %v2827_v6  ;;  %v2820_v23 = vpop.xlane.xlu0 %2819 }
0x17fa   :  { %v2822_v21 = vmul.f32 %v2820_v23, %v4858_v32  ;;  %v3547_v23 = vld [vmem:[#allocation2] ss:$0 sm:$0xff] }
0x17fc   :  { %v2824_v25 = vsub.f32 %v2810_v48, %v2822_v21 }
0x17fe   :  { %v2826_v17 = vmul.f32 %v2824_v25, %v2824_v25 }
0x1800   :  { %v2830_v8 = vsel %vm527_vm0, %v2826_v17, 0.0 }
0x1801   :  { %2831 = vadd.xlane.f32.xlu2 %v2830_v8 }
0x1802   :  { %v2977_v46 = vpop.f32.mrf.mxu3 }
0x1803   :  { %v2978_v0 = vadd.f32 %v2977_v46, %v2953_v44 }
0x186c   :  { %v2829_v10 = vpop.xlane.xlu0 %2828 }
0x186d   :  { %v2833_v27 = vmul.f32 %v2829_v10, %v4858_v32 }
0x186f   :  { %v2835_v31 = vadd.f32 1e-05, %v2833_v27 }
0x1871   :  { %3594 = vrsqrt.f32 %v2835_v31  ;;  %vm2843_vm4 = vweird.f32 %v2835_v31 }
0x1874   :  { %v2832_v41 = vpop.xlane.xlu2 %2831 }
0x1875   :  { %v2834_v24 = vmul.f32 %v2832_v41, %v4858_v32 }
0x1877   :  { %v3595_v43 = vpop.eup %3594  ;;  %v2836_v29 = vadd.f32 1e-05, %v2834_v24 }
0x1878   :  { %v2838_v45 = vmul.f32 %v3595_v43, %v2835_v31  ;;  %vm2844_vm3 = vweird.f32 %v3595_v43 }
0x1879   :  { %3596 = vrsqrt.f32 %v2836_v29  ;;  %vm2845_vm5 = vmor %vm2843_vm4, %vm2844_vm3  ;;  %vm2853_vm7 = vweird.f32 %v2836_v29 }
0x187a   :  { %v2839_v13 = vmul.f32 %v3595_v43, %v2838_v45 }
0x187c   :  { %v2840_v16 = vmul.f32 0.5, %v2839_v13 }
0x187e   :  { %v2841_v50 = vsub.f32 1.5, %v2840_v16 }
0x187f   :  { %v3597_v51 = vpop.eup %3596 }
0x1880   :  { %v2848_v47 = vmul.f32 %v3597_v51, %v2836_v29  ;;  %v2842_v52 = vmul.f32 %v3595_v43, %v2841_v50  ;;  %vm2854_vm6 = vweird.f32 %v3597_v51 }
0x1881   :  { %vm2855_vm8 = vmor %vm2853_vm7, %vm2854_vm6 }
0x1882   :  { %v2849_v53 = vmul.f32 %v3597_v51, %v2848_v47  ;;  %v2846_v32 = vsel %vm2845_vm5, %v3595_v43, %v2842_v52 }
0x1883   :  { %v2857_v57 = vmul.f32 %v2846_v32, %v2823_v4 }
0x1884   :  { %v2850_v11 = vmul.f32 0.5, %v2849_v53 }
0x1885   :  { %v2862_v61 = vmul.f32 %v3542_v56, %v2857_v57 }
0x1886   :  { %v2851_v55 = vsub.f32 1.5, %v2850_v11 }
0x1887   :  { %v2867_v2 = vadd.f32 %v3543_v60, %v2862_v61 }
0x1888   :  { %v2852_v28 = vmul.f32 %v3597_v51, %v2851_v55 }
0x188a   :  { %v2856_v18 = vsel %vm2855_vm8, %v3597_v51, %v2852_v28 }
0x188b   :  { %v2858_v58 = vmul.f32 %v2856_v18, %v2824_v25 }
0x188d   :  { %v2863_v59 = vmul.f32 %v3542_v56, %v2858_v58 }
0x188f   :  { %v2868_v1 = vadd.f32 %v3543_v60, %v2863_v59 }
0x1891   :  { %2887 = vmatpush.msra.mxu0 %v2868_v1 }
0x1893   :  { %2888 = vmatpush.msra.mxu0 %v2867_v2 }
0x1894   :  { %3431 = vmatmul.msk.f32.vlgmr.msra.gmra.mxu0 %vm627_vm1, %v2869_v7  ;;  %vm3023_vm1 = vcmask 1041408  }
0x1895   :  { %2999 = vmatpush.msrb.mxu0 %v2987_v12 }
0x1897   :  { %3000 = vmatpush.msrb.mxu0 %v2986_v54 }
0x1899   :  { %3001 = vmatpush.msrb.mxu0 %v2985_v20 }
0x189b   :  { %3002 = vmatpush.msrb.mxu0 %v2984_v26 }
0x189d   :  { %3003 = vmatpush.msrb.mxu0 %v2983_v33 }
0x189f   :  { %3004 = vmatpush.msrb.mxu0 %v2982_v40 }
0x18a1   :  { %3005 = vmatpush.msrb.mxu0 %v2981_v35 }
0x18a3   :  { %3006 = vmatpush.msrb.mxu0 %v2980_v63 }
0x1911   :  { %v2890_v22 = vpop.f32.mrf.mxu0 }
0x1912   :  { %3436 = vmatmul.msk.f32.vlgmr.msrb.gmra.mxu0 %vm527_vm0, %v2890_v22 }
0x198f   :  { %v3008_v48 = vpop.f32.mrf.mxu0 }
0x1990   :  { %v3011_v49 = vadd.f32 %v3008_v48, %v2978_v0 }
0x1992   :  { %v3016_v3 = vadd.f32 %v3545_v34, %v3011_v49 }
0x1994   :  { %v3017_v4 = vmax.f32 %v3016_v3, 0.0 }
0x1996   :  { %v3022_v5 = vmul.f32 %v3546_v14, %v3017_v4 }
0x1998   :  { %v3024_v6 = vsel %vm3023_vm1, %v3022_v5, 0.0 }
0x1999   :  { %3025 = vadd.xlane.f32.xlu1 %v3024_v6 }
0x1a0c   :  { %v3026_v21 = vpop.xlane.xlu1 %3025 }
0x1a0d   :  { %v3031_v25 = vadd.f32 %v3547_v23, %v3026_v21 }
0x1a0f   :  { %3033 = vst.msk [vmem:[%s4422_s29] sm:$0x3] %vm3032_vm11, %v3031_v25 }
0x1a10   :  { %3038 = vsyncpa [#allocation4], 1 }
0x1a11   :  { %3039 = vsyncpa [#allocation6], 1 }
0x1a12   :  { %3040 = vsyncpa [#allocation9], 1 }
0x1a13   :  { %3041 = vsyncpa [#allocation12], 1 }
0x1a14   :  { %3042 = vsyncpa [#allocation15], 1 }
0x1a15   :  { %3043 = vsyncpa [#allocation18], 1 }
0x1a16   :  { %3044 = vsyncpa [#allocation21], 1 }
0x1a17   :  { %3045 = vsyncpa [#allocation24], 1 }
0x1a18   :  { %3046 = vsyncpa [#allocation27], 1 }
0x1a19   :  { %3047 = vsyncpa [#allocation30], 1 }
0x1a1a   :  { %3048 = vsyncpa [#allocation33], 1 }

</bundles_post_ra>
